<compile_context>
chip_gen: v6e
topology: v6e:2x2x1
jax: 0.10.0
libtpu: 0.0.40
codegen_flags: <defaults>
</compile_context>

<pallas_src>
import jax
import jax.numpy as jnp
from jax import lax
from jax.experimental import pallas as pl
from jax.experimental.pallas import tpu as pltpu

EPS = 1e-8


# ----------------------------- in-kernel helpers -----------------------------

def _prelu(x, alpha):
    # alpha: (1, 1) parameter (PyTorch nn.PReLU with num_parameters=1).
    return jnp.where(x >= 0, x, alpha * x)


def _mm(w_bf16, x_f32):
    # 1x1 conv == channel matmul; bf16 operands, f32 accumulation on the MXU.
    return jnp.dot(w_bf16, x_f32.astype(jnp.bfloat16),
                   preferred_element_type=jnp.float32)


def _shift_right(x, s, lane):
    """y[:, t] = x[:, t - s] for t >= s else 0 (static s; XLU roll + mask)."""
    if s <= 0:
        return x
    t = x.shape[-1]
    if s >= t:
        return jnp.zeros_like(x)
    rolled = pltpu.roll(x, s, axis=1)
    return jnp.where(lane >= s, rolled, 0.0)


def _causal_cumsum(x, lane):
    """Inclusive prefix sum along the lane (time) axis: log2(T) roll + add."""
    t = x.shape[-1]
    s = 1
    out = x
    while s < t:
        out = out + _shift_right(out, s, lane)
        s *= 2
    return out


def _cln(x, gamma, beta, lane, pos, eps=EPS):
    """Cumulative (causal) layer norm, Conv-TasNet 'cLN'.

    Statistics over all channels and frames 0..t.  Variance is computed as
    E[x^2] - E[x]^2 in f32, clamped at 0 (reference uses sqrt(var)+eps).
    """
    c = x.shape[0]
    cum_sum = _causal_cumsum(jnp.sum(x, axis=0, keepdims=True), lane)     # (1,T)
    cum_sq = _causal_cumsum(jnp.sum(x * x, axis=0, keepdims=True), lane)  # (1,T)
    cum_num = pos * float(c)                                              # (1,T)
    mean = cum_sum / cum_num
    var = cum_sq / cum_num - mean * mean
    denom = jnp.sqrt(jnp.maximum(var, 0.0)) + eps
    return (x - mean) / denom * gamma + beta


def _depthwise_causal(h, wd_ref, dilation, lane, kernel_size):
    """Causal dilated depthwise conv: taps unrolled with static shifts."""
    acc = wd_ref[kernel_size - 1] * h            # zero-shift tap
    for k in range(kernel_size - 1):
        s = (kernel_size - 1 - k) * dilation
        acc = acc + wd_ref[k] * _shift_right(h, s, lane)
    return acc


# --------------------------------- the kernel --------------------------------

def _make_separator_kernel(*, layers_per_block, kernel_size, dilated, total_layers):
    dilations = [(2 ** j) if dilated else 1 for j in range(layers_per_block)]

    def kernel(x_ref, gin_ref, bin_ref, wb_ref, bb_ref,
               w1_ref, b1_ref, a1_ref, g1_ref, be1_ref,
               wd_ref, bd_ref, a2_ref, g2_ref, be2_ref,
               ws_ref, bs_ref, wo_ref, bo_ref,
               am_ref, wm_ref, bm_ref,
               mask_ref,
               y_s, sk_s, dw_s):
        l = pl.program_id(1)
        t = x_ref.shape[-1]
        # Hoisted index tensors (built once per grid step, reused everywhere).
        lane = lax.broadcasted_iota(jnp.int32, (1, t), 1)        # (1, T)
        pos = lane.astype(jnp.float32) + 1.0                     # 1-based frames

        # ---- pre-stage (first layer only): input cLN + bottleneck 1x1 ------
        @pl.when(l == 0)
        def _init():
            xin = x_ref[...]                                     # (N, T)
            xn = _cln(xin, gin_ref[...], bin_ref[...], lane, pos)
            y_s[...] = _mm(wb_ref[...], xn) + bb_ref[...]
            sk_s[...] = jnp.zeros_like(sk_s)

        # ---- TCN residual layer ---------------------------------------------
        x = y_s[...]                                             # (Bc, T)
        h = _mm(w1_ref[...], x) + b1_ref[...]                    # (H, T)
        h = _prelu(h, a1_ref[...])
        h = _cln(h, g1_ref[...], be1_ref[...], lane, pos)

        if len(set(dilations)) == 1:
            dw_s[...] = _depthwise_causal(h, wd_ref, dilations[0], lane,
                                          kernel_size) + bd_ref[...]
        else:
            li = l % layers_per_block
            for j, d in enumerate(dilations):
                @pl.when(li == j)
                def _depthwise(d=d):
                    dw_s[...] = _depthwise_causal(h, wd_ref, d, lane,
                                                  kernel_size) + bd_ref[...]

        y = dw_s[...]
        y = _prelu(y, a2_ref[...])
        y = _cln(y, g2_ref[...], be2_ref[...], lane, pos)
        yb = y.astype(jnp.bfloat16)

        sk_s[...] = sk_s[...] + jnp.dot(ws_ref[...], yb,
                                        preferred_element_type=jnp.float32) + bs_ref[...]
        # Last layer has zero output head weights -> residual stream unchanged
        # (and unused), which matches dual_head=False in the reference.
        y_s[...] = x + jnp.dot(wo_ref[...], yb,
                               preferred_element_type=jnp.float32) + bo_ref[...]

        # ---- post-stage (last layer only): PReLU -> mask 1x1 -> sigmoid -----
        @pl.when(l == total_layers - 1)
        def _post():
            sk = sk_s[...]
            hm = _prelu(sk, am_ref[...])
            m = _mm(wm_ref[...], hm) + bm_ref[...]
            mask_ref[...] = jax.nn.sigmoid(m)

    return kernel


# ------------------------------- pallas wrapper -------------------------------

def _batched_spec(c, t):
    return pl.BlockSpec((None, c, t), lambda b, l: (b, 0, 0))


def _const_spec(arr):
    zeros = (0,) * arr.ndim

    def imap(b, l):
        return zeros

    return pl.BlockSpec(arr.shape, imap)


def _layer_spec(arr):
    tail = (0,) * (arr.ndim - 1)

    def imap(b, l):
        return (l,) + tail

    return pl.BlockSpec((None,) + arr.shape[1:], imap)


def separator_forward(params, x, *, num_sources, num_features, kernel_size,
                      num_layers, dilated=True):
    """input (B, num_features, T) -> output (B, num_sources, num_features, T)."""
    batch, n, t = x.shape
    total_layers = params["W1"].shape[0]
    bc = params["wb"].shape[0]
    hidden = params["W1"].shape[1]
    skip = params["WS"].shape[1]
    m = params["wm"].shape[0]

    args = (x,
            params["in_gamma"], params["in_beta"], params["wb"], params["bb"],
            params["W1"], params["B1"], params["A1"], params["G1"], params["BE1"],
            params["WD"], params["BD"], params["A2"], params["G2"], params["BE2"],
            params["WS"], params["BS"], params["WO"], params["BO"],
            params["am"], params["wm"], params["bm"])

    in_specs = ([_batched_spec(n, t)]
                + [_const_spec(a) for a in args[1:5]]
                + [_layer_spec(a) for a in args[5:19]]
                + [_const_spec(a) for a in args[19:]])

    kernel = _make_separator_kernel(
        layers_per_block=num_layers, kernel_size=kernel_size,
        dilated=dilated, total_layers=total_layers)

    mask = pl.pallas_call(
        kernel,
        grid=(batch, total_layers),
        in_specs=in_specs,
        out_specs=_batched_spec(m, t),
        out_shape=jax.ShapeDtypeStruct((batch, m, t), jnp.float32),
        scratch_shapes=[pltpu.VMEM((bc, t), jnp.float32),      # residual stream
                        pltpu.VMEM((skip, t), jnp.float32),    # skip accumulator
                        pltpu.VMEM((hidden, t), jnp.float32)], # depthwise output
        compiler_params=pltpu.CompilerParams(
            dimension_semantics=("parallel", "arbitrary")),
    )(*args)
    return mask.reshape(batch, num_sources, num_features, t)


# ------------------------------ parameters / model ----------------------------

def init_separator_params(key, *, num_features, bottleneck_channels, hidden_channels,
                          skip_channels, kernel_size, num_blocks, num_layers,
                          num_sources):
    counter = [0]

    def dense(shape):
        counter[0] += 1
        k = jax.random.fold_in(key, counter[0])
        return (0.1 * jax.random.normal(k, shape)).astype(jnp.float32)

    n, bc, h, s = num_features, bottleneck_channels, hidden_channels, skip_channels
    m = num_sources * num_features

    w1, b1, a1, g1, be1 = [], [], [], [], []
    wd, bd, a2, g2, be2 = [], [], [], [], []
    ws, bs, wo, bo = [], [], [], []
    for bi in range(num_blocks):
        for li in range(num_layers):
            dual_head = not (bi == num_blocks - 1 and li == num_layers - 1)
            w1.append(dense((h, bc)))
            b1.append(dense((h, 1)))
            a1.append(jnp.full((1, 1), 0.25, jnp.float32))
            g1.append(jnp.ones((h, 1), jnp.float32))
            be1.append(jnp.zeros((h, 1), jnp.float32))
            # depthwise weight as (K, H, 1): wd[k, c, 0] == torch_weight[c, 0, k]
            wd.append(dense((kernel_size, h, 1)))
            bd.append(dense((h, 1)))
            a2.append(jnp.full((1, 1), 0.25, jnp.float32))
            g2.append(jnp.ones((h, 1), jnp.float32))
            be2.append(jnp.zeros((h, 1), jnp.float32))
            ws.append(dense((s, h)))
            bs.append(dense((s, 1)))
            if dual_head:
                wo.append(dense((bc, h)))
                bo.append(dense((bc, 1)))
            else:
                # No output head on the last layer; zeros keep the (unused)
                # residual stream unchanged inside the fused kernel.
                wo.append(jnp.zeros((bc, h), jnp.float32))
                bo.append(jnp.zeros((bc, 1), jnp.float32))

    params = {
        "in_gamma": jnp.ones((n, 1), jnp.float32),
        "in_beta": jnp.zeros((n, 1), jnp.float32),
        "wb": dense((bc, n)).astype(jnp.bfloat16),
        "bb": dense((bc, 1)),
        "W1": jnp.stack(w1).astype(jnp.bfloat16),
        "B1": jnp.stack(b1),
        "A1": jnp.stack(a1),
        "G1": jnp.stack(g1),
        "BE1": jnp.stack(be1),
        "WD": jnp.stack(wd),            # (L, K, H, 1) f32 (VPU path)
        "BD": jnp.stack(bd),
        "A2": jnp.stack(a2),
        "G2": jnp.stack(g2),
        "BE2": jnp.stack(be2),
        "WS": jnp.stack(ws).astype(jnp.bfloat16),
        "BS": jnp.stack(bs),
        "WO": jnp.stack(wo).astype(jnp.bfloat16),
        "BO": jnp.stack(bo),
        "am": jnp.full((1, 1), 0.25, jnp.float32),
        "wm": dense((m, s)).astype(jnp.bfloat16),
        "bm": dense((m, 1)),
    }
    return params


# ------------------------------------ main ------------------------------------

if __name__ == "__main__":
    # Small, module-consistent configuration (T is a multiple of 128 so every
    # VMEM tile / store is lane dense).
    num_features = 16
    bottleneck_channels = 32
    hidden_channels = 64
    skip_channels = 32
    kernel_size = 3
    num_blocks = 2
    num_layers = 3
    num_sources = 2
    batch, num_frames = 2, 128

    key = jax.random.PRNGKey(0)
    pkey, xkey = jax.random.split(key)
    params = init_separator_params(
        pkey,
        num_features=num_features,
        bottleneck_channels=bottleneck_channels,
        hidden_channels=hidden_channels,
        skip_channels=skip_channels,
        kernel_size=kernel_size,
        num_blocks=num_blocks,
        num_layers=num_layers,
        num_sources=num_sources,
    )
    x = jax.random.normal(xkey, (batch, num_features, num_frames), jnp.float32)

    out = separator_forward(params, x,
                            num_sources=num_sources,
                            num_features=num_features,
                            kernel_size=kernel_size,
                            num_layers=num_layers)
    out = jax.block_until_ready(out)
    assert out.shape == (batch, num_sources, num_features, num_frames), out.shape
    assert bool(jnp.all(jnp.isfinite(out)))
    print("KERNEL_OK")
</pallas_src>

<mosaic_0001>
module attributes {stable_mosaic.version = 11 : i64} {
  func.func @kernel(%arg0: i32, %arg1: i32, %arg2: memref<1x16x128xf32, #tpu.memory_space<vmem>>, %arg3: memref<16x1xf32, #tpu.memory_space<vmem>>, %arg4: memref<16x1xf32, #tpu.memory_space<vmem>>, %arg5: memref<32x16xbf16, #tpu.memory_space<vmem>>, %arg6: memref<32x1xf32, #tpu.memory_space<vmem>>, %arg7: memref<1x64x32xbf16, #tpu.memory_space<vmem>>, %arg8: memref<1x64x1xf32, #tpu.memory_space<vmem>>, %arg9: memref<1x1x1xf32, #tpu.memory_space<vmem>>, %arg10: memref<1x64x1xf32, #tpu.memory_space<vmem>>, %arg11: memref<1x64x1xf32, #tpu.memory_space<vmem>>, %arg12: memref<1x3x64x1xf32, #tpu.memory_space<vmem>>, %arg13: memref<1x64x1xf32, #tpu.memory_space<vmem>>, %arg14: memref<1x1x1xf32, #tpu.memory_space<vmem>>, %arg15: memref<1x64x1xf32, #tpu.memory_space<vmem>>, %arg16: memref<1x64x1xf32, #tpu.memory_space<vmem>>, %arg17: memref<1x32x64xbf16, #tpu.memory_space<vmem>>, %arg18: memref<1x32x1xf32, #tpu.memory_space<vmem>>, %arg19: memref<1x32x64xbf16, #tpu.memory_space<vmem>>, %arg20: memref<1x32x1xf32, #tpu.memory_space<vmem>>, %arg21: memref<1x1xf32, #tpu.memory_space<vmem>>, %arg22: memref<32x32xbf16, #tpu.memory_space<vmem>>, %arg23: memref<32x1xf32, #tpu.memory_space<vmem>>, %arg24: memref<1x32x128xf32, #tpu.memory_space<vmem>>, %arg25: memref<32x128xf32, #tpu.memory_space<vmem>>, %arg26: memref<32x128xf32, #tpu.memory_space<vmem>>, %arg27: memref<64x128xf32, #tpu.memory_space<vmem>>) attributes {dimension_semantics = [#tpu.dimension_semantics<parallel>, #tpu.dimension_semantics<arbitrary>], iteration_bounds = array<i64: 2, 6>, scalar_prefetch = 0 : i64, scratch_operands = 3 : i64, tpu.core_type = #tpu.core_type<tc>, window_params = [{transform_indices = @transform_0, window_bounds = array<i64: 1, 16, 128>}, {pipeline_mode = #tpu.pipeline_mode<synchronous>, transform_indices = @transform_1, window_bounds = array<i64: 16, 1>}, {pipeline_mode = #tpu.pipeline_mode<synchronous>, transform_indices = @transform_2, window_bounds = array<i64: 16, 1>}, {pipeline_mode = #tpu.pipeline_mode<synchronous>, transform_indices = @transform_3, window_bounds = array<i64: 32, 16>}, {pipeline_mode = #tpu.pipeline_mode<synchronous>, transform_indices = @transform_4, window_bounds = array<i64: 32, 1>}, {transform_indices = @transform_5, window_bounds = array<i64: 1, 64, 32>}, {transform_indices = @transform_6, window_bounds = array<i64: 1, 64, 1>}, {transform_indices = @transform_7, window_bounds = array<i64: 1, 1, 1>}, {transform_indices = @transform_8, window_bounds = array<i64: 1, 64, 1>}, {transform_indices = @transform_9, window_bounds = array<i64: 1, 64, 1>}, {transform_indices = @transform_10, window_bounds = array<i64: 1, 3, 64, 1>}, {transform_indices = @transform_11, window_bounds = array<i64: 1, 64, 1>}, {transform_indices = @transform_12, window_bounds = array<i64: 1, 1, 1>}, {transform_indices = @transform_13, window_bounds = array<i64: 1, 64, 1>}, {transform_indices = @transform_14, window_bounds = array<i64: 1, 64, 1>}, {transform_indices = @transform_15, window_bounds = array<i64: 1, 32, 64>}, {transform_indices = @transform_16, window_bounds = array<i64: 1, 32, 1>}, {transform_indices = @transform_17, window_bounds = array<i64: 1, 32, 64>}, {transform_indices = @transform_18, window_bounds = array<i64: 1, 32, 1>}, {pipeline_mode = #tpu.pipeline_mode<synchronous>, transform_indices = @transform_19, window_bounds = array<i64: 1, 1>}, {pipeline_mode = #tpu.pipeline_mode<synchronous>, transform_indices = @transform_20, window_bounds = array<i64: 32, 32>}, {pipeline_mode = #tpu.pipeline_mode<synchronous>, transform_indices = @transform_21, window_bounds = array<i64: 32, 1>}, {transform_indices = @transform_22, window_bounds = array<i64: 1, 32, 128>}]} {
    %0 = tpu.iota {dimensions = array<i32: 1>} : vector<1x128xi32>
    %1 = arith.sitofp %0 : vector<1x128xi32> to vector<1x128xf32>
    %cst = arith.constant 1.000000e+00 : f32
    %2 = vector.broadcast %cst : f32 to vector<1x128xf32>
    %3 = arith.addf %1, %2 : vector<1x128xf32>
    %c0_i32 = arith.constant 0 : i32
    %4 = arith.cmpi eq, %arg1, %c0_i32 : i32
    %5 = arith.extui %4 : i1 to i32
    %c0_i32_0 = arith.constant 0 : i32
    %6 = arith.cmpi ne, %5, %c0_i32_0 : i32
    scf.if %6 {
      %c0_150 = arith.constant 0 : index
      %c0_151 = arith.constant 0 : index
      %c0_152 = arith.constant 0 : index
      %297 = vector.load %arg2[%c0_150, %c0_151, %c0_152] : memref<1x16x128xf32, #tpu.memory_space<vmem>>, vector<1x16x128xf32>
      %298 = vector.shape_cast %297 : vector<1x16x128xf32> to vector<16x128xf32>
      %c0_153 = arith.constant 0 : index
      %c0_154 = arith.constant 0 : index
      %299 = vector.load %arg3[%c0_153, %c0_154] : memref<16x1xf32, #tpu.memory_space<vmem>>, vector<16x1xf32>
      %c0_155 = arith.constant 0 : index
      %c0_156 = arith.constant 0 : index
      %300 = vector.load %arg4[%c0_155, %c0_156] : memref<16x1xf32, #tpu.memory_space<vmem>>, vector<16x1xf32>
      %cst_157 = arith.constant dense<0.000000e+00> : vector<128xf32>
      %301 = vector.multi_reduction <add>, %298, %cst_157 [0] : vector<16x128xf32> to vector<128xf32>
      %302 = vector.shape_cast %301 : vector<128xf32> to vector<1x128xf32>
      %c1_i32_158 = arith.constant 1 : i32
      %303 = tpu.dynamic_rotate %302 by %c1_i32_158 dim 1 : vector<1x128xf32>, i32 -> vector<1x128xf32>
      %c1_i32_159 = arith.constant 1 : i32
      %304 = vector.broadcast %c1_i32_159 : i32 to vector<1x128xi32>
      %305 = arith.cmpi sge, %0, %304 : vector<1x128xi32>
      %cst_160 = arith.constant 0.000000e+00 : f32
      %306 = vector.broadcast %cst_160 : f32 to vector<1x128xf32>
      %307 = arith.select %305, %303, %306 : vector<1x128xi1>, vector<1x128xf32>
      %308 = arith.addf %302, %307 : vector<1x128xf32>
      %c2_i32_161 = arith.constant 2 : i32
      %309 = tpu.dynamic_rotate %308 by %c2_i32_161 dim 1 : vector<1x128xf32>, i32 -> vector<1x128xf32>
      %c2_i32_162 = arith.constant 2 : i32
      %310 = vector.broadcast %c2_i32_162 : i32 to vector<1x128xi32>
      %311 = arith.cmpi sge, %0, %310 : vector<1x128xi32>
      %cst_163 = arith.constant 0.000000e+00 : f32
      %312 = vector.broadcast %cst_163 : f32 to vector<1x128xf32>
      %313 = arith.select %311, %309, %312 : vector<1x128xi1>, vector<1x128xf32>
      %314 = arith.addf %308, %313 : vector<1x128xf32>
      %c4_i32_164 = arith.constant 4 : i32
      %315 = tpu.dynamic_rotate %314 by %c4_i32_164 dim 1 : vector<1x128xf32>, i32 -> vector<1x128xf32>
      %c4_i32_165 = arith.constant 4 : i32
      %316 = vector.broadcast %c4_i32_165 : i32 to vector<1x128xi32>
      %317 = arith.cmpi sge, %0, %316 : vector<1x128xi32>
      %cst_166 = arith.constant 0.000000e+00 : f32
      %318 = vector.broadcast %cst_166 : f32 to vector<1x128xf32>
      %319 = arith.select %317, %315, %318 : vector<1x128xi1>, vector<1x128xf32>
      %320 = arith.addf %314, %319 : vector<1x128xf32>
      %c8_i32_167 = arith.constant 8 : i32
      %321 = tpu.dynamic_rotate %320 by %c8_i32_167 dim 1 : vector<1x128xf32>, i32 -> vector<1x128xf32>
      %c8_i32_168 = arith.constant 8 : i32
      %322 = vector.broadcast %c8_i32_168 : i32 to vector<1x128xi32>
      %323 = arith.cmpi sge, %0, %322 : vector<1x128xi32>
      %cst_169 = arith.constant 0.000000e+00 : f32
      %324 = vector.broadcast %cst_169 : f32 to vector<1x128xf32>
      %325 = arith.select %323, %321, %324 : vector<1x128xi1>, vector<1x128xf32>
      %326 = arith.addf %320, %325 : vector<1x128xf32>
      %c16_i32_170 = arith.constant 16 : i32
      %327 = tpu.dynamic_rotate %326 by %c16_i32_170 dim 1 : vector<1x128xf32>, i32 -> vector<1x128xf32>
      %c16_i32_171 = arith.constant 16 : i32
      %328 = vector.broadcast %c16_i32_171 : i32 to vector<1x128xi32>
      %329 = arith.cmpi sge, %0, %328 : vector<1x128xi32>
      %cst_172 = arith.constant 0.000000e+00 : f32
      %330 = vector.broadcast %cst_172 : f32 to vector<1x128xf32>
      %331 = arith.select %329, %327, %330 : vector<1x128xi1>, vector<1x128xf32>
      %332 = arith.addf %326, %331 : vector<1x128xf32>
      %c32_i32_173 = arith.constant 32 : i32
      %333 = tpu.dynamic_rotate %332 by %c32_i32_173 dim 1 : vector<1x128xf32>, i32 -> vector<1x128xf32>
      %c32_i32_174 = arith.constant 32 : i32
      %334 = vector.broadcast %c32_i32_174 : i32 to vector<1x128xi32>
      %335 = arith.cmpi sge, %0, %334 : vector<1x128xi32>
      %cst_175 = arith.constant 0.000000e+00 : f32
      %336 = vector.broadcast %cst_175 : f32 to vector<1x128xf32>
      %337 = arith.select %335, %333, %336 : vector<1x128xi1>, vector<1x128xf32>
      %338 = arith.addf %332, %337 : vector<1x128xf32>
      %c64_i32_176 = arith.constant 64 : i32
      %339 = tpu.dynamic_rotate %338 by %c64_i32_176 dim 1 : vector<1x128xf32>, i32 -> vector<1x128xf32>
      %c64_i32_177 = arith.constant 64 : i32
      %340 = vector.broadcast %c64_i32_177 : i32 to vector<1x128xi32>
      %341 = arith.cmpi sge, %0, %340 : vector<1x128xi32>
      %cst_178 = arith.constant 0.000000e+00 : f32
      %342 = vector.broadcast %cst_178 : f32 to vector<1x128xf32>
      %343 = arith.select %341, %339, %342 : vector<1x128xi1>, vector<1x128xf32>
      %344 = arith.addf %338, %343 : vector<1x128xf32>
      %345 = arith.mulf %298, %298 : vector<16x128xf32>
      %cst_179 = arith.constant dense<0.000000e+00> : vector<128xf32>
      %346 = vector.multi_reduction <add>, %345, %cst_179 [0] : vector<16x128xf32> to vector<128xf32>
      %347 = vector.shape_cast %346 : vector<128xf32> to vector<1x128xf32>
      %c1_i32_180 = arith.constant 1 : i32
      %348 = tpu.dynamic_rotate %347 by %c1_i32_180 dim 1 : vector<1x128xf32>, i32 -> vector<1x128xf32>
      %c1_i32_181 = arith.constant 1 : i32
      %349 = vector.broadcast %c1_i32_181 : i32 to vector<1x128xi32>
      %350 = arith.cmpi sge, %0, %349 : vector<1x128xi32>
      %cst_182 = arith.constant 0.000000e+00 : f32
      %351 = vector.broadcast %cst_182 : f32 to vector<1x128xf32>
      %352 = arith.select %350, %348, %351 : vector<1x128xi1>, vector<1x128xf32>
      %353 = arith.addf %347, %352 : vector<1x128xf32>
      %c2_i32_183 = arith.constant 2 : i32
      %354 = tpu.dynamic_rotate %353 by %c2_i32_183 dim 1 : vector<1x128xf32>, i32 -> vector<1x128xf32>
      %c2_i32_184 = arith.constant 2 : i32
      %355 = vector.broadcast %c2_i32_184 : i32 to vector<1x128xi32>
      %356 = arith.cmpi sge, %0, %355 : vector<1x128xi32>
      %cst_185 = arith.constant 0.000000e+00 : f32
      %357 = vector.broadcast %cst_185 : f32 to vector<1x128xf32>
      %358 = arith.select %356, %354, %357 : vector<1x128xi1>, vector<1x128xf32>
      %359 = arith.addf %353, %358 : vector<1x128xf32>
      %c4_i32_186 = arith.constant 4 : i32
      %360 = tpu.dynamic_rotate %359 by %c4_i32_186 dim 1 : vector<1x128xf32>, i32 -> vector<1x128xf32>
      %c4_i32_187 = arith.constant 4 : i32
      %361 = vector.broadcast %c4_i32_187 : i32 to vector<1x128xi32>
      %362 = arith.cmpi sge, %0, %361 : vector<1x128xi32>
      %cst_188 = arith.constant 0.000000e+00 : f32
      %363 = vector.broadcast %cst_188 : f32 to vector<1x128xf32>
      %364 = arith.select %362, %360, %363 : vector<1x128xi1>, vector<1x128xf32>
      %365 = arith.addf %359, %364 : vector<1x128xf32>
      %c8_i32_189 = arith.constant 8 : i32
      %366 = tpu.dynamic_rotate %365 by %c8_i32_189 dim 1 : vector<1x128xf32>, i32 -> vector<1x128xf32>
      %c8_i32_190 = arith.constant 8 : i32
      %367 = vector.broadcast %c8_i32_190 : i32 to vector<1x128xi32>
      %368 = arith.cmpi sge, %0, %367 : vector<1x128xi32>
      %cst_191 = arith.constant 0.000000e+00 : f32
      %369 = vector.broadcast %cst_191 : f32 to vector<1x128xf32>
      %370 = arith.select %368, %366, %369 : vector<1x128xi1>, vector<1x128xf32>
      %371 = arith.addf %365, %370 : vector<1x128xf32>
      %c16_i32_192 = arith.constant 16 : i32
      %372 = tpu.dynamic_rotate %371 by %c16_i32_192 dim 1 : vector<1x128xf32>, i32 -> vector<1x128xf32>
      %c16_i32_193 = arith.constant 16 : i32
      %373 = vector.broadcast %c16_i32_193 : i32 to vector<1x128xi32>
      %374 = arith.cmpi sge, %0, %373 : vector<1x128xi32>
      %cst_194 = arith.constant 0.000000e+00 : f32
      %375 = vector.broadcast %cst_194 : f32 to vector<1x128xf32>
      %376 = arith.select %374, %372, %375 : vector<1x128xi1>, vector<1x128xf32>
      %377 = arith.addf %371, %376 : vector<1x128xf32>
      %c32_i32_195 = arith.constant 32 : i32
      %378 = tpu.dynamic_rotate %377 by %c32_i32_195 dim 1 : vector<1x128xf32>, i32 -> vector<1x128xf32>
      %c32_i32_196 = arith.constant 32 : i32
      %379 = vector.broadcast %c32_i32_196 : i32 to vector<1x128xi32>
      %380 = arith.cmpi sge, %0, %379 : vector<1x128xi32>
      %cst_197 = arith.constant 0.000000e+00 : f32
      %381 = vector.broadcast %cst_197 : f32 to vector<1x128xf32>
      %382 = arith.select %380, %378, %381 : vector<1x128xi1>, vector<1x128xf32>
      %383 = arith.addf %377, %382 : vector<1x128xf32>
      %c64_i32_198 = arith.constant 64 : i32
      %384 = tpu.dynamic_rotate %383 by %c64_i32_198 dim 1 : vector<1x128xf32>, i32 -> vector<1x128xf32>
      %c64_i32_199 = arith.constant 64 : i32
      %385 = vector.broadcast %c64_i32_199 : i32 to vector<1x128xi32>
      %386 = arith.cmpi sge, %0, %385 : vector<1x128xi32>
      %cst_200 = arith.constant 0.000000e+00 : f32
      %387 = vector.broadcast %cst_200 : f32 to vector<1x128xf32>
      %388 = arith.select %386, %384, %387 : vector<1x128xi1>, vector<1x128xf32>
      %389 = arith.addf %383, %388 : vector<1x128xf32>
      %cst_201 = arith.constant 1.600000e+01 : f32
      %390 = vector.broadcast %cst_201 : f32 to vector<1x128xf32>
      %391 = arith.mulf %3, %390 : vector<1x128xf32>
      %392 = arith.divf %344, %391 : vector<1x128xf32>
      %393 = arith.divf %389, %391 : vector<1x128xf32>
      %394 = arith.mulf %392, %392 : vector<1x128xf32>
      %395 = arith.subf %393, %394 : vector<1x128xf32>
      %cst_202 = arith.constant 0.000000e+00 : f32
      %396 = vector.broadcast %cst_202 : f32 to vector<1x128xf32>
      %397 = arith.maximumf %395, %396 : vector<1x128xf32>
      %398 = math.sqrt %397 : vector<1x128xf32>
      %cst_203 = arith.constant 9.99999993E-9 : f32
      %399 = vector.broadcast %cst_203 : f32 to vector<1x128xf32>
      %400 = arith.addf %398, %399 : vector<1x128xf32>
      %401 = vector.broadcast %392 : vector<1x128xf32> to vector<16x128xf32>
      %402 = arith.subf %298, %401 : vector<16x128xf32>
      %403 = vector.broadcast %400 : vector<1x128xf32> to vector<16x128xf32>
      %404 = arith.divf %402, %403 : vector<16x128xf32>
      %405 = vector.broadcast %299 : vector<16x1xf32> to vector<16x128xf32>
      %406 = arith.mulf %404, %405 : vector<16x128xf32>
      %407 = vector.broadcast %300 : vector<16x1xf32> to vector<16x128xf32>
      %408 = arith.addf %406, %407 : vector<16x128xf32>
      %c0_204 = arith.constant 0 : index
      %c0_205 = arith.constant 0 : index
      %409 = vector.load %arg5[%c0_204, %c0_205] : memref<32x16xbf16, #tpu.memory_space<vmem>>, vector<32x16xbf16>
      %410 = arith.truncf %408 : vector<16x128xf32> to vector<16x128xbf16>
      %cst_206 = arith.constant dense<0.000000e+00> : vector<32x128xf32>
      %411 = tpu.matmul %409, %410, %cst_206 {dimension_numbers = #tpu.dot_dimension_numbers<[1], [0], [0], [1], [0, 0, 1, 1], [], []>} : vector<32x16xbf16>, vector<16x128xbf16>, vector<32x128xf32> -> vector<32x128xf32>
      %c0_207 = arith.constant 0 : index
      %c0_208 = arith.constant 0 : index
      %412 = vector.load %arg6[%c0_207, %c0_208] : memref<32x1xf32, #tpu.memory_space<vmem>>, vector<32x1xf32>
      %413 = vector.broadcast %412 : vector<32x1xf32> to vector<32x128xf32>
      %414 = arith.addf %411, %413 : vector<32x128xf32>
      %c0_209 = arith.constant 0 : index
      %c0_210 = arith.constant 0 : index
      %415 = vector.load %arg25[%c0_209, %c0_210] : memref<32x128xf32, #tpu.memory_space<vmem>>, vector<32x128xf32>
      tpu.vector_store %arg25[%c0_209, %c0_210], %414 {strides = array<i32>} : memref<32x128xf32, #tpu.memory_space<vmem>>, vector<32x128xf32>,
      %cst_211 = arith.constant 0.000000e+00 : f32
      %416 = vector.broadcast %cst_211 : f32 to vector<32x128xf32>
      %c0_212 = arith.constant 0 : index
      %c0_213 = arith.constant 0 : index
      %417 = vector.load %arg26[%c0_212, %c0_213] : memref<32x128xf32, #tpu.memory_space<vmem>>, vector<32x128xf32>
      tpu.vector_store %arg26[%c0_212, %c0_213], %416 {strides = array<i32>} : memref<32x128xf32, #tpu.memory_space<vmem>>, vector<32x128xf32>,
    } else {
    }
    %c0 = arith.constant 0 : index
    %c0_1 = arith.constant 0 : index
    %7 = vector.load %arg25[%c0, %c0_1] : memref<32x128xf32, #tpu.memory_space<vmem>>, vector<32x128xf32>
    %c0_2 = arith.constant 0 : index
    %c0_3 = arith.constant 0 : index
    %c0_4 = arith.constant 0 : index
    %8 = vector.load %arg7[%c0_2, %c0_3, %c0_4] : memref<1x64x32xbf16, #tpu.memory_space<vmem>>, vector<1x64x32xbf16>
    %9 = vector.shape_cast %8 : vector<1x64x32xbf16> to vector<64x32xbf16>
    %10 = arith.truncf %7 : vector<32x128xf32> to vector<32x128xbf16>
    %cst_5 = arith.constant dense<0.000000e+00> : vector<64x128xf32>
    %11 = tpu.matmul %9, %10, %cst_5 {dimension_numbers = #tpu.dot_dimension_numbers<[1], [0], [0], [1], [0, 0, 1, 1], [], []>} : vector<64x32xbf16>, vector<32x128xbf16>, vector<64x128xf32> -> vector<64x128xf32>
    %c0_6 = arith.constant 0 : index
    %c0_7 = arith.constant 0 : index
    %c0_8 = arith.constant 0 : index
    %12 = vector.load %arg8[%c0_6, %c0_7, %c0_8] : memref<1x64x1xf32, #tpu.memory_space<vmem>>, vector<1x64x1xf32>
    %13 = vector.shape_cast %12 : vector<1x64x1xf32> to vector<64x1xf32>
    %14 = vector.broadcast %13 : vector<64x1xf32> to vector<64x128xf32>
    %15 = arith.addf %11, %14 : vector<64x128xf32>
    %c0_9 = arith.constant 0 : index
    %c0_10 = arith.constant 0 : index
    %c0_11 = arith.constant 0 : index
    %16 = vector.load %arg9[%c0_9, %c0_10, %c0_11] : memref<1x1x1xf32, #tpu.memory_space<vmem>>, vector<1x1x1xf32>
    %17 = vector.shape_cast %16 : vector<1x1x1xf32> to vector<1x1xf32>
    %cst_12 = arith.constant 0.000000e+00 : f32
    %18 = vector.broadcast %cst_12 : f32 to vector<64x128xf32>
    %19 = arith.cmpf oge, %15, %18 : vector<64x128xf32>
    %20 = vector.broadcast %17 : vector<1x1xf32> to vector<64x128xf32>
    %21 = arith.mulf %20, %15 : vector<64x128xf32>
    %22 = arith.select %19, %15, %21 : vector<64x128xi1>, vector<64x128xf32>
    %c0_13 = arith.constant 0 : index
    %c0_14 = arith.constant 0 : index
    %c0_15 = arith.constant 0 : index
    %23 = vector.load %arg10[%c0_13, %c0_14, %c0_15] : memref<1x64x1xf32, #tpu.memory_space<vmem>>, vector<1x64x1xf32>
    %24 = vector.shape_cast %23 : vector<1x64x1xf32> to vector<64x1xf32>
    %c0_16 = arith.constant 0 : index
    %c0_17 = arith.constant 0 : index
    %c0_18 = arith.constant 0 : index
    %25 = vector.load %arg11[%c0_16, %c0_17, %c0_18] : memref<1x64x1xf32, #tpu.memory_space<vmem>>, vector<1x64x1xf32>
    %26 = vector.shape_cast %25 : vector<1x64x1xf32> to vector<64x1xf32>
    %cst_19 = arith.constant dense<0.000000e+00> : vector<128xf32>
    %27 = vector.multi_reduction <add>, %22, %cst_19 [0] : vector<64x128xf32> to vector<128xf32>
    %28 = vector.shape_cast %27 : vector<128xf32> to vector<1x128xf32>
    %c1_i32 = arith.constant 1 : i32
    %29 = tpu.dynamic_rotate %28 by %c1_i32 dim 1 : vector<1x128xf32>, i32 -> vector<1x128xf32>
    %c1_i32_20 = arith.constant 1 : i32
    %30 = vector.broadcast %c1_i32_20 : i32 to vector<1x128xi32>
    %31 = arith.cmpi sge, %0, %30 : vector<1x128xi32>
    %cst_21 = arith.constant 0.000000e+00 : f32
    %32 = vector.broadcast %cst_21 : f32 to vector<1x128xf32>
    %33 = arith.select %31, %29, %32 : vector<1x128xi1>, vector<1x128xf32>
    %34 = arith.addf %28, %33 : vector<1x128xf32>
    %c2_i32 = arith.constant 2 : i32
    %35 = tpu.dynamic_rotate %34 by %c2_i32 dim 1 : vector<1x128xf32>, i32 -> vector<1x128xf32>
    %c2_i32_22 = arith.constant 2 : i32
    %36 = vector.broadcast %c2_i32_22 : i32 to vector<1x128xi32>
    %37 = arith.cmpi sge, %0, %36 : vector<1x128xi32>
    %cst_23 = arith.constant 0.000000e+00 : f32
    %38 = vector.broadcast %cst_23 : f32 to vector<1x128xf32>
    %39 = arith.select %37, %35, %38 : vector<1x128xi1>, vector<1x128xf32>
    %40 = arith.addf %34, %39 : vector<1x128xf32>
    %c4_i32 = arith.constant 4 : i32
    %41 = tpu.dynamic_rotate %40 by %c4_i32 dim 1 : vector<1x128xf32>, i32 -> vector<1x128xf32>
    %c4_i32_24 = arith.constant 4 : i32
    %42 = vector.broadcast %c4_i32_24 : i32 to vector<1x128xi32>
    %43 = arith.cmpi sge, %0, %42 : vector<1x128xi32>
    %cst_25 = arith.constant 0.000000e+00 : f32
    %44 = vector.broadcast %cst_25 : f32 to vector<1x128xf32>
    %45 = arith.select %43, %41, %44 : vector<1x128xi1>, vector<1x128xf32>
    %46 = arith.addf %40, %45 : vector<1x128xf32>
    %c8_i32 = arith.constant 8 : i32
    %47 = tpu.dynamic_rotate %46 by %c8_i32 dim 1 : vector<1x128xf32>, i32 -> vector<1x128xf32>
    %c8_i32_26 = arith.constant 8 : i32
    %48 = vector.broadcast %c8_i32_26 : i32 to vector<1x128xi32>
    %49 = arith.cmpi sge, %0, %48 : vector<1x128xi32>
    %cst_27 = arith.constant 0.000000e+00 : f32
    %50 = vector.broadcast %cst_27 : f32 to vector<1x128xf32>
    %51 = arith.select %49, %47, %50 : vector<1x128xi1>, vector<1x128xf32>
    %52 = arith.addf %46, %51 : vector<1x128xf32>
    %c16_i32 = arith.constant 16 : i32
    %53 = tpu.dynamic_rotate %52 by %c16_i32 dim 1 : vector<1x128xf32>, i32 -> vector<1x128xf32>
    %c16_i32_28 = arith.constant 16 : i32
    %54 = vector.broadcast %c16_i32_28 : i32 to vector<1x128xi32>
    %55 = arith.cmpi sge, %0, %54 : vector<1x128xi32>
    %cst_29 = arith.constant 0.000000e+00 : f32
    %56 = vector.broadcast %cst_29 : f32 to vector<1x128xf32>
    %57 = arith.select %55, %53, %56 : vector<1x128xi1>, vector<1x128xf32>
    %58 = arith.addf %52, %57 : vector<1x128xf32>
    %c32_i32 = arith.constant 32 : i32
    %59 = tpu.dynamic_rotate %58 by %c32_i32 dim 1 : vector<1x128xf32>, i32 -> vector<1x128xf32>
    %c32_i32_30 = arith.constant 32 : i32
    %60 = vector.broadcast %c32_i32_30 : i32 to vector<1x128xi32>
    %61 = arith.cmpi sge, %0, %60 : vector<1x128xi32>
    %cst_31 = arith.constant 0.000000e+00 : f32
    %62 = vector.broadcast %cst_31 : f32 to vector<1x128xf32>
    %63 = arith.select %61, %59, %62 : vector<1x128xi1>, vector<1x128xf32>
    %64 = arith.addf %58, %63 : vector<1x128xf32>
    %c64_i32 = arith.constant 64 : i32
    %65 = tpu.dynamic_rotate %64 by %c64_i32 dim 1 : vector<1x128xf32>, i32 -> vector<1x128xf32>
    %c64_i32_32 = arith.constant 64 : i32
    %66 = vector.broadcast %c64_i32_32 : i32 to vector<1x128xi32>
    %67 = arith.cmpi sge, %0, %66 : vector<1x128xi32>
    %cst_33 = arith.constant 0.000000e+00 : f32
    %68 = vector.broadcast %cst_33 : f32 to vector<1x128xf32>
    %69 = arith.select %67, %65, %68 : vector<1x128xi1>, vector<1x128xf32>
    %70 = arith.addf %64, %69 : vector<1x128xf32>
    %71 = arith.mulf %22, %22 : vector<64x128xf32>
    %cst_34 = arith.constant dense<0.000000e+00> : vector<128xf32>
    %72 = vector.multi_reduction <add>, %71, %cst_34 [0] : vector<64x128xf32> to vector<128xf32>
    %73 = vector.shape_cast %72 : vector<128xf32> to vector<1x128xf32>
    %c1_i32_35 = arith.constant 1 : i32
    %74 = tpu.dynamic_rotate %73 by %c1_i32_35 dim 1 : vector<1x128xf32>, i32 -> vector<1x128xf32>
    %c1_i32_36 = arith.constant 1 : i32
    %75 = vector.broadcast %c1_i32_36 : i32 to vector<1x128xi32>
    %76 = arith.cmpi sge, %0, %75 : vector<1x128xi32>
    %cst_37 = arith.constant 0.000000e+00 : f32
    %77 = vector.broadcast %cst_37 : f32 to vector<1x128xf32>
    %78 = arith.select %76, %74, %77 : vector<1x128xi1>, vector<1x128xf32>
    %79 = arith.addf %73, %78 : vector<1x128xf32>
    %c2_i32_38 = arith.constant 2 : i32
    %80 = tpu.dynamic_rotate %79 by %c2_i32_38 dim 1 : vector<1x128xf32>, i32 -> vector<1x128xf32>
    %c2_i32_39 = arith.constant 2 : i32
    %81 = vector.broadcast %c2_i32_39 : i32 to vector<1x128xi32>
    %82 = arith.cmpi sge, %0, %81 : vector<1x128xi32>
    %cst_40 = arith.constant 0.000000e+00 : f32
    %83 = vector.broadcast %cst_40 : f32 to vector<1x128xf32>
    %84 = arith.select %82, %80, %83 : vector<1x128xi1>, vector<1x128xf32>
    %85 = arith.addf %79, %84 : vector<1x128xf32>
    %c4_i32_41 = arith.constant 4 : i32
    %86 = tpu.dynamic_rotate %85 by %c4_i32_41 dim 1 : vector<1x128xf32>, i32 -> vector<1x128xf32>
    %c4_i32_42 = arith.constant 4 : i32
    %87 = vector.broadcast %c4_i32_42 : i32 to vector<1x128xi32>
    %88 = arith.cmpi sge, %0, %87 : vector<1x128xi32>
    %cst_43 = arith.constant 0.000000e+00 : f32
    %89 = vector.broadcast %cst_43 : f32 to vector<1x128xf32>
    %90 = arith.select %88, %86, %89 : vector<1x128xi1>, vector<1x128xf32>
    %91 = arith.addf %85, %90 : vector<1x128xf32>
    %c8_i32_44 = arith.constant 8 : i32
    %92 = tpu.dynamic_rotate %91 by %c8_i32_44 dim 1 : vector<1x128xf32>, i32 -> vector<1x128xf32>
    %c8_i32_45 = arith.constant 8 : i32
    %93 = vector.broadcast %c8_i32_45 : i32 to vector<1x128xi32>
    %94 = arith.cmpi sge, %0, %93 : vector<1x128xi32>
    %cst_46 = arith.constant 0.000000e+00 : f32
    %95 = vector.broadcast %cst_46 : f32 to vector<1x128xf32>
    %96 = arith.select %94, %92, %95 : vector<1x128xi1>, vector<1x128xf32>
    %97 = arith.addf %91, %96 : vector<1x128xf32>
    %c16_i32_47 = arith.constant 16 : i32
    %98 = tpu.dynamic_rotate %97 by %c16_i32_47 dim 1 : vector<1x128xf32>, i32 -> vector<1x128xf32>
    %c16_i32_48 = arith.constant 16 : i32
    %99 = vector.broadcast %c16_i32_48 : i32 to vector<1x128xi32>
    %100 = arith.cmpi sge, %0, %99 : vector<1x128xi32>
    %cst_49 = arith.constant 0.000000e+00 : f32
    %101 = vector.broadcast %cst_49 : f32 to vector<1x128xf32>
    %102 = arith.select %100, %98, %101 : vector<1x128xi1>, vector<1x128xf32>
    %103 = arith.addf %97, %102 : vector<1x128xf32>
    %c32_i32_50 = arith.constant 32 : i32
    %104 = tpu.dynamic_rotate %103 by %c32_i32_50 dim 1 : vector<1x128xf32>, i32 -> vector<1x128xf32>
    %c32_i32_51 = arith.constant 32 : i32
    %105 = vector.broadcast %c32_i32_51 : i32 to vector<1x128xi32>
    %106 = arith.cmpi sge, %0, %105 : vector<1x128xi32>
    %cst_52 = arith.constant 0.000000e+00 : f32
    %107 = vector.broadcast %cst_52 : f32 to vector<1x128xf32>
    %108 = arith.select %106, %104, %107 : vector<1x128xi1>, vector<1x128xf32>
    %109 = arith.addf %103, %108 : vector<1x128xf32>
    %c64_i32_53 = arith.constant 64 : i32
    %110 = tpu.dynamic_rotate %109 by %c64_i32_53 dim 1 : vector<1x128xf32>, i32 -> vector<1x128xf32>
    %c64_i32_54 = arith.constant 64 : i32
    %111 = vector.broadcast %c64_i32_54 : i32 to vector<1x128xi32>
    %112 = arith.cmpi sge, %0, %111 : vector<1x128xi32>
    %cst_55 = arith.constant 0.000000e+00 : f32
    %113 = vector.broadcast %cst_55 : f32 to vector<1x128xf32>
    %114 = arith.select %112, %110, %113 : vector<1x128xi1>, vector<1x128xf32>
    %115 = arith.addf %109, %114 : vector<1x128xf32>
    %cst_56 = arith.constant 6.400000e+01 : f32
    %116 = vector.broadcast %cst_56 : f32 to vector<1x128xf32>
    %117 = arith.mulf %3, %116 : vector<1x128xf32>
    %118 = arith.divf %70, %117 : vector<1x128xf32>
    %119 = arith.divf %115, %117 : vector<1x128xf32>
    %120 = arith.mulf %118, %118 : vector<1x128xf32>
    %121 = arith.subf %119, %120 : vector<1x128xf32>
    %cst_57 = arith.constant 0.000000e+00 : f32
    %122 = vector.broadcast %cst_57 : f32 to vector<1x128xf32>
    %123 = arith.maximumf %121, %122 : vector<1x128xf32>
    %124 = math.sqrt %123 : vector<1x128xf32>
    %cst_58 = arith.constant 9.99999993E-9 : f32
    %125 = vector.broadcast %cst_58 : f32 to vector<1x128xf32>
    %126 = arith.addf %124, %125 : vector<1x128xf32>
    %127 = vector.broadcast %118 : vector<1x128xf32> to vector<64x128xf32>
    %128 = arith.subf %22, %127 : vector<64x128xf32>
    %129 = vector.broadcast %126 : vector<1x128xf32> to vector<64x128xf32>
    %130 = arith.divf %128, %129 : vector<64x128xf32>
    %131 = vector.broadcast %24 : vector<64x1xf32> to vector<64x128xf32>
    %132 = arith.mulf %130, %131 : vector<64x128xf32>
    %133 = vector.broadcast %26 : vector<64x1xf32> to vector<64x128xf32>
    %134 = arith.addf %132, %133 : vector<64x128xf32>
    %c3_i32 = arith.constant 3 : i32
    %c0_i32_59 = arith.constant 0 : i32
    %135 = arith.cmpi eq, %c3_i32, %c0_i32_59 : i32
    %c1_i32_60 = arith.constant 1 : i32
    %136 = arith.select %135, %c1_i32_60, %c3_i32 : i32
    %137 = arith.remsi %arg1, %136 : i32
    %c0_i32_61 = arith.constant 0 : i32
    %138 = arith.cmpi ne, %137, %c0_i32_61 : i32
    %c0_i32_62 = arith.constant 0 : i32
    %139 = arith.cmpi slt, %137, %c0_i32_62 : i32
    %c0_i32_63 = arith.constant 0 : i32
    %140 = arith.cmpi slt, %136, %c0_i32_63 : i32
    %141 = arith.xori %139, %140 : i1
    %142 = arith.andi %141, %138 : i1
    %143 = arith.addi %137, %136 : i32
    %144 = arith.select %142, %143, %137 : i32
    %c0_i32_64 = arith.constant 0 : i32
    %145 = arith.cmpi eq, %144, %c0_i32_64 : i32
    %146 = arith.extui %145 : i1 to i32
    %c0_i32_65 = arith.constant 0 : i32
    %147 = arith.cmpi ne, %146, %c0_i32_65 : i32
    scf.if %147 {
      %c0_150 = arith.constant 0 : index
      %c2 = arith.constant 2 : index
      %c0_151 = arith.constant 0 : index
      %c0_152 = arith.constant 0 : index
      %297 = vector.load %arg12[%c0_150, %c2, %c0_151, %c0_152] : memref<1x3x64x1xf32, #tpu.memory_space<vmem>>, vector<1x1x64x1xf32>
      %298 = vector.shape_cast %297 : vector<1x1x64x1xf32> to vector<64x1xf32>
      %299 = vector.broadcast %298 : vector<64x1xf32> to vector<64x128xf32>
      %300 = arith.mulf %299, %134 : vector<64x128xf32>
      %c0_153 = arith.constant 0 : index
      %c0_154 = arith.constant 0 : index
      %c0_155 = arith.constant 0 : index
      %c0_156 = arith.constant 0 : index
      %301 = vector.load %arg12[%c0_153, %c0_154, %c0_155, %c0_156] : memref<1x3x64x1xf32, #tpu.memory_space<vmem>>, vector<1x1x64x1xf32>
      %302 = vector.shape_cast %301 : vector<1x1x64x1xf32> to vector<64x1xf32>
      %c2_i32_157 = arith.constant 2 : i32
      %303 = tpu.dynamic_rotate %134 by %c2_i32_157 dim 1 : vector<64x128xf32>, i32 -> vector<64x128xf32>
      %c2_i32_158 = arith.constant 2 : i32
      %304 = vector.broadcast %c2_i32_158 : i32 to vector<1x128xi32>
      %305 = arith.cmpi sge, %0, %304 : vector<1x128xi32>
      %cst_159 = arith.constant 0.000000e+00 : f32
      %306 = vector.shape_cast %305 : vector<1x128xi1> to vector<1x128xi1>
      %307 = vector.broadcast %306 : vector<1x128xi1> to vector<64x128xi1>
      %308 = vector.broadcast %cst_159 : f32 to vector<64x128xf32>
      %309 = arith.select %307, %303, %308 : vector<64x128xi1>, vector<64x128xf32>
      %310 = vector.broadcast %302 : vector<64x1xf32> to vector<64x128xf32>
      %311 = arith.mulf %310, %309 : vector<64x128xf32>
      %312 = arith.addf %300, %311 : vector<64x128xf32>
      %c0_160 = arith.constant 0 : index
      %c1 = arith.constant 1 : index
      %c0_161 = arith.constant 0 : index
      %c0_162 = arith.constant 0 : index
      %313 = vector.load %arg12[%c0_160, %c1, %c0_161, %c0_162] : memref<1x3x64x1xf32, #tpu.memory_space<vmem>>, vector<1x1x64x1xf32>
      %314 = vector.shape_cast %313 : vector<1x1x64x1xf32> to vector<64x1xf32>
      %c1_i32_163 = arith.constant 1 : i32
      %315 = tpu.dynamic_rotate %134 by %c1_i32_163 dim 1 : vector<64x128xf32>, i32 -> vector<64x128xf32>
      %c1_i32_164 = arith.constant 1 : i32
      %316 = vector.broadcast %c1_i32_164 : i32 to vector<1x128xi32>
      %317 = arith.cmpi sge, %0, %316 : vector<1x128xi32>
      %cst_165 = arith.constant 0.000000e+00 : f32
      %318 = vector.shape_cast %317 : vector<1x128xi1> to vector<1x128xi1>
      %319 = vector.broadcast %318 : vector<1x128xi1> to vector<64x128xi1>
      %320 = vector.broadcast %cst_165 : f32 to vector<64x128xf32>
      %321 = arith.select %319, %315, %320 : vector<64x128xi1>, vector<64x128xf32>
      %322 = vector.broadcast %314 : vector<64x1xf32> to vector<64x128xf32>
      %323 = arith.mulf %322, %321 : vector<64x128xf32>
      %324 = arith.addf %312, %323 : vector<64x128xf32>
      %c0_166 = arith.constant 0 : index
      %c0_167 = arith.constant 0 : index
      %c0_168 = arith.constant 0 : index
      %325 = vector.load %arg13[%c0_166, %c0_167, %c0_168] : memref<1x64x1xf32, #tpu.memory_space<vmem>>, vector<1x64x1xf32>
      %326 = vector.shape_cast %325 : vector<1x64x1xf32> to vector<64x1xf32>
      %327 = vector.broadcast %326 : vector<64x1xf32> to vector<64x128xf32>
      %328 = arith.addf %324, %327 : vector<64x128xf32>
      %c0_169 = arith.constant 0 : index
      %c0_170 = arith.constant 0 : index
      %329 = vector.load %arg27[%c0_169, %c0_170] : memref<64x128xf32, #tpu.memory_space<vmem>>, vector<64x128xf32>
      tpu.vector_store %arg27[%c0_169, %c0_170], %328 {strides = array<i32>} : memref<64x128xf32, #tpu.memory_space<vmem>>, vector<64x128xf32>,
    } else {
    }
    %c1_i32_66 = arith.constant 1 : i32
    %148 = arith.cmpi eq, %144, %c1_i32_66 : i32
    %149 = arith.extui %148 : i1 to i32
    %c0_i32_67 = arith.constant 0 : i32
    %150 = arith.cmpi ne, %149, %c0_i32_67 : i32
    scf.if %150 {
      %c0_150 = arith.constant 0 : index
      %c2 = arith.constant 2 : index
      %c0_151 = arith.constant 0 : index
      %c0_152 = arith.constant 0 : index
      %297 = vector.load %arg12[%c0_150, %c2, %c0_151, %c0_152] : memref<1x3x64x1xf32, #tpu.memory_space<vmem>>, vector<1x1x64x1xf32>
      %298 = vector.shape_cast %297 : vector<1x1x64x1xf32> to vector<64x1xf32>
      %299 = vector.broadcast %298 : vector<64x1xf32> to vector<64x128xf32>
      %300 = arith.mulf %299, %134 : vector<64x128xf32>
      %c0_153 = arith.constant 0 : index
      %c0_154 = arith.constant 0 : index
      %c0_155 = arith.constant 0 : index
      %c0_156 = arith.constant 0 : index
      %301 = vector.load %arg12[%c0_153, %c0_154, %c0_155, %c0_156] : memref<1x3x64x1xf32, #tpu.memory_space<vmem>>, vector<1x1x64x1xf32>
      %302 = vector.shape_cast %301 : vector<1x1x64x1xf32> to vector<64x1xf32>
      %c4_i32_157 = arith.constant 4 : i32
      %303 = tpu.dynamic_rotate %134 by %c4_i32_157 dim 1 : vector<64x128xf32>, i32 -> vector<64x128xf32>
      %c4_i32_158 = arith.constant 4 : i32
      %304 = vector.broadcast %c4_i32_158 : i32 to vector<1x128xi32>
      %305 = arith.cmpi sge, %0, %304 : vector<1x128xi32>
      %cst_159 = arith.constant 0.000000e+00 : f32
      %306 = vector.shape_cast %305 : vector<1x128xi1> to vector<1x128xi1>
      %307 = vector.broadcast %306 : vector<1x128xi1> to vector<64x128xi1>
      %308 = vector.broadcast %cst_159 : f32 to vector<64x128xf32>
      %309 = arith.select %307, %303, %308 : vector<64x128xi1>, vector<64x128xf32>
      %310 = vector.broadcast %302 : vector<64x1xf32> to vector<64x128xf32>
      %311 = arith.mulf %310, %309 : vector<64x128xf32>
      %312 = arith.addf %300, %311 : vector<64x128xf32>
      %c0_160 = arith.constant 0 : index
      %c1 = arith.constant 1 : index
      %c0_161 = arith.constant 0 : index
      %c0_162 = arith.constant 0 : index
      %313 = vector.load %arg12[%c0_160, %c1, %c0_161, %c0_162] : memref<1x3x64x1xf32, #tpu.memory_space<vmem>>, vector<1x1x64x1xf32>
      %314 = vector.shape_cast %313 : vector<1x1x64x1xf32> to vector<64x1xf32>
      %c2_i32_163 = arith.constant 2 : i32
      %315 = tpu.dynamic_rotate %134 by %c2_i32_163 dim 1 : vector<64x128xf32>, i32 -> vector<64x128xf32>
      %c2_i32_164 = arith.constant 2 : i32
      %316 = vector.broadcast %c2_i32_164 : i32 to vector<1x128xi32>
      %317 = arith.cmpi sge, %0, %316 : vector<1x128xi32>
      %cst_165 = arith.constant 0.000000e+00 : f32
      %318 = vector.shape_cast %317 : vector<1x128xi1> to vector<1x128xi1>
      %319 = vector.broadcast %318 : vector<1x128xi1> to vector<64x128xi1>
      %320 = vector.broadcast %cst_165 : f32 to vector<64x128xf32>
      %321 = arith.select %319, %315, %320 : vector<64x128xi1>, vector<64x128xf32>
      %322 = vector.broadcast %314 : vector<64x1xf32> to vector<64x128xf32>
      %323 = arith.mulf %322, %321 : vector<64x128xf32>
      %324 = arith.addf %312, %323 : vector<64x128xf32>
      %c0_166 = arith.constant 0 : index
      %c0_167 = arith.constant 0 : index
      %c0_168 = arith.constant 0 : index
      %325 = vector.load %arg13[%c0_166, %c0_167, %c0_168] : memref<1x64x1xf32, #tpu.memory_space<vmem>>, vector<1x64x1xf32>
      %326 = vector.shape_cast %325 : vector<1x64x1xf32> to vector<64x1xf32>
      %327 = vector.broadcast %326 : vector<64x1xf32> to vector<64x128xf32>
      %328 = arith.addf %324, %327 : vector<64x128xf32>
      %c0_169 = arith.constant 0 : index
      %c0_170 = arith.constant 0 : index
      %329 = vector.load %arg27[%c0_169, %c0_170] : memref<64x128xf32, #tpu.memory_space<vmem>>, vector<64x128xf32>
      tpu.vector_store %arg27[%c0_169, %c0_170], %328 {strides = array<i32>} : memref<64x128xf32, #tpu.memory_space<vmem>>, vector<64x128xf32>,
    } else {
    }
    %c2_i32_68 = arith.constant 2 : i32
    %151 = arith.cmpi eq, %144, %c2_i32_68 : i32
    %152 = arith.extui %151 : i1 to i32
    %c0_i32_69 = arith.constant 0 : i32
    %153 = arith.cmpi ne, %152, %c0_i32_69 : i32
    scf.if %153 {
      %c0_150 = arith.constant 0 : index
      %c2 = arith.constant 2 : index
      %c0_151 = arith.constant 0 : index
      %c0_152 = arith.constant 0 : index
      %297 = vector.load %arg12[%c0_150, %c2, %c0_151, %c0_152] : memref<1x3x64x1xf32, #tpu.memory_space<vmem>>, vector<1x1x64x1xf32>
      %298 = vector.shape_cast %297 : vector<1x1x64x1xf32> to vector<64x1xf32>
      %299 = vector.broadcast %298 : vector<64x1xf32> to vector<64x128xf32>
      %300 = arith.mulf %299, %134 : vector<64x128xf32>
      %c0_153 = arith.constant 0 : index
      %c0_154 = arith.constant 0 : index
      %c0_155 = arith.constant 0 : index
      %c0_156 = arith.constant 0 : index
      %301 = vector.load %arg12[%c0_153, %c0_154, %c0_155, %c0_156] : memref<1x3x64x1xf32, #tpu.memory_space<vmem>>, vector<1x1x64x1xf32>
      %302 = vector.shape_cast %301 : vector<1x1x64x1xf32> to vector<64x1xf32>
      %c8_i32_157 = arith.constant 8 : i32
      %303 = tpu.dynamic_rotate %134 by %c8_i32_157 dim 1 : vector<64x128xf32>, i32 -> vector<64x128xf32>
      %c8_i32_158 = arith.constant 8 : i32
      %304 = vector.broadcast %c8_i32_158 : i32 to vector<1x128xi32>
      %305 = arith.cmpi sge, %0, %304 : vector<1x128xi32>
      %cst_159 = arith.constant 0.000000e+00 : f32
      %306 = vector.shape_cast %305 : vector<1x128xi1> to vector<1x128xi1>
      %307 = vector.broadcast %306 : vector<1x128xi1> to vector<64x128xi1>
      %308 = vector.broadcast %cst_159 : f32 to vector<64x128xf32>
      %309 = arith.select %307, %303, %308 : vector<64x128xi1>, vector<64x128xf32>
      %310 = vector.broadcast %302 : vector<64x1xf32> to vector<64x128xf32>
      %311 = arith.mulf %310, %309 : vector<64x128xf32>
      %312 = arith.addf %300, %311 : vector<64x128xf32>
      %c0_160 = arith.constant 0 : index
      %c1 = arith.constant 1 : index
      %c0_161 = arith.constant 0 : index
      %c0_162 = arith.constant 0 : index
      %313 = vector.load %arg12[%c0_160, %c1, %c0_161, %c0_162] : memref<1x3x64x1xf32, #tpu.memory_space<vmem>>, vector<1x1x64x1xf32>
      %314 = vector.shape_cast %313 : vector<1x1x64x1xf32> to vector<64x1xf32>
      %c4_i32_163 = arith.constant 4 : i32
      %315 = tpu.dynamic_rotate %134 by %c4_i32_163 dim 1 : vector<64x128xf32>, i32 -> vector<64x128xf32>
      %c4_i32_164 = arith.constant 4 : i32
      %316 = vector.broadcast %c4_i32_164 : i32 to vector<1x128xi32>
      %317 = arith.cmpi sge, %0, %316 : vector<1x128xi32>
      %cst_165 = arith.constant 0.000000e+00 : f32
      %318 = vector.shape_cast %317 : vector<1x128xi1> to vector<1x128xi1>
      %319 = vector.broadcast %318 : vector<1x128xi1> to vector<64x128xi1>
      %320 = vector.broadcast %cst_165 : f32 to vector<64x128xf32>
      %321 = arith.select %319, %315, %320 : vector<64x128xi1>, vector<64x128xf32>
      %322 = vector.broadcast %314 : vector<64x1xf32> to vector<64x128xf32>
      %323 = arith.mulf %322, %321 : vector<64x128xf32>
      %324 = arith.addf %312, %323 : vector<64x128xf32>
      %c0_166 = arith.constant 0 : index
      %c0_167 = arith.constant 0 : index
      %c0_168 = arith.constant 0 : index
      %325 = vector.load %arg13[%c0_166, %c0_167, %c0_168] : memref<1x64x1xf32, #tpu.memory_space<vmem>>, vector<1x64x1xf32>
      %326 = vector.shape_cast %325 : vector<1x64x1xf32> to vector<64x1xf32>
      %327 = vector.broadcast %326 : vector<64x1xf32> to vector<64x128xf32>
      %328 = arith.addf %324, %327 : vector<64x128xf32>
      %c0_169 = arith.constant 0 : index
      %c0_170 = arith.constant 0 : index
      %329 = vector.load %arg27[%c0_169, %c0_170] : memref<64x128xf32, #tpu.memory_space<vmem>>, vector<64x128xf32>
      tpu.vector_store %arg27[%c0_169, %c0_170], %328 {strides = array<i32>} : memref<64x128xf32, #tpu.memory_space<vmem>>, vector<64x128xf32>,
    } else {
    }
    %c0_70 = arith.constant 0 : index
    %c0_71 = arith.constant 0 : index
    %154 = vector.load %arg27[%c0_70, %c0_71] : memref<64x128xf32, #tpu.memory_space<vmem>>, vector<64x128xf32>
    %c0_72 = arith.constant 0 : index
    %c0_73 = arith.constant 0 : index
    %c0_74 = arith.constant 0 : index
    %155 = vector.load %arg14[%c0_72, %c0_73, %c0_74] : memref<1x1x1xf32, #tpu.memory_space<vmem>>, vector<1x1x1xf32>
    %156 = vector.shape_cast %155 : vector<1x1x1xf32> to vector<1x1xf32>
    %cst_75 = arith.constant 0.000000e+00 : f32
    %157 = vector.broadcast %cst_75 : f32 to vector<64x128xf32>
    %158 = arith.cmpf oge, %154, %157 : vector<64x128xf32>
    %159 = vector.broadcast %156 : vector<1x1xf32> to vector<64x128xf32>
    %160 = arith.mulf %159, %154 : vector<64x128xf32>
    %161 = arith.select %158, %154, %160 : vector<64x128xi1>, vector<64x128xf32>
    %c0_76 = arith.constant 0 : index
    %c0_77 = arith.constant 0 : index
    %c0_78 = arith.constant 0 : index
    %162 = vector.load %arg15[%c0_76, %c0_77, %c0_78] : memref<1x64x1xf32, #tpu.memory_space<vmem>>, vector<1x64x1xf32>
    %163 = vector.shape_cast %162 : vector<1x64x1xf32> to vector<64x1xf32>
    %c0_79 = arith.constant 0 : index
    %c0_80 = arith.constant 0 : index
    %c0_81 = arith.constant 0 : index
    %164 = vector.load %arg16[%c0_79, %c0_80, %c0_81] : memref<1x64x1xf32, #tpu.memory_space<vmem>>, vector<1x64x1xf32>
    %165 = vector.shape_cast %164 : vector<1x64x1xf32> to vector<64x1xf32>
    %cst_82 = arith.constant dense<0.000000e+00> : vector<128xf32>
    %166 = vector.multi_reduction <add>, %161, %cst_82 [0] : vector<64x128xf32> to vector<128xf32>
    %167 = vector.shape_cast %166 : vector<128xf32> to vector<1x128xf32>
    %c1_i32_83 = arith.constant 1 : i32
    %168 = tpu.dynamic_rotate %167 by %c1_i32_83 dim 1 : vector<1x128xf32>, i32 -> vector<1x128xf32>
    %c1_i32_84 = arith.constant 1 : i32
    %169 = vector.broadcast %c1_i32_84 : i32 to vector<1x128xi32>
    %170 = arith.cmpi sge, %0, %169 : vector<1x128xi32>
    %cst_85 = arith.constant 0.000000e+00 : f32
    %171 = vector.broadcast %cst_85 : f32 to vector<1x128xf32>
    %172 = arith.select %170, %168, %171 : vector<1x128xi1>, vector<1x128xf32>
    %173 = arith.addf %167, %172 : vector<1x128xf32>
    %c2_i32_86 = arith.constant 2 : i32
    %174 = tpu.dynamic_rotate %173 by %c2_i32_86 dim 1 : vector<1x128xf32>, i32 -> vector<1x128xf32>
    %c2_i32_87 = arith.constant 2 : i32
    %175 = vector.broadcast %c2_i32_87 : i32 to vector<1x128xi32>
    %176 = arith.cmpi sge, %0, %175 : vector<1x128xi32>
    %cst_88 = arith.constant 0.000000e+00 : f32
    %177 = vector.broadcast %cst_88 : f32 to vector<1x128xf32>
    %178 = arith.select %176, %174, %177 : vector<1x128xi1>, vector<1x128xf32>
    %179 = arith.addf %173, %178 : vector<1x128xf32>
    %c4_i32_89 = arith.constant 4 : i32
    %180 = tpu.dynamic_rotate %179 by %c4_i32_89 dim 1 : vector<1x128xf32>, i32 -> vector<1x128xf32>
    %c4_i32_90 = arith.constant 4 : i32
    %181 = vector.broadcast %c4_i32_90 : i32 to vector<1x128xi32>
    %182 = arith.cmpi sge, %0, %181 : vector<1x128xi32>
    %cst_91 = arith.constant 0.000000e+00 : f32
    %183 = vector.broadcast %cst_91 : f32 to vector<1x128xf32>
    %184 = arith.select %182, %180, %183 : vector<1x128xi1>, vector<1x128xf32>
    %185 = arith.addf %179, %184 : vector<1x128xf32>
    %c8_i32_92 = arith.constant 8 : i32
    %186 = tpu.dynamic_rotate %185 by %c8_i32_92 dim 1 : vector<1x128xf32>, i32 -> vector<1x128xf32>
    %c8_i32_93 = arith.constant 8 : i32
    %187 = vector.broadcast %c8_i32_93 : i32 to vector<1x128xi32>
    %188 = arith.cmpi sge, %0, %187 : vector<1x128xi32>
    %cst_94 = arith.constant 0.000000e+00 : f32
    %189 = vector.broadcast %cst_94 : f32 to vector<1x128xf32>
    %190 = arith.select %188, %186, %189 : vector<1x128xi1>, vector<1x128xf32>
    %191 = arith.addf %185, %190 : vector<1x128xf32>
    %c16_i32_95 = arith.constant 16 : i32
    %192 = tpu.dynamic_rotate %191 by %c16_i32_95 dim 1 : vector<1x128xf32>, i32 -> vector<1x128xf32>
    %c16_i32_96 = arith.constant 16 : i32
    %193 = vector.broadcast %c16_i32_96 : i32 to vector<1x128xi32>
    %194 = arith.cmpi sge, %0, %193 : vector<1x128xi32>
    %cst_97 = arith.constant 0.000000e+00 : f32
    %195 = vector.broadcast %cst_97 : f32 to vector<1x128xf32>
    %196 = arith.select %194, %192, %195 : vector<1x128xi1>, vector<1x128xf32>
    %197 = arith.addf %191, %196 : vector<1x128xf32>
    %c32_i32_98 = arith.constant 32 : i32
    %198 = tpu.dynamic_rotate %197 by %c32_i32_98 dim 1 : vector<1x128xf32>, i32 -> vector<1x128xf32>
    %c32_i32_99 = arith.constant 32 : i32
    %199 = vector.broadcast %c32_i32_99 : i32 to vector<1x128xi32>
    %200 = arith.cmpi sge, %0, %199 : vector<1x128xi32>
    %cst_100 = arith.constant 0.000000e+00 : f32
    %201 = vector.broadcast %cst_100 : f32 to vector<1x128xf32>
    %202 = arith.select %200, %198, %201 : vector<1x128xi1>, vector<1x128xf32>
    %203 = arith.addf %197, %202 : vector<1x128xf32>
    %c64_i32_101 = arith.constant 64 : i32
    %204 = tpu.dynamic_rotate %203 by %c64_i32_101 dim 1 : vector<1x128xf32>, i32 -> vector<1x128xf32>
    %c64_i32_102 = arith.constant 64 : i32
    %205 = vector.broadcast %c64_i32_102 : i32 to vector<1x128xi32>
    %206 = arith.cmpi sge, %0, %205 : vector<1x128xi32>
    %cst_103 = arith.constant 0.000000e+00 : f32
    %207 = vector.broadcast %cst_103 : f32 to vector<1x128xf32>
    %208 = arith.select %206, %204, %207 : vector<1x128xi1>, vector<1x128xf32>
    %209 = arith.addf %203, %208 : vector<1x128xf32>
    %210 = arith.mulf %161, %161 : vector<64x128xf32>
    %cst_104 = arith.constant dense<0.000000e+00> : vector<128xf32>
    %211 = vector.multi_reduction <add>, %210, %cst_104 [0] : vector<64x128xf32> to vector<128xf32>
    %212 = vector.shape_cast %211 : vector<128xf32> to vector<1x128xf32>
    %c1_i32_105 = arith.constant 1 : i32
    %213 = tpu.dynamic_rotate %212 by %c1_i32_105 dim 1 : vector<1x128xf32>, i32 -> vector<1x128xf32>
    %c1_i32_106 = arith.constant 1 : i32
    %214 = vector.broadcast %c1_i32_106 : i32 to vector<1x128xi32>
    %215 = arith.cmpi sge, %0, %214 : vector<1x128xi32>
    %cst_107 = arith.constant 0.000000e+00 : f32
    %216 = vector.broadcast %cst_107 : f32 to vector<1x128xf32>
    %217 = arith.select %215, %213, %216 : vector<1x128xi1>, vector<1x128xf32>
    %218 = arith.addf %212, %217 : vector<1x128xf32>
    %c2_i32_108 = arith.constant 2 : i32
    %219 = tpu.dynamic_rotate %218 by %c2_i32_108 dim 1 : vector<1x128xf32>, i32 -> vector<1x128xf32>
    %c2_i32_109 = arith.constant 2 : i32
    %220 = vector.broadcast %c2_i32_109 : i32 to vector<1x128xi32>
    %221 = arith.cmpi sge, %0, %220 : vector<1x128xi32>
    %cst_110 = arith.constant 0.000000e+00 : f32
    %222 = vector.broadcast %cst_110 : f32 to vector<1x128xf32>
    %223 = arith.select %221, %219, %222 : vector<1x128xi1>, vector<1x128xf32>
    %224 = arith.addf %218, %223 : vector<1x128xf32>
    %c4_i32_111 = arith.constant 4 : i32
    %225 = tpu.dynamic_rotate %224 by %c4_i32_111 dim 1 : vector<1x128xf32>, i32 -> vector<1x128xf32>
    %c4_i32_112 = arith.constant 4 : i32
    %226 = vector.broadcast %c4_i32_112 : i32 to vector<1x128xi32>
    %227 = arith.cmpi sge, %0, %226 : vector<1x128xi32>
    %cst_113 = arith.constant 0.000000e+00 : f32
    %228 = vector.broadcast %cst_113 : f32 to vector<1x128xf32>
    %229 = arith.select %227, %225, %228 : vector<1x128xi1>, vector<1x128xf32>
    %230 = arith.addf %224, %229 : vector<1x128xf32>
    %c8_i32_114 = arith.constant 8 : i32
    %231 = tpu.dynamic_rotate %230 by %c8_i32_114 dim 1 : vector<1x128xf32>, i32 -> vector<1x128xf32>
    %c8_i32_115 = arith.constant 8 : i32
    %232 = vector.broadcast %c8_i32_115 : i32 to vector<1x128xi32>
    %233 = arith.cmpi sge, %0, %232 : vector<1x128xi32>
    %cst_116 = arith.constant 0.000000e+00 : f32
    %234 = vector.broadcast %cst_116 : f32 to vector<1x128xf32>
    %235 = arith.select %233, %231, %234 : vector<1x128xi1>, vector<1x128xf32>
    %236 = arith.addf %230, %235 : vector<1x128xf32>
    %c16_i32_117 = arith.constant 16 : i32
    %237 = tpu.dynamic_rotate %236 by %c16_i32_117 dim 1 : vector<1x128xf32>, i32 -> vector<1x128xf32>
    %c16_i32_118 = arith.constant 16 : i32
    %238 = vector.broadcast %c16_i32_118 : i32 to vector<1x128xi32>
    %239 = arith.cmpi sge, %0, %238 : vector<1x128xi32>
    %cst_119 = arith.constant 0.000000e+00 : f32
    %240 = vector.broadcast %cst_119 : f32 to vector<1x128xf32>
    %241 = arith.select %239, %237, %240 : vector<1x128xi1>, vector<1x128xf32>
    %242 = arith.addf %236, %241 : vector<1x128xf32>
    %c32_i32_120 = arith.constant 32 : i32
    %243 = tpu.dynamic_rotate %242 by %c32_i32_120 dim 1 : vector<1x128xf32>, i32 -> vector<1x128xf32>
    %c32_i32_121 = arith.constant 32 : i32
    %244 = vector.broadcast %c32_i32_121 : i32 to vector<1x128xi32>
    %245 = arith.cmpi sge, %0, %244 : vector<1x128xi32>
    %cst_122 = arith.constant 0.000000e+00 : f32
    %246 = vector.broadcast %cst_122 : f32 to vector<1x128xf32>
    %247 = arith.select %245, %243, %246 : vector<1x128xi1>, vector<1x128xf32>
    %248 = arith.addf %242, %247 : vector<1x128xf32>
    %c64_i32_123 = arith.constant 64 : i32
    %249 = tpu.dynamic_rotate %248 by %c64_i32_123 dim 1 : vector<1x128xf32>, i32 -> vector<1x128xf32>
    %c64_i32_124 = arith.constant 64 : i32
    %250 = vector.broadcast %c64_i32_124 : i32 to vector<1x128xi32>
    %251 = arith.cmpi sge, %0, %250 : vector<1x128xi32>
    %cst_125 = arith.constant 0.000000e+00 : f32
    %252 = vector.broadcast %cst_125 : f32 to vector<1x128xf32>
    %253 = arith.select %251, %249, %252 : vector<1x128xi1>, vector<1x128xf32>
    %254 = arith.addf %248, %253 : vector<1x128xf32>
    %cst_126 = arith.constant 6.400000e+01 : f32
    %255 = vector.broadcast %cst_126 : f32 to vector<1x128xf32>
    %256 = arith.mulf %3, %255 : vector<1x128xf32>
    %257 = arith.divf %209, %256 : vector<1x128xf32>
    %258 = arith.divf %254, %256 : vector<1x128xf32>
    %259 = arith.mulf %257, %257 : vector<1x128xf32>
    %260 = arith.subf %258, %259 : vector<1x128xf32>
    %cst_127 = arith.constant 0.000000e+00 : f32
    %261 = vector.broadcast %cst_127 : f32 to vector<1x128xf32>
    %262 = arith.maximumf %260, %261 : vector<1x128xf32>
    %263 = math.sqrt %262 : vector<1x128xf32>
    %cst_128 = arith.constant 9.99999993E-9 : f32
    %264 = vector.broadcast %cst_128 : f32 to vector<1x128xf32>
    %265 = arith.addf %263, %264 : vector<1x128xf32>
    %266 = vector.broadcast %257 : vector<1x128xf32> to vector<64x128xf32>
    %267 = arith.subf %161, %266 : vector<64x128xf32>
    %268 = vector.broadcast %265 : vector<1x128xf32> to vector<64x128xf32>
    %269 = arith.divf %267, %268 : vector<64x128xf32>
    %270 = vector.broadcast %163 : vector<64x1xf32> to vector<64x128xf32>
    %271 = arith.mulf %269, %270 : vector<64x128xf32>
    %272 = vector.broadcast %165 : vector<64x1xf32> to vector<64x128xf32>
    %273 = arith.addf %271, %272 : vector<64x128xf32>
    %274 = arith.truncf %273 : vector<64x128xf32> to vector<64x128xbf16>
    %c0_129 = arith.constant 0 : index
    %c0_130 = arith.constant 0 : index
    %275 = vector.load %arg26[%c0_129, %c0_130] : memref<32x128xf32, #tpu.memory_space<vmem>>, vector<32x128xf32>
    %c0_131 = arith.constant 0 : index
    %c0_132 = arith.constant 0 : index
    %c0_133 = arith.constant 0 : index
    %276 = vector.load %arg17[%c0_131, %c0_132, %c0_133] : memref<1x32x64xbf16, #tpu.memory_space<vmem>>, vector<1x32x64xbf16>
    %277 = vector.shape_cast %276 : vector<1x32x64xbf16> to vector<32x64xbf16>
    %cst_134 = arith.constant dense<0.000000e+00> : vector<32x128xf32>
    %278 = tpu.matmul %277, %274, %cst_134 {dimension_numbers = #tpu.dot_dimension_numbers<[1], [0], [0], [1], [0, 0, 1, 1], [], []>} : vector<32x64xbf16>, vector<64x128xbf16>, vector<32x128xf32> -> vector<32x128xf32>
    %279 = arith.addf %275, %278 : vector<32x128xf32>
    %c0_135 = arith.constant 0 : index
    %c0_136 = arith.constant 0 : index
    %c0_137 = arith.constant 0 : index
    %280 = vector.load %arg18[%c0_135, %c0_136, %c0_137] : memref<1x32x1xf32, #tpu.memory_space<vmem>>, vector<1x32x1xf32>
    %281 = vector.shape_cast %280 : vector<1x32x1xf32> to vector<32x1xf32>
    %282 = vector.broadcast %281 : vector<32x1xf32> to vector<32x128xf32>
    %283 = arith.addf %279, %282 : vector<32x128xf32>
    %c0_138 = arith.constant 0 : index
    %c0_139 = arith.constant 0 : index
    %284 = vector.load %arg26[%c0_138, %c0_139] : memref<32x128xf32, #tpu.memory_space<vmem>>, vector<32x128xf32>
    tpu.vector_store %arg26[%c0_138, %c0_139], %283 {strides = array<i32>} : memref<32x128xf32, #tpu.memory_space<vmem>>, vector<32x128xf32>,
    %c0_140 = arith.constant 0 : index
    %c0_141 = arith.constant 0 : index
    %c0_142 = arith.constant 0 : index
    %285 = vector.load %arg19[%c0_140, %c0_141, %c0_142] : memref<1x32x64xbf16, #tpu.memory_space<vmem>>, vector<1x32x64xbf16>
    %286 = vector.shape_cast %285 : vector<1x32x64xbf16> to vector<32x64xbf16>
    %cst_143 = arith.constant dense<0.000000e+00> : vector<32x128xf32>
    %287 = tpu.matmul %286, %274, %cst_143 {dimension_numbers = #tpu.dot_dimension_numbers<[1], [0], [0], [1], [0, 0, 1, 1], [], []>} : vector<32x64xbf16>, vector<64x128xbf16>, vector<32x128xf32> -> vector<32x128xf32>
    %288 = arith.addf %7, %287 : vector<32x128xf32>
    %c0_144 = arith.constant 0 : index
    %c0_145 = arith.constant 0 : index
    %c0_146 = arith.constant 0 : index
    %289 = vector.load %arg20[%c0_144, %c0_145, %c0_146] : memref<1x32x1xf32, #tpu.memory_space<vmem>>, vector<1x32x1xf32>
    %290 = vector.shape_cast %289 : vector<1x32x1xf32> to vector<32x1xf32>
    %291 = vector.broadcast %290 : vector<32x1xf32> to vector<32x128xf32>
    %292 = arith.addf %288, %291 : vector<32x128xf32>
    %c0_147 = arith.constant 0 : index
    %c0_148 = arith.constant 0 : index
    %293 = vector.load %arg25[%c0_147, %c0_148] : memref<32x128xf32, #tpu.memory_space<vmem>>, vector<32x128xf32>
    tpu.vector_store %arg25[%c0_147, %c0_148], %292 {strides = array<i32>} : memref<32x128xf32, #tpu.memory_space<vmem>>, vector<32x128xf32>,
    %c5_i32 = arith.constant 5 : i32
    %294 = arith.cmpi eq, %arg1, %c5_i32 : i32
    %295 = arith.extui %294 : i1 to i32
    %c0_i32_149 = arith.constant 0 : i32
    %296 = arith.cmpi ne, %295, %c0_i32_149 : i32
    scf.if %296 {
      %c0_150 = arith.constant 0 : index
      %c0_151 = arith.constant 0 : index
      %297 = vector.load %arg26[%c0_150, %c0_151] : memref<32x128xf32, #tpu.memory_space<vmem>>, vector<32x128xf32>
      %c0_152 = arith.constant 0 : index
      %c0_153 = arith.constant 0 : index
      %298 = vector.load %arg21[%c0_152, %c0_153] : memref<1x1xf32, #tpu.memory_space<vmem>>, vector<1x1xf32>
      %cst_154 = arith.constant 0.000000e+00 : f32
      %299 = vector.broadcast %cst_154 : f32 to vector<32x128xf32>
      %300 = arith.cmpf oge, %297, %299 : vector<32x128xf32>
      %301 = vector.broadcast %298 : vector<1x1xf32> to vector<32x128xf32>
      %302 = arith.mulf %301, %297 : vector<32x128xf32>
      %303 = arith.select %300, %297, %302 : vector<32x128xi1>, vector<32x128xf32>
      %c0_155 = arith.constant 0 : index
      %c0_156 = arith.constant 0 : index
      %304 = vector.load %arg22[%c0_155, %c0_156] : memref<32x32xbf16, #tpu.memory_space<vmem>>, vector<32x32xbf16>
      %305 = arith.truncf %303 : vector<32x128xf32> to vector<32x128xbf16>
      %cst_157 = arith.constant dense<0.000000e+00> : vector<32x128xf32>
      %306 = tpu.matmul %304, %305, %cst_157 {dimension_numbers = #tpu.dot_dimension_numbers<[1], [0], [0], [1], [0, 0, 1, 1], [], []>} : vector<32x32xbf16>, vector<32x128xbf16>, vector<32x128xf32> -> vector<32x128xf32>
      %c0_158 = arith.constant 0 : index
      %c0_159 = arith.constant 0 : index
      %307 = vector.load %arg23[%c0_158, %c0_159] : memref<32x1xf32, #tpu.memory_space<vmem>>, vector<32x1xf32>
      %308 = vector.broadcast %307 : vector<32x1xf32> to vector<32x128xf32>
      %309 = arith.addf %306, %308 : vector<32x128xf32>
      %310 = arith.negf %309 : vector<32x128xf32>
      %311 = math.exp %310 : vector<32x128xf32>
      %cst_160 = arith.constant 1.000000e+00 : f32
      %312 = vector.broadcast %cst_160 : f32 to vector<32x128xf32>
      %313 = arith.addf %312, %311 : vector<32x128xf32>
      %314 = arith.divf %312, %313 : vector<32x128xf32>
      %c0_161 = arith.constant 0 : index
      %c0_162 = arith.constant 0 : index
      %c0_163 = arith.constant 0 : index
      %315 = vector.load %arg24[%c0_161, %c0_162, %c0_163] : memref<1x32x128xf32, #tpu.memory_space<vmem>>, vector<1x32x128xf32>
      %316 = vector.shape_cast %315 : vector<1x32x128xf32> to vector<32x128xf32>
      %317 = vector.shape_cast %314 : vector<32x128xf32> to vector<1x32x128xf32>
      tpu.vector_store %arg24[%c0_161, %c0_162, %c0_163], %317 {strides = array<i32>} : memref<1x32x128xf32, #tpu.memory_space<vmem>>, vector<1x32x128xf32>,
    } else {
    }
    return
  }
  func.func @transform_0(%arg0: i32, %arg1: i32) -> (i32, i32, i32) {
    %c0_i32 = arith.constant 0 : i32
    %c0_i32_0 = arith.constant 0 : i32
    %c0_i32_1 = arith.constant 0 : i32
    return %arg0, %c0_i32, %c0_i32_0 : i32, i32, i32
  }
  func.func @transform_1(%arg0: i32, %arg1: i32) -> (i32, i32) {
    %c0_i32 = arith.constant 0 : i32
    %c0_i32_0 = arith.constant 0 : i32
    %c0_i32_1 = arith.constant 0 : i32
    return %c0_i32, %c0_i32_0 : i32, i32
  }
  func.func @transform_2(%arg0: i32, %arg1: i32) -> (i32, i32) {
    %c0_i32 = arith.constant 0 : i32
    %c0_i32_0 = arith.constant 0 : i32
    %c0_i32_1 = arith.constant 0 : i32
    return %c0_i32, %c0_i32_0 : i32, i32
  }
  func.func @transform_3(%arg0: i32, %arg1: i32) -> (i32, i32) {
    %c0_i32 = arith.constant 0 : i32
    %c0_i32_0 = arith.constant 0 : i32
    %c0_i32_1 = arith.constant 0 : i32
    return %c0_i32, %c0_i32_0 : i32, i32
  }
  func.func @transform_4(%arg0: i32, %arg1: i32) -> (i32, i32) {
    %c0_i32 = arith.constant 0 : i32
    %c0_i32_0 = arith.constant 0 : i32
    %c0_i32_1 = arith.constant 0 : i32
    return %c0_i32, %c0_i32_0 : i32, i32
  }
  func.func @transform_5(%arg0: i32, %arg1: i32) -> (i32, i32, i32) {
    %c0_i32 = arith.constant 0 : i32
    %c0_i32_0 = arith.constant 0 : i32
    %c0_i32_1 = arith.constant 0 : i32
    return %arg1, %c0_i32, %c0_i32_0 : i32, i32, i32
  }
  func.func @transform_6(%arg0: i32, %arg1: i32) -> (i32, i32, i32) {
    %c0_i32 = arith.constant 0 : i32
    %c0_i32_0 = arith.constant 0 : i32
    %c0_i32_1 = arith.constant 0 : i32
    return %arg1, %c0_i32, %c0_i32_0 : i32, i32, i32
  }
  func.func @transform_7(%arg0: i32, %arg1: i32) -> (i32, i32, i32) {
    %c0_i32 = arith.constant 0 : i32
    %c0_i32_0 = arith.constant 0 : i32
    %c0_i32_1 = arith.constant 0 : i32
    return %arg1, %c0_i32, %c0_i32_0 : i32, i32, i32
  }
  func.func @transform_8(%arg0: i32, %arg1: i32) -> (i32, i32, i32) {
    %c0_i32 = arith.constant 0 : i32
    %c0_i32_0 = arith.constant 0 : i32
    %c0_i32_1 = arith.constant 0 : i32
    return %arg1, %c0_i32, %c0_i32_0 : i32, i32, i32
  }
  func.func @transform_9(%arg0: i32, %arg1: i32) -> (i32, i32, i32) {
    %c0_i32 = arith.constant 0 : i32
    %c0_i32_0 = arith.constant 0 : i32
    %c0_i32_1 = arith.constant 0 : i32
    return %arg1, %c0_i32, %c0_i32_0 : i32, i32, i32
  }
  func.func @transform_10(%arg0: i32, %arg1: i32) -> (i32, i32, i32, i32) {
    %c0_i32 = arith.constant 0 : i32
    %c0_i32_0 = arith.constant 0 : i32
    %c0_i32_1 = arith.constant 0 : i32
    %c0_i32_2 = arith.constant 0 : i32
    return %arg1, %c0_i32, %c0_i32_0, %c0_i32_1 : i32, i32, i32, i32
  }
  func.func @transform_11(%arg0: i32, %arg1: i32) -> (i32, i32, i32) {
    %c0_i32 = arith.constant 0 : i32
    %c0_i32_0 = arith.constant 0 : i32
    %c0_i32_1 = arith.constant 0 : i32
    return %arg1, %c0_i32, %c0_i32_0 : i32, i32, i32
  }
  func.func @transform_12(%arg0: i32, %arg1: i32) -> (i32, i32, i32) {
    %c0_i32 = arith.constant 0 : i32
    %c0_i32_0 = arith.constant 0 : i32
    %c0_i32_1 = arith.constant 0 : i32
    return %arg1, %c0_i32, %c0_i32_0 : i32, i32, i32
  }
  func.func @transform_13(%arg0: i32, %arg1: i32) -> (i32, i32, i32) {
    %c0_i32 = arith.constant 0 : i32
    %c0_i32_0 = arith.constant 0 : i32
    %c0_i32_1 = arith.constant 0 : i32
    return %arg1, %c0_i32, %c0_i32_0 : i32, i32, i32
  }
  func.func @transform_14(%arg0: i32, %arg1: i32) -> (i32, i32, i32) {
    %c0_i32 = arith.constant 0 : i32
    %c0_i32_0 = arith.constant 0 : i32
    %c0_i32_1 = arith.constant 0 : i32
    return %arg1, %c0_i32, %c0_i32_0 : i32, i32, i32
  }
  func.func @transform_15(%arg0: i32, %arg1: i32) -> (i32, i32, i32) {
    %c0_i32 = arith.constant 0 : i32
    %c0_i32_0 = arith.constant 0 : i32
    %c0_i32_1 = arith.constant 0 : i32
    return %arg1, %c0_i32, %c0_i32_0 : i32, i32, i32
  }
  func.func @transform_16(%arg0: i32, %arg1: i32) -> (i32, i32, i32) {
    %c0_i32 = arith.constant 0 : i32
    %c0_i32_0 = arith.constant 0 : i32
    %c0_i32_1 = arith.constant 0 : i32
    return %arg1, %c0_i32, %c0_i32_0 : i32, i32, i32
  }
  func.func @transform_17(%arg0: i32, %arg1: i32) -> (i32, i32, i32) {
    %c0_i32 = arith.constant 0 : i32
    %c0_i32_0 = arith.constant 0 : i32
    %c0_i32_1 = arith.constant 0 : i32
    return %arg1, %c0_i32, %c0_i32_0 : i32, i32, i32
  }
  func.func @transform_18(%arg0: i32, %arg1: i32) -> (i32, i32, i32) {
    %c0_i32 = arith.constant 0 : i32
    %c0_i32_0 = arith.constant 0 : i32
    %c0_i32_1 = arith.constant 0 : i32
    return %arg1, %c0_i32, %c0_i32_0 : i32, i32, i32
  }
  func.func @transform_19(%arg0: i32, %arg1: i32) -> (i32, i32) {
    %c0_i32 = arith.constant 0 : i32
    %c0_i32_0 = arith.constant 0 : i32
    %c0_i32_1 = arith.constant 0 : i32
    return %c0_i32, %c0_i32_0 : i32, i32
  }
  func.func @transform_20(%arg0: i32, %arg1: i32) -> (i32, i32) {
    %c0_i32 = arith.constant 0 : i32
    %c0_i32_0 = arith.constant 0 : i32
    %c0_i32_1 = arith.constant 0 : i32
    return %c0_i32, %c0_i32_0 : i32, i32
  }
  func.func @transform_21(%arg0: i32, %arg1: i32) -> (i32, i32) {
    %c0_i32 = arith.constant 0 : i32
    %c0_i32_0 = arith.constant 0 : i32
    %c0_i32_1 = arith.constant 0 : i32
    return %c0_i32, %c0_i32_0 : i32, i32
  }
  func.func @transform_22(%arg0: i32, %arg1: i32) -> (i32, i32, i32) {
    %c0_i32 = arith.constant 0 : i32
    %c0_i32_0 = arith.constant 0 : i32
    %c0_i32_1 = arith.constant 0 : i32
    return %arg0, %c0_i32, %c0_i32_0 : i32, i32, i32
  }
}

</mosaic_0001>

<bundles_post_ra>
// kernel: tpu_custom_call.1
= control target key start
LH: loop header
LB: loop body
LE: loop exit
PB: predicated region body
PF: predicated region fallthrough
CT: control target
= control target key end

     0   :  { %s5025_s0 = inlined_call_operand.vmem [shape: f32[2,16,128], index: 0, kind: input, shape index: {}]   ;;  %s5026_s1 = inlined_call_operand.vmem [shape: f32[16,1], index: 1, kind: input, shape index: {}]   ;;  %s5027_s2 = inlined_call_operand.vmem [shape: f32[16,1], index: 2, kind: input, shape index: {}]   ;;  %s5028_s3 = inlined_call_operand.vmem [shape: bf16[32,16], index: 3, kind: input, shape index: {}]   ;;  %s5029_s4 = inlined_call_operand.vmem [shape: f32[32,1], index: 4, kind: input, shape index: {}]   ;;  %s5030_s5 = inlined_call_operand.vmem [shape: bf16[6,64,32], index: 5, kind: input, shape index: {}]   ;;  %s5031_s6 = inlined_call_operand.vmem [shape: f32[6,64,1], index: 6, kind: input, shape index: {}]   ;;  %s5032_s7 = inlined_call_operand.vmem [shape: f32[6,1,1], index: 7, kind: input, shape index: {}]   ;;  %s5033_s8 = inlined_call_operand.vmem [shape: f32[6,64,1], index: 8, kind: input, shape index: {}]   ;;  %s5034_s9 = inlined_call_operand.vmem [shape: f32[6,64,1], index: 9, kind: input, shape index: {}]   ;;  %s5035_s10 = inlined_call_operand.vmem [shape: f32[6,3,64,1], index: 10, kind: input, shape index: {}]   ;;  %s5036_s11 = inlined_call_operand.vmem [shape: f32[6,64,1], index: 11, kind: input, shape index: {}]   ;;  %s5037_s12 = inlined_call_operand.vmem [shape: f32[6,1,1], index: 12, kind: input, shape index: {}]   ;;  %s5038_s13 = inlined_call_operand.vmem [shape: f32[6,64,1], index: 13, kind: input, shape index: {}]   ;;  %s5039_s14 = inlined_call_operand.vmem [shape: f32[6,64,1], index: 14, kind: input, shape index: {}]   ;;  %s5040_s15 = inlined_call_operand.vmem [shape: bf16[6,32,64], index: 15, kind: input, shape index: {}]   ;;  %s5041_s16 = inlined_call_operand.vmem [shape: f32[6,32,1], index: 16, kind: input, shape index: {}]   ;;  %s5042_s17 = inlined_call_operand.vmem [shape: bf16[6,32,64], index: 17, kind: input, shape index: {}]   ;;  %s5043_s18 = inlined_call_operand.vmem [shape: f32[6,32,1], index: 18, kind: input, shape index: {}]   ;;  %s5044_s19 = inlined_call_operand.<no memory space> [shape: f32[1,1], index: 19, kind: input, shape index: {}]   ;;  %s5045_s20 = inlined_call_operand.vmem [shape: bf16[32,32], index: 20, kind: input, shape index: {}]   ;;  %s5046_s21 = inlined_call_operand.vmem [shape: f32[32,1], index: 21, kind: input, shape index: {}]   ;;  %s5047_s22 = inlined_call_operand.hbm [shape: f32[2,32,128], index: 22, kind: output, shape index: {}]  }
   0x1   :  { %5076 = sst [smem:[#allocation24_spill]] %s5025_s0  ;;  %v27_v0 = vstv %s5044_s19 }
   0x2   :  { %5077 = sst [smem:[#allocation25_spill]] %s5026_s1  ;;  %28 = vst [vmem:[#allocation5] sm:$0x1] %v27_v0 }
   0x3   :  { %5078 = sst [smem:[#allocation26_spill]] %s5027_s2 }
   0x4   :  { %5079 = sst [smem:[#allocation27_spill]] %s5028_s3 }
   0x5   :  { %5080 = sst [smem:[#allocation28_spill]] %s5029_s4 }
   0x6   :  { %5081 = sst [smem:[#allocation29_spill]] %s5030_s5 }
   0x7   :  { %5082 = sst [smem:[#allocation30_spill]] %s5031_s6 }
   0x8   :  { %5083 = sst [smem:[#allocation31_spill]] %s5033_s8 }
   0x9   :  { %5084 = sst [smem:[#allocation32_spill]] %s5034_s9 }
   0xa   :  { %5085 = sst [smem:[#allocation33_spill]] %s5035_s10 }
   0xb   :  { %5086 = sst [smem:[#allocation34_spill]] %s5036_s11 }
   0xc   :  { %5087 = sst [smem:[#allocation35_spill]] %s5038_s13 }
   0xd   :  { %5088 = sst [smem:[#allocation36_spill]] %s5039_s14 }
   0xe   :  { %5089 = sst [smem:[#allocation37_spill]] %s5042_s17 }
   0xf   :  { %5090 = sst [smem:[#allocation38_spill]] %s5043_s18 }
  0x10   :  { %5091 = sst [smem:[#allocation39_spill]] %s5045_s20 }
  0x11   :  { %5092 = sst [smem:[#allocation40_spill]] %s5046_s21 }
  0x12   :  { %5093 = sst [smem:[#allocation41_spill]] %s5047_s22 }
  0x13   :  { %29 = vsyncpa [#allocation7], 0 }
  0x14   :  { %31 = vsyncpa [#allocation7 + $0x1], 0  ;;  %s4103_s29 = smov 0   ;;  %s4105_s30 = smov 0  }
  0x15   :  { %s4107_s4 = smov 0   ;;  %s4109_s0 = smov 0  }
  0x16   :  { %s4111_s23 = smov 0   ;;  %s4113_s1 = smov 0  }
  0x17   :  { %s4115_s5 = smov 0   ;;  %s4117_s24 = smov 0  }
  0x18 LB: > { %5094 = sst [smem:[#allocation9_spill]] %s3926_s29  ;;  %s3490_s19 = sadd.s32 4294967295, %s3954_s24   ;;  %s3954_s24 = sphi %s4117_s24, %s37_s24   ;;  %s3950_s5 = sphi %s4115_s5, %s5155_s5   ;;  %s3946_s1 = sphi %s4113_s1, %s5154_s1   ;;  %s3942_s23 = sphi %s4111_s23, %s5153_s23   ;;  %s3938_s0 = sphi %s4109_s0, %s5152_s0   ;;  %s3934_s4 = sphi %s4107_s4, %s5151_s4   ;;  %s3930_s30 = sphi %s4105_s30, %s5150_s30   ;;  %s3926_s29 = sphi %s4103_s29, %s5149_s29  }
  0x19   : > { %5095 = sst [smem:[#allocation10_spill]] %s3930_s30  ;;  %s3491_s6 = sadd.s32 4294967294, %s3954_s24  }
  0x1a   : > { %5096 = sst [smem:[#allocation11_spill]] %s3934_s4  ;;  %s46_s25 = sadd.s32 1, %s3946_s1 }
  0x1b   : > { %5097 = sst [smem:[#allocation12_spill]] %s3938_s0  ;;  %p47_p0 = scmp.ge.s32.totalorder %s46_s25, 6 }
  0x1c   : > { %5098 = sst [smem:[#allocation13_spill]] %s3942_s23  ;;  %s49_s26 = sadd.s32 1, %s3950_s5 }
  0x1d   : > { %5099 = sst [smem:[#allocation14_spill]] %s3946_s1  ;;  %p603_p1 = scmp.ne.s32.totalorder %s3934_s4, %s3930_s30 }
  0x1e   : > { %5100 = sst [smem:[#allocation15_spill]] %s3950_s5  ;;  %p604_p2 = scmp.eq.s32.totalorder %s3490_s19, 11 }
  0x1f   : > { %5101 = sst [smem:[#allocation16_spill]] %s3954_s24  ;;  %s5157_s25 = smov (%p47_p0, %s46_s25), 0 }
  0x20   : > { %5102 = sst [smem:[#allocation17_spill]] %s5157_s25  ;;  %s5159_s26 = smov (!%p47_p0, %s49_s26), %s3950_s5 }
  0x21   : > { %p4152_p3 = por %p604_p2, %p603_p1  ;;  %p609_p4 = scmp.ne.s32.totalorder %s3930_s30, %s3926_s29 }
  0x22   : > { %p51_p5 = scmp.ge.s32.totalorder %s5159_s26, 2  ;;  %p610_p6 = scmp.eq.s32.totalorder %s3491_s6, 11 }
  0x23   : > { %s5103_s2 = scalar_select %p4152_p3, 1, 0 }
  0x24   : > { %p3494_p7 = scmp.ge.s32.totalorder %s3954_s24, 1  ;;  %p765_p8 = scmp.lt.s32.totalorder %s3954_s24, 13 }
  0x25   : > { %5104 = sst [smem:[#allocation18_spill]] %s5103_s2  ;;  %s5161_s26 = smov (%p51_p5, %s5159_s26), 0 }
  0x26   : > { %5105 = sst [smem:[#allocation19_spill]] %s5161_s26  ;;  %p4162_p9 = por %p610_p6, %p609_p4 }
  0x27   : > { %p766_p10 = pnand %p3494_p7, %p765_p8  ;;  %s590_s3 = ssub.s32 %s3950_s5, %s5161_s26 }
  0x28   : > { %s5106_s27 = scalar_select %p4162_p9, 1, 0 }
  0x29   : > { %s593_s28 = sadd.s32 1, %s3934_s4  ;;  %p591_p11 = scmp.eq.s32.totalorder %s590_s3, 0 }
  0x2a   : > { %5107 = sst [smem:[#allocation20_spill]] %s5106_s27  ;;  %769 = sbr.rel (%p766_p10) target bundleno = 4626 (0x1212), region = 108 }
  0x2b   : > { %s4170_s19 = scalar_select %p591_p11, %s3934_s4, %s593_s28  }
  0x2d   : > { %5108 = sst [smem:[#allocation21_spill]] %s4170_s19 }
  0x2f   : > { %s5055_s6 = sand.u32 1, %s3930_s30   ;;  %p893_p12 = scmp.lt.s32.totalorder %s3942_s23, 1  ;;  %v965_v1 = vlaneseq }
  0x30   : > { %s3495_s25 = sshll.u32 %s5055_s6, 5  ;;  %p898_p13 = scmp.lt.s32.totalorder %s3938_s0, 5 }
  0x31   : > { %v4178_v2 = vand.u32 127, %v965_v1  ;;  %s894_s26 = scalar_select %p893_p12, %s3942_s23, 1 }
  0x32   : > { %s4182_s3 = scalar_select %p898_p13, %s3938_s0, 5 }
  0x33   : > { %v967_v3 = vcvt.s32.f32 %v4178_v2  ;;  %s3613_s28 = sshll.u32 %s894_s26, 4  ;;  %s5109_s19 = sld [smem:[#allocation24_spill]] }
  0x34   : > { %s3614_s4 = sshll.u32 %s4182_s3, 5  ;;  %s5110_s24 = sld [smem:[#allocation29_spill]] }
  0x35   : > { %v4189_v4 = vadd.f32 1.0, %v967_v3  ;;  %s3615_s2 = sshll.u32 %s4182_s3, 6  ;;  %s5112_s20 = sld [smem:[#allocation30_spill]] }
  0x36   : > { %s5113_s8 = sld [smem:[#allocation31_spill]]  ;;  %s3621_s27 = sshll.u32 %s4182_s3, 4 }
  0x37   : > { %s5114_s9 = sld [smem:[#allocation32_spill]]  ;;  %s4245_s30 = scalar_lea.vmem %s5041_s16, %s3614_s4 }
  0x38   : > { %s5115_s11 = sld [smem:[#allocation34_spill]]  ;;  %s4250_s26 = scalar_lea.vmem %s5040_s15, %s3621_s27 }
  0x39   : > { %s897_s6 = scalar_lea.vmem %s5109_s19, %s3613_s28  ;;  %s5117_s13 = sld [smem:[#allocation35_spill]] }
  0x3a   : > { %s4194_s22 = scalar_lea.vmem %s5110_s24, %s3614_s4  ;;  %s3701_s24 = smul.u32 192, %s4182_s3 }
  0x3b   : > { %5111 = sst [smem:[#allocation22_spill]] %s4194_s22  ;;  %s4200_s21 = scalar_lea.vmem %s5112_s20, %s3615_s2 }
  0x3c   : > { %s4209_s28 = scalar_lea.vmem %s5113_s8, %s3615_s2  ;;  %s5118_s10 = sld [smem:[#allocation33_spill]] }
  0x3d   : > { %s4214_s29 = scalar_lea.vmem %s5114_s9, %s3615_s2  ;;  %s5119_s14 = sld [smem:[#allocation36_spill]] }
  0x3e   : > { %s4220_s20 = scalar_lea.vmem %s5115_s11, %s3615_s2  ;;  %s5122_s11 = sld [smem:[#allocation12_spill]] }
  0x3f   : > { %5116 = sst [smem:[#allocation23_spill]] %s4220_s20  ;;  %s4229_s5 = scalar_lea.vmem %s5117_s13, %s3615_s2 }
  0x40   : > { %s4262_s13 = scalar_lea.vmem [#allocation6], %s3495_s25 }
  0x42   : > { %s4234_s17 = scalar_lea.vmem %s5118_s10, %s3701_s24  ;;  %s5120_s24 = sld [smem:[#allocation37_spill]] }
  0x43   : > { %s4239_s22 = scalar_lea.vmem %s5119_s14, %s3615_s2  ;;  %s5121_s2 = sld [smem:[#allocation38_spill]] }
  0x44   : > { %p3521_p0 = scmp.ne.s32.totalorder %s5122_s11, 0 }
  0x45   : > { %s3956_s10 = smov (!%p3521_p0), 1   ;;  %s3958_s25 = smov (!%p3521_p0), 4  }
  0x46   : > { %972 = sbr.rel (%p3521_p0) target bundleno = 1176 (0x498), region = 112  ;;  %s3960_s20 = smov (!%p3521_p0), 16  }
  0x47   : > { %s3962_s0 = smov (!%p3521_p0), 32   ;;  %s5123_s8 = sld [smem:[#allocation25_spill]] (!%p3521_p0) }
  0x48   : > { %s4255_s19 = scalar_lea.vmem %s5120_s24, %s3621_s27  ;;  %s3963_s27 = smov (!%p3521_p0), 64  }
  0x49   : > { %s4260_s18 = scalar_lea.vmem %s5121_s2, %s3614_s4  ;;  %s3957_s4 = smov (!%p3521_p0), 2  }
  0x4b   : > { %v4265_v5 = vld [vmem:[%s897_s6] sm:$0xff]  ;;  %v4267_v6 = vld [vmem:[%s897_s6 + $0x8] sm:$0xff]  ;;  %vm988_vm0 = vcmp.ge.s32.totalorder %v4178_v2, 1  ;;  %vm993_vm1 = vcmp.ge.s32.totalorder %v4178_v2, 2  ;;  %vm998_vm2 = vcmp.ge.s32.totalorder %v4178_v2, 4  ;;  %s3959_s6 = smov 8  }
  0x4c   : > { %v979_v7 = vadd.f32 %v4267_v6, %v4265_v5  ;;  %v1021_v8 = vmul.f32 %v4265_v5, %v4265_v5  ;;  %v1022_v9 = vmul.f32 %v4267_v6, %v4267_v6  ;;  %vm1003_vm3 = vcmp.ge.s32.totalorder %v4178_v2, 8 }
  0x4d   : > { %vm1008_vm4 = vcmp.ge.s32.totalorder %v4178_v2, 16  ;;  %v3961_v47 = vmov 0   ;;  %vm1013_vm5 = vcmp.ge.s32.totalorder %v4178_v2, 32  ;;  %v975_v59 = vld [vmem:[%s5123_s8] sm:$0xff]  ;;  %v976_v61 = vld [vmem:[%s5123_s8 + $0x8] sm:$0xff]  ;;  %vm1149_vm6 = vcmask 130048  }
  0x4e   : > { %v980_v10 = vrot.slane %v979_v7, 4  ;;  %v1023_v11 = vadd.f32 %v1022_v9, %v1021_v8  ;;  %3803 = vset.pattern.permute.xlu1 %v3961_v47  ;;  %3802 = vset.pattern.permute.xlu0 %v3961_v47  ;;  %vm1018_vm7 = vcmp.ge.s32.totalorder %v4178_v2, 64 }
  0x50   : > { %v981_v12 = vadd.f32 %v980_v10, %v979_v7  ;;  %v1024_v13 = vrot.slane %v1023_v11, 4  ;;  %v1058_v10 = vmul.f32 16.0, %v4189_v4 }
  0x52   : > { %v982_v14 = vrot.slane %v981_v12, 2  ;;  %v1025_v15 = vadd.f32 %v1024_v13, %v1023_v11  ;;  %3806 = vrcp.f32 %v1058_v10 }
  0x54   : > { %v983_v16 = vadd.f32 %v982_v14, %v981_v12  ;;  %v1026_v17 = vrot.slane %v1025_v15, 2 }
  0x56   : > { %v984_v18 = vrot.slane %v983_v16, 1  ;;  %v1027_v19 = vadd.f32 %v1026_v17, %v1025_v15 }
  0x58   : > { %v985_v20 = vadd.f32 %v984_v18, %v983_v16  ;;  %v1028_v21 = vrot.slane %v1027_v19, 1 }
  0x5a   : > { %986 = vrot.lane.b32.xlu0 %v985_v20, %s3956_s10  ;;  %v1029_v22 = vadd.f32 %v1028_v21, %v1027_v19 }
  0x5e   : > { %1030 = vrot.lane.b32.xlu0 %v1029_v22, %s3956_s10  ;;  %s5124_s10 = sld [smem:[#allocation26_spill]] }
  0x5f   : > { %v3807_v12 = vpop.eup %3806 }
  0x64   : > { %v978_v62 = vld [vmem:[%s5124_s10 + $0x8] sm:$0xff]  ;;  %v977_v63 = vld [vmem:[%s5124_s10] sm:$0xff] }
  0xcc   : > { %v987_v23 = vpop.permute.xlu0 %986 }
  0xcd   : > { %v989_v24 = vsel %vm988_vm0, %v987_v23, 0.0 }
  0xce   : > { %v990_v25 = vadd.f32 %v989_v24, %v985_v20  ;;  %v1074_v24 = vshrl.u32 %v965_v1, 7 }
  0xd0   : > { %991 = vrot.lane.b32.xlu1 %v990_v25, %s3957_s4  ;;  %v1031_v26 = vpop.permute.xlu0 %1030 }
  0xd1   : > { %v1032_v27 = vsel %vm988_vm0, %v1031_v26, 0.0 }
  0xd2   : > { %v1033_v28 = vadd.f32 %v1032_v27, %v1029_v22 }
  0xd4   : > { %1034 = vrot.lane.b32.xlu1 %v1033_v28, %s3957_s4 }
 0x142   : > { %v992_v29 = vpop.permute.xlu1 %991 }
 0x143   : > { %v994_v30 = vsel %vm993_vm1, %v992_v29, 0.0  ;;  %v1075_v29 = vsub.s32 0, %v1074_v24 }
 0x144   : > { %v995_v31 = vadd.f32 %v994_v30, %v990_v25 }
 0x146   : > { %996 = vrot.lane.b32.xlu0 %v995_v31, %s3958_s25  ;;  %v1035_v32 = vpop.permute.xlu1 %1034 }
 0x147   : > { %v1036_v33 = vsel %vm993_vm1, %v1035_v32, 0.0 }
 0x148   : > { %v1037_v34 = vadd.f32 %v1036_v33, %v1033_v28 }
 0x14a   : > { %1038 = vrot.lane.b32.xlu1 %v1037_v34, %s3958_s25  ;;  %s5127_s25 = sld [smem:[#allocation27_spill]] }
 0x150   : > { %v3804_v9 = vld [vmem:[%s5127_s25] sm:$0xff]   ;;  %v3805_v47 = vld [vmem:[%s5127_s25 + $0x8] sm:$0xff]  }
 0x151   : > { %3653 = vmatprep.mubr.msk.bf16.mxu0 %vm1149_vm6, %v3804_v9 }
 0x1b8   : > { %v997_v35 = vpop.permute.xlu0 %996 }
 0x1b9   : > { %v999_v36 = vsel %vm998_vm2, %v997_v35, 0.0 }
 0x1ba   : > { %v1000_v37 = vadd.f32 %v999_v36, %v995_v31 }
 0x1bc   : > { %v1039_v38 = vpop.permute.xlu1 %1038  ;;  %1001 = vrot.lane.b32.xlu0 %v1000_v37, %s3959_s6 }
 0x1bd   : > { %v1040_v39 = vsel %vm998_vm2, %v1039_v38, 0.0 }
 0x1be   : > { %v1041_v40 = vadd.f32 %v1040_v39, %v1037_v34 }
 0x1c0   : > { %1042 = vrot.lane.b32.xlu1 %v1041_v40, %s3959_s6 }
 0x22e   : > { %v1002_v41 = vpop.permute.xlu0 %1001 }
 0x22f   : > { %v1004_v42 = vsel %vm1003_vm3, %v1002_v41, 0.0 }
 0x230   : > { %v1005_v43 = vadd.f32 %v1004_v42, %v1000_v37 }
 0x232   : > { %v1043_v44 = vpop.permute.xlu1 %1042  ;;  %1006 = vrot.lane.b32.xlu0 %v1005_v43, %s3960_s20 }
 0x233   : > { %v1044_v45 = vsel %vm1003_vm3, %v1043_v44, 0.0 }
 0x234   : > { %v1045_v46 = vadd.f32 %v1044_v45, %v1041_v40 }
 0x236   : > { %1046 = vrot.lane.b32.xlu1 %v1045_v46, %s3960_s20 }
 0x2a4   : > { %v1007_v48 = vpop.permute.xlu0 %1006 }
 0x2a5   : > { %v1009_v49 = vsel %vm1008_vm4, %v1007_v48, 0.0 }
 0x2a6   : > { %v1010_v50 = vadd.f32 %v1009_v49, %v1005_v43 }
 0x2a8   : > { %v1047_v51 = vpop.permute.xlu1 %1046  ;;  %1011 = vrot.lane.b32.xlu0 %v1010_v50, %s3962_s0 }
 0x2a9   : > { %v1048_v52 = vsel %vm1008_vm4, %v1047_v51, 0.0 }
 0x2aa   : > { %v1049_v53 = vadd.f32 %v1048_v52, %v1045_v46 }
 0x2ac   : > { %1050 = vrot.lane.b32.xlu1 %v1049_v53, %s3962_s0  ;;  %s5125_s0 = sld [smem:[#allocation28_spill]] }
 0x2b2   : > { %s5126_s14 = smov %s5125_s0  ;;  %v1116_v0 = vld [vmem:[%s5125_s0 + $0x8] sm:$0xff] }
 0x2b3   : > { %v1115_v3 = vld [vmem:[%s5126_s14] sm:$0xff]  ;;  %v1118_v7 = vld [vmem:[%s5126_s14 + $0x18] sm:$0xff]  ;;  %v1117_v8 = vld [vmem:[%s5126_s14 + $0x10] sm:$0xff] }
 0x31a   : > { %v1012_v54 = vpop.permute.xlu0 %1011 }
 0x31b   : > { %v1014_v55 = vsel %vm1013_vm5, %v1012_v54, 0.0 }
 0x31c   : > { %v1015_v56 = vadd.f32 %v1014_v55, %v1010_v50 }
 0x31e   : > { %v1051_v57 = vpop.permute.xlu1 %1050  ;;  %1016 = vrot.lane.b32.xlu0 %v1015_v56, %s3963_s27 }
 0x31f   : > { %v1052_v58 = vsel %vm1013_vm5, %v1051_v57, 0.0 }
 0x320   : > { %v1053_v60 = vadd.f32 %v1052_v58, %v1049_v53 }
 0x322   : > { %1054 = vrot.lane.b32.xlu1 %v1053_v60, %s3963_s27  ;;  %1088 = vperm.xlu0 %3802, %v975_v59  }
 0x326   : > { %1093 = vperm.xlu1 %3803, %v976_v61   ;;  %1105 = vperm.xlu0 %3802, %v978_v62  }
 0x32a   : > { %1100 = vperm.xlu1 %3803, %v977_v63   ;;  %1126 = vperm.xlu0 %3802, %v1116_v0  }
 0x32e   : > { %1121 = vperm.xlu1 %3803, %v1115_v3   ;;  %1136 = vperm.xlu0 %3802, %v1118_v7  }
 0x332   : > { %1131 = vperm.xlu1 %3803, %v1117_v8  }
 0x390   : > { %v1017_v11 = vpop.permute.xlu0 %1016 }
 0x391   : > { %v1019_v13 = vsel %vm1018_vm7, %v1017_v11, 0.0 }
 0x392   : > { %v1020_v14 = vadd.f32 %v1019_v13, %v1015_v56 }
 0x394   : > { %v1060_v15 = vmul.f32 %v3807_v12, %v1020_v14  ;;  %v1055_v16 = vpop.permute.xlu1 %1054 }
 0x395   : > { %v1056_v17 = vsel %vm1018_vm7, %v1055_v16, 0.0 }
 0x396   : > { %v1057_v18 = vadd.f32 %v1056_v17, %v1053_v60  ;;  %v1062_v19 = vmul.f32 %v1060_v15, %v1060_v15  ;;  %v1076_v32 = vrot.slane %v1060_v15, %v1075_v29 }
 0x398   : > { %v1061_v20 = vmul.f32 %v3807_v12, %v1057_v18  ;;  %v1078_v35 = vsub.f32 %v4267_v6, %v1076_v32  ;;  %v1077_v36 = vsub.f32 %v4265_v5, %v1076_v32  ;;  %v3964_v6 = vmov 0.0  }
 0x399   : > { %1209 = vst [vmem:[#allocation3] sm:$0xff] %v3964_v6  ;;  %1210 = vst [vmem:[#allocation3 + $0x18] sm:$0xff] %v3964_v6 }
 0x39a   : > { %v1063_v21 = vsub.f32 %v1061_v20, %v1062_v19  ;;  %1211 = vst [vmem:[#allocation3 + $0x8] sm:$0xff] %v3964_v6  ;;  %1212 = vst [vmem:[#allocation3 + $0x10] sm:$0xff] %v3964_v6 }
 0x39c   : > { %v1064_v22 = vmax.f32 %v1063_v21, 0.0 }
 0x39d   : > { %v1089_v34 = vpop.permute.xlu0 %1088 }
 0x39e   : > { %3808 = vrsqrt.f32 %v1064_v22  ;;  %vm1067_vm8 = vcmp.eq.f32.partialorder %v1064_v22, inf  ;;  %v1070_v26 = vand.u32 2147483648, %v1064_v22  ;;  %vm1069_vm9 = vcmp.eq.f32.partialorder %v1064_v22, 0.0 }
 0x3a1   : > { %v1094_v33 = vpop.permute.xlu1 %1093  ;;  %v1106_v43 = vpop.permute.xlu0 %1105 }
 0x3a5   : > { %v1101_v42 = vpop.permute.xlu1 %1100  ;;  %v1127_v48 = vpop.permute.xlu0 %1126 }
 0x3a9   : > { %v1122_v5 = vpop.permute.xlu1 %1121  ;;  %v1137_v54 = vpop.permute.xlu0 %1136 }
 0x3ab   : > { %v3809_v23 = vpop.eup %3808 }
 0x3ac   : > { %v1066_v25 = vmul.f32 %v3809_v23, %v1064_v22 }
 0x3ad   : > { %v1132_v49 = vpop.permute.xlu1 %1131 }
 0x3ae   : > { %v1068_v27 = vsel %vm1067_vm8, %v1064_v22, %v1066_v25 }
 0x3af   : > { %v1071_v28 = vsel %vm1069_vm9, %v1070_v26, %v1068_v27 }
 0x3b0   : > { %v1072_v30 = vadd.f32 1e-08, %v1071_v28 }
 0x3b2   : > { %v1082_v31 = vrot.slane %v1072_v30, %v1075_v29 }
 0x3b4   : > { %3810 = vrcp.f32 %v1082_v31 }
 0x3c1   : > { %v3811_v37 = vpop.eup %3810 }
 0x3c2   : > { %v1085_v38 = vmul.f32 %v3811_v37, %v1078_v35  ;;  %v1084_v39 = vmul.f32 %v3811_v37, %v1077_v36 }
 0x3c4   : > { %v1097_v40 = vmul.f32 %v1094_v33, %v1085_v38  ;;  %v1096_v41 = vmul.f32 %v1089_v34, %v1084_v39 }
 0x3c6   : > { %v1108_v44 = vadd.f32 %v1101_v42, %v1096_v41  ;;  %v1109_v45 = vadd.f32 %v1106_v43, %v1097_v40 }
 0x3c8   : > { %v1114_v46 = vpack.c.bf16 %v1109_v45, %v1108_v44 }
 0x3ca   : > { %3651 = vmatprep.subr.bf16.mxu0 %v1114_v46 }
 0x3cb   : > { %3652 = vmatpush3.bf16.msra.mxu0 %v1114_v46 }
 0x3ce   : > { %3654 = vmatmul.mubr.msk.bf16.vlgmr.msra.gmra.mxu0 %vm1149_vm6, %v3805_v47 }
 0x48e   : > { %v3655_v50 = vpop.f32.mrf.mxu0 }
 0x48f   : > { %v1199_v51 = vadd.f32 %v3655_v50, %v1132_v49 }
 0x490   : > { %v1190_v52 = vpop.f32.mrf.mxu0 }
 0x491   : > { %1207 = vst [vmem:[#allocation2 + $0x18] sm:$0xff] %v1199_v51  ;;  %v1191_v53 = vadd.f32 %v1190_v52, %v1122_v5 }
 0x492   : > { %v3656_v55 = vpop.f32.mrf.mxu0 }
 0x493   : > { %1205 = vst [vmem:[#allocation2 + $0x10] sm:$0xff] %v1191_v53  ;;  %v1202_v56 = vadd.f32 %v3656_v55, %v1137_v54 }
 0x494   : > { %v1193_v57 = vpop.f32.mrf.mxu0 }
 0x495   : > { %1208 = vst [vmem:[#allocation2 + $0x8] sm:$0xff] %v1202_v56  ;;  %v1194_v58 = vadd.f32 %v1193_v57, %v1127_v48 }
 0x497   : > { %1206 = vst [vmem:[#allocation2] sm:$0xff] %v1194_v58 }
 0x498 PF: > { %v4318_v59 = vld [vmem:[#allocation2 + $0x18] sm:$0xff]  ;;  %s5128_s0 = sld [smem:[#allocation22_spill]]  ;;  %vm1295_vm10 = vcmask 261120   ;;  %v5074_v0 = vmov 0   ;;  %v1227_v8 = vld [vmem:[%s4200_s21] sm:$0xff]  ;;  %v1229_v9 = vld [vmem:[%s4200_s21 + $0x10] sm:$0xff]  ;;  %s5129_s1 = scalar_lea.vmem %s5032_s7, %s4182_s3 }
 0x499   : > { %3812 = vset.pattern.permute.xlu0 %v5074_v0  ;;  %3813 = vset.pattern.permute.xlu1 %v5074_v0  ;;  %v1228_v11 = vld [vmem:[%s4200_s21 + $0x8] sm:$0xff]  ;;  %v3534_v13 = vld [vmem:[%s5129_s1] ss:$0 sm:$0xff]  ;;  %v1230_v14 = vld [vmem:[%s4200_s21 + $0x18] sm:$0xff]  ;;  %vm1438_vm3 = vcmp.ge.s32.totalorder %v4178_v2, 1  ;;  %s3967_s24 = smov 2  }
 0x49a   : > { %v4322_v61 = vld [vmem:[#allocation2 + $0x10] sm:$0xff]  ;;  %1237 = vperm.xlu0 %3812, %v1227_v8   ;;  %1247 = vperm.xlu1 %3813, %v1229_v9   ;;  %v1231_v15 = vld [vmem:[%s4200_s21 + $0x20] sm:$0xff]  ;;  %v1232_v17 = vld [vmem:[%s4200_s21 + $0x28] sm:$0xff]  ;;  %vm1443_vm4 = vcmp.ge.s32.totalorder %v4178_v2, 2  ;;  %s3968_s9 = smov 4   ;;  %vm1448_vm5 = vcmp.ge.s32.totalorder %v4178_v2, 4 }
 0x49b   : > { %v1233_v18 = vld [vmem:[%s4200_s21 + $0x30] sm:$0xff]  ;;  %v1234_v19 = vld [vmem:[%s4200_s21 + $0x38] sm:$0xff]  ;;  %s3966_s21 = smov 1   ;;  %s3969_s2 = smov 8   ;;  %vm1453_vm6 = vcmp.ge.s32.totalorder %v4178_v2, 8  ;;  %vm1458_vm7 = vcmp.ge.s32.totalorder %v4178_v2, 16 }
 0x49c   : > { %v4320_v60 = vld [vmem:[#allocation2 + $0x8] sm:$0xff]  ;;  %s3970_s11 = smov 16   ;;  %s3971_s4 = smov 32   ;;  %vm1463_vm8 = vcmp.ge.s32.totalorder %v4178_v2, 32  ;;  %vm1468_vm9 = vcmp.ge.s32.totalorder %v4178_v2, 64 }
 0x49d   : > { %v1226_v62 = vpack.c.bf16 %v4320_v60, %v4318_v59  ;;  %s3972_s6 = smov 64   ;;  %s5130_s20 = sld [smem:[#allocation12_spill]] }
 0x49e   : > { %v4326_v63 = vld [vmem:[#allocation2] sm:$0xff]  ;;  %v3815_v10 = vld [vmem:[%s5128_s0 + $0x8] sm:$0xff]   ;;  %v3816_v12 = vld [vmem:[%s5128_s0 + $0x10] sm:$0xff]   ;;  %1242 = vperm.xlu0 %3812, %v1228_v11   ;;  %1388 = vperm.xlu1 %3813, %v3534_v13  }
 0x49f   : > { %v1225_v3 = vpack.c.bf16 %v4326_v63, %v4322_v61  ;;  %v3814_v7 = vld [vmem:[%s5128_s0] sm:$0xff]   ;;  %3657 = vmatprep.subr.bf16.mxu0 %v1226_v62  ;;  %v3817_v16 = vld [vmem:[%s5128_s0 + $0x18] sm:$0xff]  }
 0x4a0   : > { %3658 = vmatpush3.bf16.msra.mxu0 %v1226_v62  ;;  %3661 = vmatprep.mubr.msk.bf16.mxu0 %vm1295_vm10, %v3814_v7 }
 0x4a1   : > { %3659 = vmatprep.subr.bf16.mxu0 %v1225_v3 }
 0x4a2   : > { %1252 = vperm.xlu0 %3812, %v1230_v14   ;;  %1257 = vperm.xlu1 %3813, %v1231_v15  }
 0x4a3   : > { %s1657_s0 = ssub.s32 0, %s5130_s20  ;;  %p1656_p1 = scmp.lt.s32.totalorder %s5130_s20, 0 }
 0x4a4   : > { %3660 = vmatpush3.bf16.msra.mxu0 %v1225_v3  ;;  %s3535_s27 = smin.u32 %s5130_s20, %s1657_s0 }
 0x4a5   : > { %3818 = sdivrem.u32 %s3535_s27, 3 }
 0x4a6   : > { %1262 = vperm.xlu0 %3812, %v1232_v17   ;;  %1267 = vperm.xlu1 %3813, %v1233_v18  }
 0x4a7   : > { %3662 = vmatmul.mubr.msk.bf16.vlgmr.msra.gmra.mxu0 %vm1295_vm10, %v3815_v10 }
 0x4a8   : > { %3665 = vmatprep.mubr.msk.bf16.mxu0 %vm1295_vm10, %v3816_v12 }
 0x4aa   : > { %1272 = vperm.xlu0 %3812, %v1234_v19  }
 0x4af   : > { %3666 = vmatmul.mubr.msk.bf16.gmra.mxu0 %vm1295_vm10, %v3817_v16 }
 0x515   : > { %v1238_v20 = vpop.permute.xlu0 %1237  ;;  %v1248_v21 = vpop.permute.xlu1 %1247 }
 0x519   : > { %v1243_v22 = vpop.permute.xlu0 %1242  ;;  %v1389_v23 = vpop.permute.xlu1 %1388 }
 0x51d   : > { %v1253_v24 = vpop.permute.xlu0 %1252  ;;  %v1258_v29 = vpop.permute.xlu1 %1257 }
 0x521   : > { %v1263_v33 = vpop.permute.xlu0 %1262  ;;  %v1268_v41 = vpop.permute.xlu1 %1267 }
 0x525   : > { %v1273_v47 = vpop.permute.xlu0 %1272 }
 0x567   : > { %v3663_v25 = vpop.f32.mrf.mxu0 }
 0x568   : > { %v1351_v27 = vadd.f32 %v3663_v25, %v1248_v21 }
 0x569   : > { %v1342_v26 = vpop.f32.mrf.mxu0 }
 0x56a   : > { %v1343_v28 = vadd.f32 %v1342_v26, %v1238_v20  ;;  %v1393_v35 = vmul.f32 %v1389_v23, %v1351_v27  ;;  %vm1376_vm12 = vcmp.ge.f32.partialorder %v1351_v27, 0.0 }
 0x56b   : > { %v3664_v30 = vpop.f32.mrf.mxu0 }
 0x56c   : > { %v1391_v31 = vmul.f32 %v1389_v23, %v1343_v28  ;;  %v1354_v32 = vadd.f32 %v3664_v30, %v1253_v24  ;;  %vm1374_vm11 = vcmp.ge.f32.partialorder %v1343_v28, 0.0  ;;  %v4355_v43 = vsel %vm1376_vm12, %v1351_v27, %v1393_v35 }
 0x56d   : > { %v1345_v34 = vpop.f32.mrf.mxu0  ;;  %v1473_v53 = vmul.f32 %v4355_v43, %v4355_v43 }
 0x56e   : > { %v1346_v36 = vadd.f32 %v1345_v34, %v1243_v22  ;;  %v4353_v38 = vsel %vm1374_vm11, %v1343_v28, %v1391_v31  ;;  %v1394_v39 = vmul.f32 %v1389_v23, %v1354_v32  ;;  %vm1377_vm14 = vcmp.ge.f32.partialorder %v1354_v32, 0.0 }
 0x56f   : > { %v3667_v37 = vpop.f32.mrf.mxu0  ;;  %v1471_v6 = vmul.f32 %v4353_v38, %v4353_v38 }
 0x570   : > { %vm1375_vm13 = vcmp.ge.f32.partialorder %v1346_v36, 0.0  ;;  %v1392_v40 = vmul.f32 %v1389_v23, %v1346_v36  ;;  %v1367_v45 = vadd.f32 %v3667_v37, %v1268_v41  ;;  %v4365_v50 = vsel %vm1377_vm14, %v1354_v32, %v1394_v39 }
 0x571   : > { %v1358_v42 = vpop.f32.mrf.mxu0  ;;  %v1474_v3 = vmul.f32 %v4365_v50, %v4365_v50 }
 0x572   : > { %v4357_v44 = vsel %vm1375_vm13, %v1346_v36, %v1392_v40  ;;  %v1359_v46 = vadd.f32 %v1358_v42, %v1258_v29  ;;  %v1397_v57 = vmul.f32 %v1389_v23, %v1367_v45  ;;  %vm1380_vm0 = vcmp.ge.f32.partialorder %v1367_v45, 0.0 }
 0x573   : > { %v1423_v5 = vadd.f32 %v4357_v44, %v4353_v38  ;;  %v1472_v48 = vmul.f32 %v4357_v44, %v4357_v44  ;;  %v3668_v49 = vpop.f32.mrf.mxu0 }
 0x574   : > { %vm1378_vm15 = vcmp.ge.f32.partialorder %v1359_v46, 0.0  ;;  %v1395_v51 = vmul.f32 %v1389_v23, %v1359_v46  ;;  %v1370_v52 = vadd.f32 %v3668_v49, %v1273_v47  ;;  %v4378_v14 = vsel %vm1380_vm0, %v1367_v45, %v1397_v57 }
 0x575   : > { %v1424_v54 = vadd.f32 %v1423_v5, %v4355_v43  ;;  %v1479_v55 = vadd.f32 %v1472_v48, %v1471_v6  ;;  %v1361_v56 = vpop.f32.mrf.mxu0  ;;  %v1477_v20 = vmul.f32 %v4378_v14, %v4378_v14 }
 0x576   : > { %v4370_v58 = vsel %vm1378_vm15, %v1359_v46, %v1395_v51  ;;  %v1362_v62 = vadd.f32 %v1361_v56, %v1263_v33  ;;  %v1398_v9 = vmul.f32 %v1389_v23, %v1370_v52  ;;  %vm1381_vm2 = vcmp.ge.f32.partialorder %v1370_v52, 0.0 }
 0x577   : > { %v1480_v7 = vadd.f32 %v1479_v55, %v1473_v53  ;;  %v1425_v8 = vadd.f32 %v1424_v54, %v4365_v50  ;;  %v1475_v12 = vmul.f32 %v4370_v58, %v4370_v58 }
 0x578   : > { %vm1379_vm1 = vcmp.ge.f32.partialorder %v1362_v62, 0.0  ;;  %v1396_v10 = vmul.f32 %v1389_v23, %v1362_v62  ;;  %v4385_v19 = vsel %vm1381_vm2, %v1370_v52, %v1398_v9 }
 0x579   : > { %v1426_v11 = vadd.f32 %v1425_v8, %v4370_v58  ;;  %v1481_v13 = vadd.f32 %v1480_v7, %v1474_v3  ;;  %v1478_v23 = vmul.f32 %v4385_v19, %v4385_v19 }
 0x57a   : > { %v4380_v15 = vsel %vm1379_vm1, %v1362_v62, %v1396_v10 }
 0x57b   : > { %v1482_v16 = vadd.f32 %v1481_v13, %v1475_v12  ;;  %v1427_v17 = vadd.f32 %v1426_v11, %v4380_v15  ;;  %v1476_v18 = vmul.f32 %v4380_v15, %v4380_v15 }
 0x57d   : > { %v1428_v21 = vadd.f32 %v1427_v17, %v4378_v14  ;;  %v1483_v22 = vadd.f32 %v1482_v16, %v1476_v18 }
 0x57f   : > { %v1484_v24 = vadd.f32 %v1483_v22, %v1477_v20  ;;  %v1429_v25 = vadd.f32 %v1428_v21, %v4385_v19 }
 0x581   : > { %v1430_v26 = vrot.slane %v1429_v25, 4  ;;  %v1485_v27 = vadd.f32 %v1484_v24, %v1478_v23 }
 0x583   : > { %v1431_v28 = vadd.f32 %v1430_v26, %v1429_v25  ;;  %v1486_v29 = vrot.slane %v1485_v27, 4 }
 0x585   : > { %v1432_v30 = vrot.slane %v1431_v28, 2  ;;  %v1487_v31 = vadd.f32 %v1486_v29, %v1485_v27  ;;  %v1407_v27 = vld [vmem:[%s4209_s28] sm:$0xff]  ;;  %v1409_v29 = vld [vmem:[%s4209_s28 + $0x10] sm:$0xff] }
 0x587   : > { %v1433_v32 = vadd.f32 %v1432_v30, %v1431_v28  ;;  %v1488_v33 = vrot.slane %v1487_v31, 2  ;;  %v1408_v28 = vld [vmem:[%s4209_s28 + $0x8] sm:$0xff]  ;;  %v1410_v30 = vld [vmem:[%s4209_s28 + $0x18] sm:$0xff] }
 0x589   : > { %v1434_v34 = vrot.slane %v1433_v32, 1  ;;  %v1489_v35 = vadd.f32 %v1488_v33, %v1487_v31  ;;  %v1411_v31 = vld [vmem:[%s4209_s28 + $0x20] sm:$0xff]  ;;  %v1413_v33 = vld [vmem:[%s4209_s28 + $0x30] sm:$0xff] }
 0x58b   : > { %v1435_v36 = vadd.f32 %v1434_v34, %v1433_v32  ;;  %v1490_v37 = vrot.slane %v1489_v35, 1  ;;  %v1412_v32 = vld [vmem:[%s4209_s28 + $0x28] sm:$0xff]  ;;  %v1414_v34 = vld [vmem:[%s4209_s28 + $0x38] sm:$0xff]  ;;  %s3819_s28 = spop.drf %3818 }
 0x58c   : > { %s1661_s23 = ssub.s32 0, %s3819_s28 }
 0x58d   : > { %1436 = vrot.lane.b32.xlu1 %v1435_v36, %s3966_s21  ;;  %v1491_v39 = vadd.f32 %v1490_v37, %v1489_v35  ;;  %v1415_v35 = vld [vmem:[%s4214_s29] sm:$0xff]  ;;  %v1417_v37 = vld [vmem:[%s4214_s29 + $0x10] sm:$0xff]  ;;  %s5163_s23 = smov (!%p1656_p1, %s1661_s23), %s3819_s28 }
 0x58e   : > { %p3537_p2 = scmp.lt.s32.totalorder %s5163_s23, 0  ;;  %s1667_s1 = sadd.s32 3, %s5163_s23 }
 0x58f   : > { %1492 = vrot.lane.b32.xlu0 %v1491_v39, %s3966_s21 }
 0x590   : > { %s5165_s1 = smov (!%p3537_p2, %s1667_s1), %s5163_s23 }
 0x591   : > { %p3538_p4 = scmp.ne.s32.totalorder %s5165_s1, 0 }
 0x592   : > { %s3975_s20 = smov (!%p3538_p4), 1   ;;  %s5131_s0 = sld [smem:[#allocation23_spill]] (!%p3538_p4) }
 0x5ff   : > { %v1437_v40 = vpop.permute.xlu1 %1436 }
 0x600   : > { %v1439_v41 = vsel %vm1438_vm3, %v1437_v40, 0.0  ;;  %v1419_v40 = vld [vmem:[%s4214_s29 + $0x20] sm:$0xff] }
 0x601   : > { %v1440_v42 = vadd.f32 %v1439_v41, %v1435_v36  ;;  %v1493_v45 = vpop.permute.xlu0 %1492  ;;  %v1416_v36 = vld [vmem:[%s4214_s29 + $0x8] sm:$0xff] }
 0x602   : > { %v1494_v46 = vsel %vm1438_vm3, %v1493_v45, 0.0  ;;  %v1420_v41 = vld [vmem:[%s4214_s29 + $0x28] sm:$0xff]  ;;  %v1422_v45 = vld [vmem:[%s4214_s29 + $0x38] sm:$0xff] }
 0x603   : > { %v1495_v47 = vadd.f32 %v1494_v46, %v1491_v39  ;;  %1441 = vrot.lane.b32.xlu1 %v1440_v42, %s3967_s24  ;;  %v1418_v39 = vld [vmem:[%s4214_s29 + $0x18] sm:$0xff]  ;;  %v1520_v46 = vmul.f32 64.0, %v4189_v4 }
 0x605   : > { %1496 = vrot.lane.b32.xlu0 %v1495_v47, %s3967_s24  ;;  %3820 = vrcp.f32 %v1520_v46 }
 0x675   : > { %v1442_v6 = vpop.permute.xlu1 %1441 }
 0x676   : > { %v1444_v5 = vsel %vm1443_vm4, %v1442_v6, 0.0  ;;  %v4460_v6 = vpop.eup %3820 }
 0x677   : > { %v1445_v48 = vadd.f32 %v1444_v5, %v1440_v42  ;;  %v1497_v49 = vpop.permute.xlu0 %1496  ;;  %v1421_v42 = vld [vmem:[%s4214_s29 + $0x30] sm:$0xff]  ;;  %s3974_s29 = smov (!%p3538_p4), 2  }
 0x678   : > { %v1498_v51 = vsel %vm1443_vm4, %v1497_v49, 0.0 }
 0x679   : > { %v1499_v52 = vadd.f32 %v1498_v51, %v1495_v47  ;;  %1446 = vrot.lane.b32.xlu1 %v1445_v48, %s3968_s9 }
 0x67b   : > { %1500 = vrot.lane.b32.xlu0 %v1499_v52, %s3968_s9 }
 0x6eb   : > { %v1447_v53 = vpop.permute.xlu1 %1446 }
 0x6ec   : > { %v1449_v54 = vsel %vm1448_vm5, %v1447_v53, 0.0 }
 0x6ed   : > { %v1450_v55 = vadd.f32 %v1449_v54, %v1445_v48  ;;  %v1501_v56 = vpop.permute.xlu0 %1500 }
 0x6ee   : > { %v1502_v57 = vsel %vm1448_vm5, %v1501_v56, 0.0 }
 0x6ef   : > { %v1503_v62 = vadd.f32 %v1502_v57, %v1499_v52  ;;  %1451 = vrot.lane.b32.xlu1 %v1450_v55, %s3969_s2 }
 0x6f1   : > { %1504 = vrot.lane.b32.xlu0 %v1503_v62, %s3969_s2 }
 0x761   : > { %v1452_v3 = vpop.permute.xlu1 %1451 }
 0x762   : > { %v1454_v7 = vsel %vm1453_vm6, %v1452_v3, 0.0 }
 0x763   : > { %v1455_v8 = vadd.f32 %v1454_v7, %v1450_v55  ;;  %v1505_v9 = vpop.permute.xlu0 %1504 }
 0x764   : > { %v1506_v10 = vsel %vm1453_vm6, %v1505_v9, 0.0 }
 0x765   : > { %v1507_v11 = vadd.f32 %v1506_v10, %v1503_v62  ;;  %1456 = vrot.lane.b32.xlu1 %v1455_v8, %s3970_s11 }
 0x767   : > { %1508 = vrot.lane.b32.xlu0 %v1507_v11, %s3970_s11 }
 0x7d7   : > { %v1457_v12 = vpop.permute.xlu1 %1456 }
 0x7d8   : > { %v1459_v13 = vsel %vm1458_vm7, %v1457_v12, 0.0 }
 0x7d9   : > { %v1460_v16 = vadd.f32 %v1459_v13, %v1455_v8  ;;  %v1509_v17 = vpop.permute.xlu0 %1508 }
 0x7da   : > { %v1510_v18 = vsel %vm1458_vm7, %v1509_v17, 0.0 }
 0x7db   : > { %v1511_v20 = vadd.f32 %v1510_v18, %v1507_v11  ;;  %1461 = vrot.lane.b32.xlu1 %v1460_v16, %s3971_s4  ;;  %v1536_v11 = vshrl.u32 %v965_v1, 7 }
 0x7dd   : > { %1512 = vrot.lane.b32.xlu0 %v1511_v20, %s3971_s4 }
 0x84d   : > { %v1462_v21 = vpop.permute.xlu1 %1461 }
 0x84e   : > { %v1464_v22 = vsel %vm1463_vm8, %v1462_v21, 0.0  ;;  %v4469_v21 = vsub.s32 0, %v1536_v11 }
 0x84f   : > { %v1465_v23 = vadd.f32 %v1464_v22, %v1460_v16  ;;  %v1513_v24 = vpop.permute.xlu0 %1512 }
 0x850   : > { %v1514_v25 = vsel %vm1463_vm8, %v1513_v24, 0.0 }
 0x851   : > { %v1515_v26 = vadd.f32 %v1514_v25, %v1511_v20  ;;  %1466 = vrot.lane.b32.xlu1 %v1465_v23, %s3972_s6 }
 0x853   : > { %1516 = vrot.lane.b32.xlu0 %v1515_v26, %s3972_s6 }
 0x855   : > { %1562 = vperm.xlu1 %3813, %v1407_v27  }
 0x857   : > { %1567 = vperm.xlu0 %3812, %v1408_v28  }
 0x859   : > { %1572 = vperm.xlu1 %3813, %v1409_v29  }
 0x85b   : > { %1577 = vperm.xlu0 %3812, %v1410_v30  }
 0x85d   : > { %1582 = vperm.xlu1 %3813, %v1411_v31  }
 0x85f   : > { %1587 = vperm.xlu0 %3812, %v1412_v32  }
 0x861   : > { %1592 = vperm.xlu1 %3813, %v1413_v33  }
 0x863   : > { %1597 = vperm.xlu0 %3812, %v1414_v34  }
 0x865   : > { %1610 = vperm.xlu1 %3813, %v1415_v35  }
 0x867   : > { %1615 = vperm.xlu0 %3812, %v1416_v36  }
 0x869   : > { %1620 = vperm.xlu1 %3813, %v1417_v37  }
 0x86b   : > { %1625 = vperm.xlu0 %3812, %v1418_v39  }
 0x86d   : > { %1630 = vperm.xlu1 %3813, %v1419_v40  }
 0x86f   : > { %1635 = vperm.xlu0 %3812, %v1420_v41  }
 0x871   : > { %1640 = vperm.xlu1 %3813, %v1421_v42  }
 0x873   : > { %1645 = vperm.xlu0 %3812, %v1422_v45  }
 0x8c3   : > { %v1467_v47 = vpop.permute.xlu1 %1466 }
 0x8c4   : > { %v1469_v5 = vsel %vm1468_vm9, %v1467_v47, 0.0 }
 0x8c5   : > { %v1470_v48 = vadd.f32 %v1469_v5, %v1465_v23  ;;  %v1517_v49 = vpop.permute.xlu0 %1516 }
 0x8c6   : > { %v1518_v51 = vsel %vm1468_vm9, %v1517_v49, 0.0 }
 0x8c7   : > { %v1522_v52 = vmul.f32 %v4460_v6, %v1470_v48  ;;  %v1519_v53 = vadd.f32 %v1518_v51, %v1515_v26 }
 0x8c9   : > { %v1524_v54 = vmul.f32 %v1522_v52, %v1522_v52  ;;  %v1523_v4 = vmul.f32 %v4460_v6, %v1519_v53  ;;  %v1538_v1 = vrot.slane %v1522_v52, %v4469_v21 }
 0x8cb   : > { %v1525_v55 = vsub.f32 %v1523_v4, %v1524_v54  ;;  %v1539_v28 = vsub.f32 %v4353_v38, %v1538_v1  ;;  %v1540_v29 = vsub.f32 %v4357_v44, %v1538_v1  ;;  %v1541_v30 = vsub.f32 %v4355_v43, %v1538_v1 }
 0x8cc   : > { %v1542_v31 = vsub.f32 %v4365_v50, %v1538_v1  ;;  %v1543_v35 = vsub.f32 %v4370_v58, %v1538_v1  ;;  %v1544_v36 = vsub.f32 %v4380_v15, %v1538_v1  ;;  %v1545_v37 = vsub.f32 %v4378_v14, %v1538_v1 }
 0x8cd   : > { %v1526_v56 = vmax.f32 %v1525_v55, 0.0  ;;  %v1546_v39 = vsub.f32 %v4385_v19, %v1538_v1 }
 0x8cf   : > { %3822 = vrsqrt.f32 %v1526_v56  ;;  %vm1529_vm11 = vcmp.eq.f32.partialorder %v1526_v56, inf  ;;  %v1532_v13 = vand.u32 2147483648, %v1526_v56  ;;  %vm1531_vm12 = vcmp.eq.f32.partialorder %v1526_v56, 0.0 }
 0x8d0   : > { %v1563_v57 = vpop.permute.xlu1 %1562 }
 0x8d2   : > { %v1568_v62 = vpop.permute.xlu0 %1567 }
 0x8d4   : > { %v1573_v3 = vpop.permute.xlu1 %1572 }
 0x8d6   : > { %v1578_v7 = vpop.permute.xlu0 %1577 }
 0x8d8   : > { %v1583_v8 = vpop.permute.xlu1 %1582 }
 0x8da   : > { %v1588_v9 = vpop.permute.xlu0 %1587 }
 0x8dc   : > { %v3823_v10 = vpop.eup %3822  ;;  %v1593_v17 = vpop.permute.xlu1 %1592 }
 0x8dd   : > { %v1528_v12 = vmul.f32 %v3823_v10, %v1526_v56 }
 0x8de   : > { %v1598_v18 = vpop.permute.xlu0 %1597 }
 0x8df   : > { %v1530_v16 = vsel %vm1529_vm11, %v1526_v56, %v1528_v12 }
 0x8e0   : > { %v1533_v20 = vsel %vm1531_vm12, %v1532_v13, %v1530_v16  ;;  %v1611_v24 = vpop.permute.xlu1 %1610 }
 0x8e1   : > { %v1534_v22 = vadd.f32 1e-08, %v1533_v20 }
 0x8e2   : > { %v1616_v25 = vpop.permute.xlu0 %1615 }
 0x8e3   : > { %v1550_v23 = vrot.slane %v1534_v22, %v4469_v21 }
 0x8e4   : > { %v1621_v26 = vpop.permute.xlu1 %1620 }
 0x8e5   : > { %3824 = vrcp.f32 %v1550_v23 }
 0x8e6   : > { %v1626_v27 = vpop.permute.xlu0 %1625 }
 0x8e8   : > { %v1631_v32 = vpop.permute.xlu1 %1630 }
 0x8ea   : > { %v1636_v33 = vpop.permute.xlu0 %1635 }
 0x8ec   : > { %v1641_v54 = vpop.permute.xlu1 %1640 }
 0x8ee   : > { %v1646_v4 = vpop.permute.xlu0 %1645 }
 0x8f2   : > { %v3825_v34 = vpop.eup %3824 }
 0x8f3   : > { %v1552_v40 = vmul.f32 %v3825_v34, %v1539_v28  ;;  %v1553_v41 = vmul.f32 %v3825_v34, %v1540_v29  ;;  %v1554_v38 = vmul.f32 %v3825_v34, %v1541_v30  ;;  %v1555_v42 = vmul.f32 %v3825_v34, %v1542_v31 }
 0x8f4   : > { %v1556_v44 = vmul.f32 %v3825_v34, %v1543_v35  ;;  %v1557_v45 = vmul.f32 %v3825_v34, %v1544_v36  ;;  %v1558_v43 = vmul.f32 %v3825_v34, %v1545_v37  ;;  %v1559_v46 = vmul.f32 %v3825_v34, %v1546_v39  ;;  %1672 = sbr.rel (%p3538_p4) target bundleno = 2518 (0x9d6), region = 116 }
 0x8f5   : > { %v1600_v50 = vmul.f32 %v1563_v57, %v1552_v40  ;;  %v1601_v47 = vmul.f32 %v1568_v62, %v1553_v41  ;;  %v1602_v5 = vmul.f32 %v1573_v3, %v1554_v38  ;;  %v1603_v48 = vmul.f32 %v1578_v7, %v1555_v42 }
 0x8f6   : > { %v1604_v49 = vmul.f32 %v1583_v8, %v1556_v44  ;;  %v1605_v58 = vmul.f32 %v1588_v9, %v1557_v45  ;;  %v1606_v51 = vmul.f32 %v1593_v17, %v1558_v43  ;;  %v1607_v15 = vmul.f32 %v1598_v18, %v1559_v46 }
 0x8f7   : > { %v4481_v52 = vadd.f32 %v1611_v24, %v1600_v50  ;;  %v4483_v14 = vadd.f32 %v1616_v25, %v1601_v47  ;;  %v4485_v19 = vadd.f32 %v1621_v26, %v1602_v5  ;;  %v4487_v53 = vadd.f32 %v1626_v27, %v1603_v48 }
 0x8f8   : > { %v4489_v55 = vadd.f32 %v1631_v32, %v1604_v49  ;;  %v4491_v56 = vadd.f32 %v1636_v33, %v1605_v58  ;;  %v4493_v57 = vadd.f32 %v1641_v54, %v1606_v51  ;;  %v4495_v62 = vadd.f32 %v1646_v4, %v1607_v15 }
 0x8f9   : > { %v3541_v3 = vld [vmem:[%s4234_s17 + $0x90] sm:$0xff]  ;;  %v3539_v7 = vld [vmem:[%s4234_s17 + $0x80] sm:$0xff]  ;;  %v3973_v8 = vmov 0   ;;  %v3542_v9 = vld [vmem:[%s4234_s17 + $0x98] sm:$0xff] }
 0x8fa   : > { %3827 = vset.pattern.permute.xlu1 %v3973_v8  ;;  %3826 = vset.pattern.permute.xlu0 %v3973_v8  ;;  %v3540_v10 = vld [vmem:[%s4234_s17 + $0x88] sm:$0xff]  ;;  %v3543_v12 = vld [vmem:[%s4234_s17 + $0xa0] sm:$0xff]  ;;  %v3546_v13 = vld [vmem:[%s4234_s17 + $0xb8] sm:$0xff] }
 0x8fb   : > { %1694 = vperm.xlu1 %3827, %v3541_v3   ;;  %1684 = vperm.xlu0 %3826, %v3539_v7   ;;  %v3544_v11 = vld [vmem:[%s4234_s17 + $0xa8] sm:$0xff]  ;;  %v3545_v16 = vld [vmem:[%s4234_s17 + $0xb0] sm:$0xff]  ;;  %v1730_v18 = vld [vmem:[%s4234_s17] sm:$0xff] }
 0x8fc   : > { %v1731_v17 = vld [vmem:[%s4234_s17 + $0x8] sm:$0xff]  ;;  %v1733_v20 = vld [vmem:[%s4234_s17 + $0x18] sm:$0xff]  ;;  %v1732_v22 = vld [vmem:[%s4234_s17 + $0x10] sm:$0xff] }
 0x8fd   : > { %v1735_v23 = vld [vmem:[%s4234_s17 + $0x28] sm:$0xff]  ;;  %v1734_v24 = vld [vmem:[%s4234_s17 + $0x20] sm:$0xff]  ;;  %v1737_v25 = vld [vmem:[%s4234_s17 + $0x38] sm:$0xff] }
 0x8fe   : > { %v1736_v26 = vld [vmem:[%s4234_s17 + $0x30] sm:$0xff]  ;;  %v3548_v27 = vld [vmem:[%s4234_s17 + $0x48] sm:$0xff]  ;;  %v3547_v1 = vld [vmem:[%s4234_s17 + $0x40] sm:$0xff] }
 0x8ff   : > { %1699 = vperm.xlu1 %3827, %v3542_v9   ;;  %1689 = vperm.xlu0 %3826, %v3540_v10   ;;  %v3550_v28 = vld [vmem:[%s4234_s17 + $0x58] sm:$0xff]  ;;  %v3549_v29 = vld [vmem:[%s4234_s17 + $0x50] sm:$0xff]  ;;  %v3552_v30 = vld [vmem:[%s4234_s17 + $0x68] sm:$0xff] }
 0x900   : > { %v3551_v31 = vld [vmem:[%s4234_s17 + $0x60] sm:$0xff]  ;;  %v3554_v32 = vld [vmem:[%s4234_s17 + $0x78] sm:$0xff]  ;;  %v3553_v33 = vld [vmem:[%s4234_s17 + $0x70] sm:$0xff] }
 0x901   : > { %v1912_v34 = vld [vmem:[%s5131_s0 + $0x8] sm:$0xff]  ;;  %v1911_v35 = vld [vmem:[%s5131_s0] sm:$0xff]  ;;  %v1914_v36 = vld [vmem:[%s5131_s0 + $0x18] sm:$0xff] }
 0x902   : > { %v1913_v37 = vld [vmem:[%s5131_s0 + $0x10] sm:$0xff]  ;;  %v1916_v39 = vld [vmem:[%s5131_s0 + $0x28] sm:$0xff]  ;;  %v1915_v40 = vld [vmem:[%s5131_s0 + $0x20] sm:$0xff] }
 0x903   : > { %1709 = vperm.xlu1 %3827, %v3544_v11   ;;  %1704 = vperm.xlu0 %3826, %v3543_v12   ;;  %v1918_v41 = vld [vmem:[%s5131_s0 + $0x38] sm:$0xff]  ;;  %v1917_v38 = vld [vmem:[%s5131_s0 + $0x30] sm:$0xff] }
 0x907   : > { %1719 = vperm.xlu1 %3827, %v3546_v13   ;;  %1714 = vperm.xlu0 %3826, %v3545_v16  }
 0x90b   : > { %1740 = vrot.lane.b32.xlu1 %v4483_v14, %s3974_s29  ;;  %1738 = vrot.lane.b32.xlu0 %v4481_v52, %s3974_s29 }
 0x90f   : > { %1744 = vrot.lane.b32.xlu1 %v4487_v53, %s3974_s29  ;;  %1742 = vrot.lane.b32.xlu0 %v4485_v19, %s3974_s29 }
 0x913   : > { %1748 = vrot.lane.b32.xlu1 %v4491_v56, %s3974_s29  ;;  %1746 = vrot.lane.b32.xlu0 %v4489_v55, %s3974_s29 }
 0x917   : > { %1752 = vrot.lane.b32.xlu1 %v4495_v62, %s3974_s29  ;;  %1750 = vrot.lane.b32.xlu0 %v4493_v57, %s3974_s29 }
 0x91b   : > { %1771 = vperm.xlu1 %3827, %v1731_v17   ;;  %1766 = vperm.xlu0 %3826, %v1730_v18  }
 0x91f   : > { %1781 = vperm.xlu1 %3827, %v1733_v20   ;;  %1776 = vperm.xlu0 %3826, %v1732_v22  }
 0x923   : > { %1791 = vperm.xlu1 %3827, %v1735_v23   ;;  %1786 = vperm.xlu0 %3826, %v1734_v24  }
 0x927   : > { %1801 = vperm.xlu1 %3827, %v1737_v25   ;;  %1796 = vperm.xlu0 %3826, %v1736_v26  }
 0x92b   : > { %1831 = vrot.lane.b32.xlu1 %v4483_v14, %s3975_s20  ;;  %1829 = vrot.lane.b32.xlu0 %v4481_v52, %s3975_s20 }
 0x92f   : > { %1835 = vrot.lane.b32.xlu1 %v4487_v53, %s3975_s20  ;;  %1833 = vrot.lane.b32.xlu0 %v4485_v19, %s3975_s20 }
 0x933   : > { %1839 = vrot.lane.b32.xlu1 %v4491_v56, %s3975_s20  ;;  %1837 = vrot.lane.b32.xlu0 %v4489_v55, %s3975_s20 }
 0x937   : > { %1862 = vperm.xlu1 %3827, %v3548_v27   ;;  %1857 = vperm.xlu0 %3826, %v3547_v1  }
 0x93b   : > { %1872 = vperm.xlu1 %3827, %v3550_v28   ;;  %1867 = vperm.xlu0 %3826, %v3549_v29  }
 0x93f   : > { %1882 = vperm.xlu1 %3827, %v3552_v30   ;;  %1877 = vperm.xlu0 %3826, %v3551_v31  }
 0x943   : > { %1892 = vperm.xlu1 %3827, %v3554_v32   ;;  %1887 = vperm.xlu0 %3826, %v3553_v33  }
 0x947   : > { %1843 = vrot.lane.b32.xlu1 %v4495_v62, %s3975_s20  ;;  %1841 = vrot.lane.b32.xlu0 %v4493_v57, %s3975_s20 }
 0x94b   : > { %1926 = vperm.xlu1 %3827, %v1912_v34   ;;  %1921 = vperm.xlu0 %3826, %v1911_v35  }
 0x94f   : > { %1936 = vperm.xlu1 %3827, %v1914_v36   ;;  %1931 = vperm.xlu0 %3826, %v1913_v37  }
 0x953   : > { %1946 = vperm.xlu1 %3827, %v1916_v39   ;;  %1941 = vperm.xlu0 %3826, %v1915_v40  }
 0x957   : > { %1956 = vperm.xlu1 %3827, %v1918_v41   ;;  %1951 = vperm.xlu0 %3826, %v1917_v38  }
 0x976   : > { %v1695_v42 = vpop.permute.xlu1 %1694  ;;  %v1685_v44 = vpop.permute.xlu0 %1684 }
 0x977   : > { %v1722_v39 = vmul.f32 %v1685_v44, %v4481_v52 }
 0x97a   : > { %v1700_v45 = vpop.permute.xlu1 %1699  ;;  %v1690_v43 = vpop.permute.xlu0 %1689 }
 0x97b   : > { %v1723_v40 = vmul.f32 %v1690_v43, %v4483_v14 }
 0x97e   : > { %v1710_v46 = vpop.permute.xlu1 %1709  ;;  %v1705_v50 = vpop.permute.xlu0 %1704 }
 0x982   : > { %v4546_v47 = vpop.permute.xlu1 %1719  ;;  %v4548_v5 = vpop.permute.xlu0 %1714 }
 0x986   : > { %v1741_v48 = vpop.permute.xlu1 %1740  ;;  %v1739_v49 = vpop.permute.xlu0 %1738 }
 0x987   : > { %v1757_v30 = vsel %vm1443_vm4, %v1741_v48, 0.0  ;;  %v1756_v31 = vsel %vm1443_vm4, %v1739_v49, 0.0  ;;  %v1724_v48 = vmul.f32 %v1695_v42, %v4485_v19  ;;  %v1725_v49 = vmul.f32 %v1700_v45, %v4487_v53 }
 0x98a   : > { %v1745_v58 = vpop.permute.xlu1 %1744  ;;  %v1743_v51 = vpop.permute.xlu0 %1742 }
 0x98e   : > { %v1749_v15 = vpop.permute.xlu1 %1748  ;;  %v1747_v54 = vpop.permute.xlu0 %1746 }
 0x98f   : > { %v1761_v43 = vsel %vm1443_vm4, %v1749_v15, 0.0  ;;  %v1760_v42 = vsel %vm1443_vm4, %v1747_v54, 0.0 }
 0x992   : > { %v1753_v4 = vpop.permute.xlu1 %1752  ;;  %v1751_v3 = vpop.permute.xlu0 %1750 }
 0x996   : > { %v1772_v7 = vpop.permute.xlu1 %1771  ;;  %v1767_v8 = vpop.permute.xlu0 %1766 }
 0x997   : > { %v1805_v34 = vmul.f32 %v1772_v7, %v1757_v30  ;;  %v1804_v35 = vmul.f32 %v1767_v8, %v1756_v31  ;;  %v1759_v7 = vsel %vm1443_vm4, %v1745_v58, 0.0  ;;  %v1758_v8 = vsel %vm1443_vm4, %v1743_v51, 0.0 }
 0x999   : > { %v1813_v31 = vadd.f32 %v1805_v34, %v1723_v40  ;;  %v1727_v34 = vmul.f32 %v1710_v46, %v4491_v56 }
 0x99a   : > { %v1782_v9 = vpop.permute.xlu1 %1781  ;;  %v1777_v10 = vpop.permute.xlu0 %1776 }
 0x99b   : > { %v1807_v0 = vmul.f32 %v1782_v9, %v1759_v7  ;;  %v1806_v44 = vmul.f32 %v1777_v10, %v1758_v8  ;;  %v1726_v9 = vmul.f32 %v1705_v50, %v4489_v55  ;;  %v1728_v8 = vmul.f32 %v4548_v5, %v4493_v57 }
 0x99d   : > { %v1814_v54 = vadd.f32 %v1806_v44, %v1724_v48 }
 0x99e   : > { %v1792_v11 = vpop.permute.xlu1 %1791  ;;  %v1787_v12 = vpop.permute.xlu0 %1786 }
 0x99f   : > { %v1809_v10 = vmul.f32 %v1792_v11, %v1761_v43 }
 0x9a2   : > { %v4550_v13 = vpop.permute.xlu1 %1801  ;;  %v4552_v16 = vpop.permute.xlu0 %1796 }
 0x9a6   : > { %v1832_v17 = vpop.permute.xlu1 %1831  ;;  %v1830_v18 = vpop.permute.xlu0 %1829 }
 0x9a7   : > { %v1848_v36 = vsel %vm1438_vm3, %v1832_v17, 0.0  ;;  %v1847_v37 = vsel %vm1438_vm3, %v1830_v18, 0.0  ;;  %v1812_v18 = vadd.f32 %v1804_v35, %v1722_v39  ;;  %v1808_v35 = vmul.f32 %v1787_v12, %v1760_v42 }
 0x9a8   : > { %v1815_v39 = vadd.f32 %v1807_v0, %v1725_v49  ;;  %v1729_v49 = vmul.f32 %v4546_v47, %v4495_v62 }
 0x9aa   : > { %v1836_v20 = vpop.permute.xlu1 %1835  ;;  %v1834_v22 = vpop.permute.xlu0 %1833 }
 0x9ab   : > { %v1850_v45 = vsel %vm1438_vm3, %v1836_v20, 0.0  ;;  %v1849_v58 = vsel %vm1438_vm3, %v1834_v22, 0.0  ;;  %v1763_v20 = vsel %vm1443_vm4, %v1753_v4, 0.0  ;;  %v1762_v22 = vsel %vm1443_vm4, %v1751_v3, 0.0 }
 0x9ae   : > { %v1840_v23 = vpop.permute.xlu1 %1839  ;;  %v1838_v24 = vpop.permute.xlu0 %1837 }
 0x9af   : > { %v1851_v46 = vsel %vm1438_vm3, %v1838_v24, 0.0  ;;  %v1810_v24 = vmul.f32 %v4552_v16, %v1762_v22 }
 0x9b2   : > { %v1863_v25 = vpop.permute.xlu1 %1862  ;;  %v1858_v26 = vpop.permute.xlu0 %1857 }
 0x9b3   : > { %v1896_v41 = vmul.f32 %v1863_v25, %v1848_v36  ;;  %v1895_v38 = vmul.f32 %v1858_v26, %v1847_v37 }
 0x9b5   : > { %v1904_v26 = vadd.f32 %v1896_v41, %v1813_v31  ;;  %v1903_v36 = vadd.f32 %v1895_v38, %v1812_v18  ;;  %v1816_v41 = vadd.f32 %v1808_v35, %v1726_v9 }
 0x9b6   : > { %v1873_v27 = vpop.permute.xlu1 %1872  ;;  %v1868_v1 = vpop.permute.xlu0 %1867 }
 0x9b7   : > { %v1898_v25 = vmul.f32 %v1873_v27, %v1850_v45  ;;  %v1897_v51 = vmul.f32 %v1868_v1, %v1849_v58  ;;  %v1852_v27 = vsel %vm1438_vm3, %v1840_v23, 0.0  ;;  %v1817_v1 = vadd.f32 %v1809_v10, %v1727_v34 }
 0x9b8   : > { %v1811_v23 = vmul.f32 %v4550_v13, %v1763_v20  ;;  %v1818_v13 = vadd.f32 %v1810_v24, %v1728_v8 }
 0x9b9   : > { %v1906_v0 = vadd.f32 %v1898_v25, %v1815_v39  ;;  %v1905_v12 = vadd.f32 %v1897_v51, %v1814_v54 }
 0x9ba   : > { %v1883_v28 = vpop.permute.xlu1 %1882  ;;  %v1878_v29 = vpop.permute.xlu0 %1877  ;;  %v1819_v42 = vadd.f32 %v1811_v23, %v1729_v49 }
 0x9bb   : > { %v1900_v50 = vmul.f32 %v1883_v28, %v1852_v27  ;;  %v1899_v11 = vmul.f32 %v1878_v29, %v1851_v46 }
 0x9be   : > { %v1893_v32 = vpop.permute.xlu1 %1892  ;;  %v1888_v33 = vpop.permute.xlu0 %1887 }
 0x9c2   : > { %v1844_v17 = vpop.permute.xlu1 %1843  ;;  %v1842_v30 = vpop.permute.xlu0 %1841 }
 0x9c3   : > { %v1854_v4 = vsel %vm1438_vm3, %v1844_v17, 0.0  ;;  %v1853_v3 = vsel %vm1438_vm3, %v1842_v30, 0.0  ;;  %v1908_v17 = vadd.f32 %v1900_v50, %v1817_v1  ;;  %v1907_v30 = vadd.f32 %v1899_v11, %v1816_v41 }
 0x9c4   : > { %v1902_v31 = vmul.f32 %v1893_v32, %v1854_v4  ;;  %v1901_v18 = vmul.f32 %v1888_v33, %v1853_v3 }
 0x9c6   : > { %v1927_v15 = vpop.permute.xlu1 %1926  ;;  %v1922_v37 = vpop.permute.xlu0 %1921  ;;  %v1910_v58 = vadd.f32 %v1902_v31, %v1819_v42  ;;  %v1909_v25 = vadd.f32 %v1901_v18, %v1818_v13 }
 0x9c7   : > { %v1960_v40 = vadd.f32 %v1927_v15, %v1904_v26  ;;  %v1959_v7 = vadd.f32 %v1922_v37, %v1903_v36 }
 0x9c9   : > { %1968 = vst [vmem:[#allocation4 + $0x8] sm:$0xff] %v1960_v40  ;;  %1967 = vst [vmem:[#allocation4] sm:$0xff] %v1959_v7 }
 0x9ca   : > { %v1937_v38 = vpop.permute.xlu1 %1936  ;;  %v1932_v48 = vpop.permute.xlu0 %1931 }
 0x9cb   : > { %v1962_v28 = vadd.f32 %v1937_v38, %v1906_v0  ;;  %v1961_v29 = vadd.f32 %v1932_v48, %v1905_v12 }
 0x9cd   : > { %1970 = vst [vmem:[#allocation4 + $0x18] sm:$0xff] %v1962_v28  ;;  %1969 = vst [vmem:[#allocation4 + $0x20] sm:$0xff] %v1961_v29 }
 0x9ce   : > { %v1947_v44 = vpop.permute.xlu1 %1946  ;;  %v1942_v43 = vpop.permute.xlu0 %1941 }
 0x9cf   : > { %v1964_v45 = vadd.f32 %v1947_v44, %v1908_v17  ;;  %v1963_v16 = vadd.f32 %v1942_v43, %v1907_v30 }
 0x9d1   : > { %1972 = vst [vmem:[#allocation4 + $0x30] sm:$0xff] %v1964_v45  ;;  %1971 = vst [vmem:[#allocation4 + $0x28] sm:$0xff] %v1963_v16 }
 0x9d2   : > { %v1957_v47 = vpop.permute.xlu1 %1956  ;;  %v1952_v51 = vpop.permute.xlu0 %1951 }
 0x9d3   : > { %v1966_v26 = vadd.f32 %v1957_v47, %v1910_v58  ;;  %v1965_v5 = vadd.f32 %v1952_v51, %v1909_v25 }
 0x9d5   : > { %1974 = vst [vmem:[#allocation4 + $0x38] sm:$0xff] %v1966_v26  ;;  %1973 = vst [vmem:[#allocation4 + $0x10] sm:$0xff] %v1965_v5 }
 0x9d6 PF: > { %p3555_p5 = scmp.ne.s32.totalorder %s5165_s1, 1 }
 0x9d7   : > { %s3977_s27 = smov (!%p3555_p5), 4   ;;  %s3978_s28 = smov (!%p3555_p5), 2  }
 0x9d8   : > { %1978 = sbr.rel (%p3555_p5) target bundleno = 2746 (0xaba), region = 120  ;;  %s5132_s23 = sld [smem:[#allocation23_spill]] (!%p3555_p5) }
 0x9dd   : > { %v3558_v32 = vld [vmem:[%s4234_s17 + $0x90] sm:$0xff]  ;;  %v3556_v33 = vld [vmem:[%s4234_s17 + $0x80] sm:$0xff]  ;;  %v3976_v36 = vmov 0   ;;  %v3559_v34 = vld [vmem:[%s4234_s17 + $0x98] sm:$0xff] }
 0x9de   : > { %3829 = vset.pattern.permute.xlu1 %v3976_v36  ;;  %3828 = vset.pattern.permute.xlu0 %v3976_v36  ;;  %v3557_v9 = vld [vmem:[%s4234_s17 + $0x88] sm:$0xff]  ;;  %v3560_v35 = vld [vmem:[%s4234_s17 + $0xa0] sm:$0xff]  ;;  %v3563_v15 = vld [vmem:[%s4234_s17 + $0xb8] sm:$0xff] }
 0x9df   : > { %2000 = vperm.xlu1 %3829, %v3558_v32   ;;  %1990 = vperm.xlu0 %3828, %v3556_v33   ;;  %v3561_v10 = vld [vmem:[%s4234_s17 + $0xa8] sm:$0xff]  ;;  %v3562_v37 = vld [vmem:[%s4234_s17 + $0xb0] sm:$0xff]  ;;  %v2036_v54 = vld [vmem:[%s4234_s17] sm:$0xff] }
 0x9e0   : > { %v2037_v39 = vld [vmem:[%s4234_s17 + $0x8] sm:$0xff]  ;;  %v2039_v40 = vld [vmem:[%s4234_s17 + $0x18] sm:$0xff]  ;;  %v2038_v7 = vld [vmem:[%s4234_s17 + $0x10] sm:$0xff] }
 0x9e1   : > { %v2041_v20 = vld [vmem:[%s4234_s17 + $0x28] sm:$0xff]  ;;  %v2040_v22 = vld [vmem:[%s4234_s17 + $0x20] sm:$0xff]  ;;  %v2043_v27 = vld [vmem:[%s4234_s17 + $0x38] sm:$0xff] }
 0x9e2   : > { %v2042_v46 = vld [vmem:[%s4234_s17 + $0x30] sm:$0xff]  ;;  %v3565_v50 = vld [vmem:[%s4234_s17 + $0x48] sm:$0xff]  ;;  %v3564_v11 = vld [vmem:[%s4234_s17 + $0x40] sm:$0xff] }
 0x9e3   : > { %2005 = vperm.xlu1 %3829, %v3559_v34   ;;  %1995 = vperm.xlu0 %3828, %v3557_v9   ;;  %v3567_v0 = vld [vmem:[%s4234_s17 + $0x58] sm:$0xff]  ;;  %v3566_v12 = vld [vmem:[%s4234_s17 + $0x50] sm:$0xff]  ;;  %v3569_v1 = vld [vmem:[%s4234_s17 + $0x68] sm:$0xff] }
 0x9e4   : > { %v3568_v41 = vld [vmem:[%s4234_s17 + $0x60] sm:$0xff]  ;;  %v3571_v4 = vld [vmem:[%s4234_s17 + $0x78] sm:$0xff]  ;;  %v3570_v3 = vld [vmem:[%s4234_s17 + $0x70] sm:$0xff] }
 0x9e5   : > { %v2218_v38 = vld [vmem:[%s5132_s23 + $0x8] sm:$0xff]  ;;  %v2217_v48 = vld [vmem:[%s5132_s23] sm:$0xff]  ;;  %v2220_v23 = vld [vmem:[%s5132_s23 + $0x18] sm:$0xff] }
 0x9e6   : > { %v2219_v24 = vld [vmem:[%s5132_s23 + $0x10] sm:$0xff]  ;;  %v2222_v28 = vld [vmem:[%s5132_s23 + $0x28] sm:$0xff]  ;;  %v2221_v29 = vld [vmem:[%s5132_s23 + $0x20] sm:$0xff] }
 0x9e7   : > { %2015 = vperm.xlu1 %3829, %v3561_v10   ;;  %2010 = vperm.xlu0 %3828, %v3560_v35   ;;  %v2224_v49 = vld [vmem:[%s5132_s23 + $0x38] sm:$0xff]  ;;  %v2223_v8 = vld [vmem:[%s5132_s23 + $0x30] sm:$0xff] }
 0x9eb   : > { %2025 = vperm.xlu1 %3829, %v3563_v15   ;;  %2020 = vperm.xlu0 %3828, %v3562_v37  }
 0x9ef   : > { %2046 = vrot.lane.b32.xlu1 %v4483_v14, %s3977_s27  ;;  %2044 = vrot.lane.b32.xlu0 %v4481_v52, %s3977_s27 }
 0x9f3   : > { %2050 = vrot.lane.b32.xlu1 %v4487_v53, %s3977_s27  ;;  %2048 = vrot.lane.b32.xlu0 %v4485_v19, %s3977_s27 }
 0x9f7   : > { %2054 = vrot.lane.b32.xlu1 %v4491_v56, %s3977_s27  ;;  %2052 = vrot.lane.b32.xlu0 %v4489_v55, %s3977_s27 }
 0x9fb   : > { %2058 = vrot.lane.b32.xlu1 %v4495_v62, %s3977_s27  ;;  %2056 = vrot.lane.b32.xlu0 %v4493_v57, %s3977_s27 }
 0x9ff   : > { %2077 = vperm.xlu1 %3829, %v2037_v39   ;;  %2072 = vperm.xlu0 %3828, %v2036_v54  }
 0xa03   : > { %2087 = vperm.xlu1 %3829, %v2039_v40   ;;  %2082 = vperm.xlu0 %3828, %v2038_v7  }
 0xa07   : > { %2097 = vperm.xlu1 %3829, %v2041_v20   ;;  %2092 = vperm.xlu0 %3828, %v2040_v22  }
 0xa0b   : > { %2107 = vperm.xlu1 %3829, %v2043_v27   ;;  %2102 = vperm.xlu0 %3828, %v2042_v46  }
 0xa0f   : > { %2137 = vrot.lane.b32.xlu1 %v4483_v14, %s3978_s28  ;;  %2135 = vrot.lane.b32.xlu0 %v4481_v52, %s3978_s28 }
 0xa13   : > { %2141 = vrot.lane.b32.xlu1 %v4487_v53, %s3978_s28  ;;  %2139 = vrot.lane.b32.xlu0 %v4485_v19, %s3978_s28 }
 0xa17   : > { %2145 = vrot.lane.b32.xlu1 %v4491_v56, %s3978_s28  ;;  %2143 = vrot.lane.b32.xlu0 %v4489_v55, %s3978_s28 }
 0xa1b   : > { %2168 = vperm.xlu1 %3829, %v3565_v50   ;;  %2163 = vperm.xlu0 %3828, %v3564_v11  }
 0xa1f   : > { %2178 = vperm.xlu1 %3829, %v3567_v0   ;;  %2173 = vperm.xlu0 %3828, %v3566_v12  }
 0xa23   : > { %2188 = vperm.xlu1 %3829, %v3569_v1   ;;  %2183 = vperm.xlu0 %3828, %v3568_v41  }
 0xa27   : > { %2198 = vperm.xlu1 %3829, %v3571_v4   ;;  %2193 = vperm.xlu0 %3828, %v3570_v3  }
 0xa2b   : > { %2149 = vrot.lane.b32.xlu1 %v4495_v62, %s3978_s28  ;;  %2147 = vrot.lane.b32.xlu0 %v4493_v57, %s3978_s28 }
 0xa2f   : > { %2232 = vperm.xlu1 %3829, %v2218_v38   ;;  %2227 = vperm.xlu0 %3828, %v2217_v48  }
 0xa33   : > { %2242 = vperm.xlu1 %3829, %v2220_v23   ;;  %2237 = vperm.xlu0 %3828, %v2219_v24  }
 0xa37   : > { %2252 = vperm.xlu1 %3829, %v2222_v28   ;;  %2247 = vperm.xlu0 %3828, %v2221_v29  }
 0xa3b   : > { %2262 = vperm.xlu1 %3829, %v2224_v49   ;;  %2257 = vperm.xlu0 %3828, %v2223_v8  }
 0xa5a   : > { %v2001_v31 = vpop.permute.xlu1 %2000  ;;  %v1991_v18 = vpop.permute.xlu0 %1990 }
 0xa5b   : > { %v2028_v24 = vmul.f32 %v1991_v18, %v4481_v52  ;;  %v2030_v8 = vmul.f32 %v2001_v31, %v4485_v19 }
 0xa5e   : > { %v2006_v17 = vpop.permute.xlu1 %2005  ;;  %v1996_v30 = vpop.permute.xlu0 %1995 }
 0xa5f   : > { %v2029_v28 = vmul.f32 %v1996_v30, %v4483_v14 }
 0xa62   : > { %v2016_v44 = vpop.permute.xlu1 %2015  ;;  %v2011_v43 = vpop.permute.xlu0 %2010 }
 0xa66   : > { %v4647_v42 = vpop.permute.xlu1 %2025  ;;  %v4649_v13 = vpop.permute.xlu0 %2020 }
 0xa6a   : > { %v2047_v45 = vpop.permute.xlu1 %2046  ;;  %v2045_v16 = vpop.permute.xlu0 %2044 }
 0xa6b   : > { %v2063_v12 = vsel %vm1448_vm5, %v2047_v45, 0.0  ;;  %v2062_v1 = vsel %vm1448_vm5, %v2045_v16, 0.0  ;;  %v2031_v45 = vmul.f32 %v2006_v17, %v4487_v53 }
 0xa6e   : > { %v2051_v58 = vpop.permute.xlu1 %2050  ;;  %v2049_v25 = vpop.permute.xlu0 %2048 }
 0xa6f   : > { %v2065_v16 = vsel %vm1448_vm5, %v2051_v58, 0.0 }
 0xa72   : > { %v2055_v47 = vpop.permute.xlu1 %2054  ;;  %v2053_v51 = vpop.permute.xlu0 %2052 }
 0xa73   : > { %v2067_v30 = vsel %vm1448_vm5, %v2055_v47, 0.0  ;;  %v2066_v31 = vsel %vm1448_vm5, %v2053_v51, 0.0 }
 0xa76   : > { %v2059_v26 = vpop.permute.xlu1 %2058  ;;  %v2057_v5 = vpop.permute.xlu0 %2056 }
 0xa7a   : > { %v2078_v32 = vpop.permute.xlu1 %2077  ;;  %v2073_v33 = vpop.permute.xlu0 %2072 }
 0xa7b   : > { %v2111_v3 = vmul.f32 %v2078_v32, %v2063_v12  ;;  %v2110_v38 = vmul.f32 %v2073_v33, %v2062_v1  ;;  %v2064_v32 = vsel %vm1448_vm5, %v2049_v25, 0.0 }
 0xa7d   : > { %v2119_v12 = vadd.f32 %v2111_v3, %v2029_v28  ;;  %v2033_v3 = vmul.f32 %v2016_v44, %v4491_v56 }
 0xa7e   : > { %v2088_v36 = vpop.permute.xlu1 %2087  ;;  %v2083_v34 = vpop.permute.xlu0 %2082 }
 0xa7f   : > { %v2113_v1 = vmul.f32 %v2088_v36, %v2065_v16  ;;  %v2112_v18 = vmul.f32 %v2083_v34, %v2064_v32  ;;  %v2032_v36 = vmul.f32 %v2011_v43, %v4489_v55  ;;  %v2035_v32 = vmul.f32 %v4647_v42, %v4495_v62 }
 0xa81   : > { %v2120_v51 = vadd.f32 %v2112_v18, %v2030_v8 }
 0xa82   : > { %v2098_v9 = vpop.permute.xlu1 %2097  ;;  %v2093_v10 = vpop.permute.xlu0 %2092 }
 0xa83   : > { %v2115_v34 = vmul.f32 %v2098_v9, %v2067_v30 }
 0xa86   : > { %v4651_v35 = vpop.permute.xlu1 %2107  ;;  %v4653_v15 = vpop.permute.xlu0 %2102 }
 0xa8a   : > { %v2138_v37 = vpop.permute.xlu1 %2137  ;;  %v2136_v39 = vpop.permute.xlu0 %2135 }
 0xa8b   : > { %v2154_v48 = vsel %vm1443_vm4, %v2138_v37, 0.0  ;;  %v2153_v23 = vsel %vm1443_vm4, %v2136_v39, 0.0  ;;  %v2118_v39 = vadd.f32 %v2110_v38, %v2028_v24  ;;  %v2114_v38 = vmul.f32 %v2093_v10, %v2066_v31 }
 0xa8c   : > { %v2121_v24 = vadd.f32 %v2113_v1, %v2031_v45 }
 0xa8e   : > { %v2142_v54 = vpop.permute.xlu1 %2141  ;;  %v2140_v40 = vpop.permute.xlu0 %2139 }
 0xa8f   : > { %v2156_v17 = vsel %vm1443_vm4, %v2142_v54, 0.0  ;;  %v2155_v58 = vsel %vm1443_vm4, %v2140_v40, 0.0  ;;  %v2069_v54 = vsel %vm1448_vm5, %v2059_v26, 0.0  ;;  %v2068_v40 = vsel %vm1448_vm5, %v2057_v5, 0.0 }
 0xa92   : > { %v2146_v7 = vpop.permute.xlu1 %2145  ;;  %v2144_v20 = vpop.permute.xlu0 %2143 }
 0xa93   : > { %v2157_v44 = vsel %vm1443_vm4, %v2144_v20, 0.0  ;;  %v2116_v20 = vmul.f32 %v4653_v15, %v2068_v40 }
 0xa96   : > { %v2169_v22 = vpop.permute.xlu1 %2168  ;;  %v2164_v27 = vpop.permute.xlu0 %2163 }
 0xa97   : > { %v2202_v29 = vmul.f32 %v2169_v22, %v2154_v48  ;;  %v2201_v49 = vmul.f32 %v2164_v27, %v2153_v23 }
 0xa99   : > { %v2210_v27 = vadd.f32 %v2202_v29, %v2119_v12  ;;  %v2209_v48 = vadd.f32 %v2201_v49, %v2118_v39  ;;  %v2123_v29 = vadd.f32 %v2115_v34, %v2033_v3  ;;  %v2122_v49 = vadd.f32 %v2114_v38, %v2032_v36 }
 0xa9a   : > { %v2179_v46 = vpop.permute.xlu1 %2178  ;;  %v2174_v50 = vpop.permute.xlu0 %2173  ;;  %v2034_v12 = vmul.f32 %v4649_v13, %v4493_v57 }
 0xa9b   : > { %v2204_v22 = vmul.f32 %v2179_v46, %v2156_v17  ;;  %v2203_v25 = vmul.f32 %v2174_v50, %v2155_v58  ;;  %v2158_v46 = vsel %vm1443_vm4, %v2146_v7, 0.0  ;;  %v2117_v7 = vmul.f32 %v4651_v35, %v2069_v54 }
 0xa9c   : > { %v2124_v35 = vadd.f32 %v2116_v20, %v2034_v12 }
 0xa9d   : > { %v2212_v10 = vadd.f32 %v2204_v22, %v2121_v24  ;;  %v2211_v50 = vadd.f32 %v2203_v25, %v2120_v51  ;;  %v2125_v31 = vadd.f32 %v2117_v7, %v2035_v32 }
 0xa9e   : > { %v2189_v11 = vpop.permute.xlu1 %2188  ;;  %v2184_v0 = vpop.permute.xlu0 %2183 }
 0xa9f   : > { %v2206_v43 = vmul.f32 %v2189_v11, %v2158_v46  ;;  %v2205_v9 = vmul.f32 %v2184_v0, %v2157_v44 }
 0xaa2   : > { %v2199_v41 = vpop.permute.xlu1 %2198  ;;  %v2194_v4 = vpop.permute.xlu0 %2193 }
 0xaa6   : > { %v2150_v33 = vpop.permute.xlu1 %2149  ;;  %v2148_v37 = vpop.permute.xlu0 %2147 }
 0xaa7   : > { %v2160_v26 = vsel %vm1443_vm4, %v2150_v33, 0.0  ;;  %v2159_v5 = vsel %vm1443_vm4, %v2148_v37, 0.0  ;;  %v2214_v33 = vadd.f32 %v2206_v43, %v2123_v29  ;;  %v2213_v37 = vadd.f32 %v2205_v9, %v2122_v49 }
 0xaa8   : > { %v2208_v39 = vmul.f32 %v2199_v41, %v2160_v26  ;;  %v2207_v1 = vmul.f32 %v2194_v4, %v2159_v5 }
 0xaaa   : > { %v2233_v47 = vpop.permute.xlu1 %2232  ;;  %v2228_v23 = vpop.permute.xlu0 %2227  ;;  %v2216_v58 = vadd.f32 %v2208_v39, %v2125_v31  ;;  %v2215_v22 = vadd.f32 %v2207_v1, %v2124_v35 }
 0xaab   : > { %v2266_v28 = vadd.f32 %v2233_v47, %v2210_v27  ;;  %v2265_v16 = vadd.f32 %v2228_v23, %v2209_v48 }
 0xaad   : > { %2274 = vst [vmem:[#allocation4 + $0x8] sm:$0xff] %v2266_v28  ;;  %2273 = vst [vmem:[#allocation4] sm:$0xff] %v2265_v16 }
 0xaae   : > { %v2243_v8 = vpop.permute.xlu1 %2242  ;;  %v2238_v45 = vpop.permute.xlu0 %2237 }
 0xaaf   : > { %v2268_v11 = vadd.f32 %v2243_v8, %v2212_v10  ;;  %v2267_v0 = vadd.f32 %v2238_v45, %v2211_v50 }
 0xab1   : > { %2276 = vst [vmem:[#allocation4 + $0x18] sm:$0xff] %v2268_v11  ;;  %2275 = vst [vmem:[#allocation4 + $0x20] sm:$0xff] %v2267_v0 }
 0xab2   : > { %v2253_v18 = vpop.permute.xlu1 %2252  ;;  %v2248_v30 = vpop.permute.xlu0 %2247 }
 0xab3   : > { %v2270_v17 = vadd.f32 %v2253_v18, %v2214_v33  ;;  %v2269_v15 = vadd.f32 %v2248_v30, %v2213_v37 }
 0xab5   : > { %2278 = vst [vmem:[#allocation4 + $0x30] sm:$0xff] %v2270_v17  ;;  %2277 = vst [vmem:[#allocation4 + $0x28] sm:$0xff] %v2269_v15 }
 0xab6   : > { %v2263_v42 = vpop.permute.xlu1 %2262  ;;  %v2258_v25 = vpop.permute.xlu0 %2257 }
 0xab7   : > { %v2272_v27 = vadd.f32 %v2263_v42, %v2216_v58  ;;  %v2271_v13 = vadd.f32 %v2258_v25, %v2215_v22 }
 0xab9   : > { %2280 = vst [vmem:[#allocation4 + $0x38] sm:$0xff] %v2272_v27  ;;  %2279 = vst [vmem:[#allocation4 + $0x10] sm:$0xff] %v2271_v13 }
 0xaba PF: > { %p3572_p6 = scmp.ne.s32.totalorder %s5165_s1, 2 }
 0xabb   : > { %s3980_s1 = smov (!%p3572_p6), 8   ;;  %s3981_s29 = smov (!%p3572_p6), 4  }
 0xabc   : > { %2284 = sbr.rel (%p3572_p6) target bundleno = 2974 (0xb9e), region = 124  ;;  %s5133_s20 = sld [smem:[#allocation23_spill]] (!%p3572_p6) }
 0xac1   : > { %v3575_v41 = vld [vmem:[%s4234_s17 + $0x90] sm:$0xff]  ;;  %v3573_v4 = vld [vmem:[%s4234_s17 + $0x80] sm:$0xff]  ;;  %v3979_v48 = vmov 0   ;;  %v3576_v3 = vld [vmem:[%s4234_s17 + $0x98] sm:$0xff] }
 0xac2   : > { %3831 = vset.pattern.permute.xlu1 %v3979_v48  ;;  %3830 = vset.pattern.permute.xlu0 %v3979_v48  ;;  %v3574_v36 = vld [vmem:[%s4234_s17 + $0x88] sm:$0xff]  ;;  %v3577_v38 = vld [vmem:[%s4234_s17 + $0xa0] sm:$0xff]  ;;  %v3580_v47 = vld [vmem:[%s4234_s17 + $0xb8] sm:$0xff] }
 0xac3   : > { %2306 = vperm.xlu1 %3831, %v3575_v41   ;;  %2296 = vperm.xlu0 %3830, %v3573_v4   ;;  %v3578_v34 = vld [vmem:[%s4234_s17 + $0xa8] sm:$0xff]  ;;  %v3579_v23 = vld [vmem:[%s4234_s17 + $0xb0] sm:$0xff]  ;;  %v2342_v51 = vld [vmem:[%s4234_s17] sm:$0xff] }
 0xac4   : > { %v2343_v24 = vld [vmem:[%s4234_s17 + $0x8] sm:$0xff]  ;;  %v2345_v28 = vld [vmem:[%s4234_s17 + $0x18] sm:$0xff]  ;;  %v2344_v16 = vld [vmem:[%s4234_s17 + $0x10] sm:$0xff] }
 0xac5   : > { %v2347_v54 = vld [vmem:[%s4234_s17 + $0x28] sm:$0xff]  ;;  %v2346_v40 = vld [vmem:[%s4234_s17 + $0x20] sm:$0xff]  ;;  %v2349_v46 = vld [vmem:[%s4234_s17 + $0x38] sm:$0xff] }
 0xac6   : > { %v2348_v44 = vld [vmem:[%s4234_s17 + $0x30] sm:$0xff]  ;;  %v3582_v43 = vld [vmem:[%s4234_s17 + $0x48] sm:$0xff]  ;;  %v3581_v9 = vld [vmem:[%s4234_s17 + $0x40] sm:$0xff] }
 0xac7   : > { %2311 = vperm.xlu1 %3831, %v3576_v3   ;;  %2301 = vperm.xlu0 %3830, %v3574_v36   ;;  %v3584_v10 = vld [vmem:[%s4234_s17 + $0x58] sm:$0xff]  ;;  %v3583_v50 = vld [vmem:[%s4234_s17 + $0x50] sm:$0xff]  ;;  %v3586_v29 = vld [vmem:[%s4234_s17 + $0x68] sm:$0xff] }
 0xac8   : > { %v3585_v49 = vld [vmem:[%s4234_s17 + $0x60] sm:$0xff]  ;;  %v3588_v26 = vld [vmem:[%s4234_s17 + $0x78] sm:$0xff]  ;;  %v3587_v5 = vld [vmem:[%s4234_s17 + $0x70] sm:$0xff] }
 0xac9   : > { %v2524_v8 = vld [vmem:[%s5133_s20 + $0x8] sm:$0xff]  ;;  %v2523_v45 = vld [vmem:[%s5133_s20] sm:$0xff]  ;;  %v2526_v7 = vld [vmem:[%s5133_s20 + $0x18] sm:$0xff] }
 0xaca   : > { %v2525_v20 = vld [vmem:[%s5133_s20 + $0x10] sm:$0xff]  ;;  %v2528_v11 = vld [vmem:[%s5133_s20 + $0x28] sm:$0xff]  ;;  %v2527_v0 = vld [vmem:[%s5133_s20 + $0x20] sm:$0xff] }
 0xacb   : > { %2321 = vperm.xlu1 %3831, %v3578_v34   ;;  %2316 = vperm.xlu0 %3830, %v3577_v38   ;;  %v2530_v32 = vld [vmem:[%s5133_s20 + $0x38] sm:$0xff]  ;;  %v2529_v12 = vld [vmem:[%s5133_s20 + $0x30] sm:$0xff] }
 0xacf   : > { %2331 = vperm.xlu1 %3831, %v3580_v47   ;;  %2326 = vperm.xlu0 %3830, %v3579_v23  }
 0xad3   : > { %2352 = vrot.lane.b32.xlu1 %v4483_v14, %s3980_s1  ;;  %2350 = vrot.lane.b32.xlu0 %v4481_v52, %s3980_s1 }
 0xad7   : > { %2356 = vrot.lane.b32.xlu1 %v4487_v53, %s3980_s1  ;;  %2354 = vrot.lane.b32.xlu0 %v4485_v19, %s3980_s1 }
 0xadb   : > { %2360 = vrot.lane.b32.xlu1 %v4491_v56, %s3980_s1  ;;  %2358 = vrot.lane.b32.xlu0 %v4489_v55, %s3980_s1 }
 0xadf   : > { %2364 = vrot.lane.b32.xlu1 %v4495_v62, %s3980_s1  ;;  %2362 = vrot.lane.b32.xlu0 %v4493_v57, %s3980_s1 }
 0xae3   : > { %2383 = vperm.xlu1 %3831, %v2343_v24   ;;  %2378 = vperm.xlu0 %3830, %v2342_v51  }
 0xae7   : > { %2393 = vperm.xlu1 %3831, %v2345_v28   ;;  %2388 = vperm.xlu0 %3830, %v2344_v16  }
 0xaeb   : > { %2403 = vperm.xlu1 %3831, %v2347_v54   ;;  %2398 = vperm.xlu0 %3830, %v2346_v40  }
 0xaef   : > { %2413 = vperm.xlu1 %3831, %v2349_v46   ;;  %2408 = vperm.xlu0 %3830, %v2348_v44  }
 0xaf3   : > { %2443 = vrot.lane.b32.xlu1 %v4483_v14, %s3981_s29  ;;  %2441 = vrot.lane.b32.xlu0 %v4481_v52, %s3981_s29 }
 0xaf7   : > { %2447 = vrot.lane.b32.xlu1 %v4487_v53, %s3981_s29  ;;  %2445 = vrot.lane.b32.xlu0 %v4485_v19, %s3981_s29 }
 0xafb   : > { %2451 = vrot.lane.b32.xlu1 %v4491_v56, %s3981_s29  ;;  %2449 = vrot.lane.b32.xlu0 %v4489_v55, %s3981_s29 }
 0xaff   : > { %2474 = vperm.xlu1 %3831, %v3582_v43   ;;  %2469 = vperm.xlu0 %3830, %v3581_v9  }
 0xb03   : > { %2484 = vperm.xlu1 %3831, %v3584_v10   ;;  %2479 = vperm.xlu0 %3830, %v3583_v50  }
 0xb07   : > { %2494 = vperm.xlu1 %3831, %v3586_v29   ;;  %2489 = vperm.xlu0 %3830, %v3585_v49  }
 0xb0b   : > { %2504 = vperm.xlu1 %3831, %v3588_v26   ;;  %2499 = vperm.xlu0 %3830, %v3587_v5  }
 0xb0f   : > { %2455 = vrot.lane.b32.xlu1 %v4495_v62, %s3981_s29  ;;  %2453 = vrot.lane.b32.xlu0 %v4493_v57, %s3981_s29 }
 0xb13   : > { %2538 = vperm.xlu1 %3831, %v2524_v8   ;;  %2533 = vperm.xlu0 %3830, %v2523_v45  }
 0xb17   : > { %2548 = vperm.xlu1 %3831, %v2526_v7   ;;  %2543 = vperm.xlu0 %3830, %v2525_v20  }
 0xb1b   : > { %2558 = vperm.xlu1 %3831, %v2528_v11   ;;  %2553 = vperm.xlu0 %3830, %v2527_v0  }
 0xb1f   : > { %2568 = vperm.xlu1 %3831, %v2530_v32   ;;  %2563 = vperm.xlu0 %3830, %v2529_v12  }
 0xb3e   : > { %v2307_v39 = vpop.permute.xlu1 %2306  ;;  %v2297_v1 = vpop.permute.xlu0 %2296 }
 0xb3f   : > { %v2334_v20 = vmul.f32 %v2297_v1, %v4481_v52  ;;  %v2336_v12 = vmul.f32 %v2307_v39, %v4485_v19 }
 0xb42   : > { %v2312_v33 = vpop.permute.xlu1 %2311  ;;  %v2302_v37 = vpop.permute.xlu0 %2301 }
 0xb43   : > { %v2335_v11 = vmul.f32 %v2302_v37, %v4483_v14 }
 0xb46   : > { %v2322_v18 = vpop.permute.xlu1 %2321  ;;  %v2317_v30 = vpop.permute.xlu0 %2316 }
 0xb4a   : > { %v4748_v31 = vpop.permute.xlu1 %2331  ;;  %v4750_v35 = vpop.permute.xlu0 %2326 }
 0xb4e   : > { %v2353_v17 = vpop.permute.xlu1 %2352  ;;  %v2351_v15 = vpop.permute.xlu0 %2350 }
 0xb4f   : > { %v2369_v50 = vsel %vm1453_vm6, %v2353_v17, 0.0  ;;  %v2368_v29 = vsel %vm1453_vm6, %v2351_v15, 0.0  ;;  %v2337_v17 = vmul.f32 %v2312_v33, %v4487_v53 }
 0xb52   : > { %v2357_v58 = vpop.permute.xlu1 %2356  ;;  %v2355_v22 = vpop.permute.xlu0 %2354 }
 0xb53   : > { %v2371_v15 = vsel %vm1453_vm6, %v2357_v58, 0.0 }
 0xb56   : > { %v2361_v42 = vpop.permute.xlu1 %2360  ;;  %v2359_v25 = vpop.permute.xlu0 %2358 }
 0xb57   : > { %v2373_v14 = vsel %vm1453_vm6, %v2361_v42, 0.0  ;;  %v2372_v19 = vsel %vm1453_vm6, %v2359_v25, 0.0 }
 0xb5a   : > { %v2365_v27 = vpop.permute.xlu1 %2364  ;;  %v2363_v13 = vpop.permute.xlu0 %2362 }
 0xb5e   : > { %v2384_v41 = vpop.permute.xlu1 %2383  ;;  %v2379_v4 = vpop.permute.xlu0 %2378 }
 0xb5f   : > { %v2417_v5 = vmul.f32 %v2384_v41, %v2369_v50  ;;  %v2416_v8 = vmul.f32 %v2379_v4, %v2368_v29  ;;  %v2370_v41 = vsel %vm1453_vm6, %v2355_v22, 0.0  ;;  %v2339_v22 = vmul.f32 %v2322_v18, %v4491_v56 }
 0xb61   : > { %v2425_v50 = vadd.f32 %v2417_v5, %v2335_v11  ;;  %v2341_v11 = vmul.f32 %v4748_v31, %v4495_v62 }
 0xb62   : > { %v2394_v48 = vpop.permute.xlu1 %2393  ;;  %v2389_v3 = vpop.permute.xlu0 %2388 }
 0xb63   : > { %v2419_v29 = vmul.f32 %v2394_v48, %v2371_v15  ;;  %v2418_v52 = vmul.f32 %v2389_v3, %v2370_v41  ;;  %v2338_v48 = vmul.f32 %v2317_v30, %v4489_v55 }
 0xb65   : > { %v2427_v5 = vadd.f32 %v2419_v29, %v2337_v17  ;;  %v2426_v25 = vadd.f32 %v2418_v52, %v2336_v12 }
 0xb66   : > { %v2404_v36 = vpop.permute.xlu1 %2403  ;;  %v2399_v34 = vpop.permute.xlu0 %2398 }
 0xb67   : > { %v2421_v3 = vmul.f32 %v2404_v36, %v2373_v14 }
 0xb6a   : > { %v4752_v38 = vpop.permute.xlu1 %2413  ;;  %v4754_v47 = vpop.permute.xlu0 %2408 }
 0xb6e   : > { %v2444_v23 = vpop.permute.xlu1 %2443  ;;  %v2442_v24 = vpop.permute.xlu0 %2441 }
 0xb6f   : > { %v2460_v45 = vsel %vm1448_vm5, %v2444_v23, 0.0  ;;  %v2459_v7 = vsel %vm1448_vm5, %v2442_v24, 0.0  ;;  %v2424_v24 = vadd.f32 %v2416_v8, %v2334_v20 }
 0xb72   : > { %v2448_v51 = vpop.permute.xlu1 %2447  ;;  %v2446_v28 = vpop.permute.xlu0 %2445 }
 0xb73   : > { %v2462_v53 = vsel %vm1448_vm5, %v2448_v51, 0.0  ;;  %v2461_v39 = vsel %vm1448_vm5, %v2446_v28, 0.0  ;;  %v2375_v51 = vsel %vm1453_vm6, %v2365_v27, 0.0  ;;  %v2374_v28 = vsel %vm1453_vm6, %v2363_v13, 0.0 }
 0xb76   : > { %v2452_v16 = vpop.permute.xlu1 %2451  ;;  %v2450_v54 = vpop.permute.xlu0 %2449 }
 0xb77   : > { %v2463_v55 = vsel %vm1448_vm5, %v2450_v54, 0.0  ;;  %v2422_v54 = vmul.f32 %v4754_v47, %v2374_v28 }
 0xb7a   : > { %v2475_v40 = vpop.permute.xlu1 %2474  ;;  %v2470_v46 = vpop.permute.xlu0 %2469 }
 0xb7b   : > { %v2508_v0 = vmul.f32 %v2475_v40, %v2460_v45  ;;  %v2507_v32 = vmul.f32 %v2470_v46, %v2459_v7  ;;  %v2420_v40 = vmul.f32 %v2399_v34, %v2372_v19  ;;  %v2429_v34 = vadd.f32 %v2421_v3, %v2339_v22 }
 0xb7d   : > { %v2516_v37 = vadd.f32 %v2508_v0, %v2425_v50  ;;  %v2515_v58 = vadd.f32 %v2507_v32, %v2424_v24  ;;  %v2340_v0 = vmul.f32 %v4750_v35, %v4493_v57 }
 0xb7e   : > { %v2485_v44 = vpop.permute.xlu1 %2484  ;;  %v2480_v43 = vpop.permute.xlu0 %2479 }
 0xb7f   : > { %v2510_v1 = vmul.f32 %v2485_v44, %v2462_v53  ;;  %v2509_v33 = vmul.f32 %v2480_v43, %v2461_v39  ;;  %v2464_v44 = vsel %vm1448_vm5, %v2452_v16, 0.0  ;;  %v2428_v43 = vadd.f32 %v2420_v40, %v2338_v48 }
 0xb80   : > { %v2423_v16 = vmul.f32 %v4752_v38, %v2375_v51  ;;  %v2430_v38 = vadd.f32 %v2422_v54, %v2340_v0 }
 0xb81   : > { %v2518_v30 = vadd.f32 %v2510_v1, %v2427_v5  ;;  %v2517_v36 = vadd.f32 %v2509_v33, %v2426_v25 }
 0xb82   : > { %v2495_v9 = vpop.permute.xlu1 %2494  ;;  %v2490_v10 = vpop.permute.xlu0 %2489 }
 0xb83   : > { %v2512_v56 = vmul.f32 %v2495_v9, %v2464_v44  ;;  %v2511_v18 = vmul.f32 %v2490_v10, %v2463_v55 }
 0xb85   : > { %v2520_v17 = vadd.f32 %v2512_v56, %v2429_v34  ;;  %v2519_v15 = vadd.f32 %v2511_v18, %v2428_v43 }
 0xb86   : > { %v2505_v49 = vpop.permute.xlu1 %2504  ;;  %v2500_v26 = vpop.permute.xlu0 %2499 }
 0xb8a   : > { %v2456_v4 = vpop.permute.xlu1 %2455  ;;  %v2454_v23 = vpop.permute.xlu0 %2453 }
 0xb8b   : > { %v2466_v27 = vsel %vm1448_vm5, %v2456_v4, 0.0  ;;  %v2465_v13 = vsel %vm1448_vm5, %v2454_v23, 0.0  ;;  %v2431_v23 = vadd.f32 %v2423_v16, %v2341_v11 }
 0xb8c   : > { %v2514_v32 = vmul.f32 %v2505_v49, %v2466_v27  ;;  %v2513_v12 = vmul.f32 %v2500_v26, %v2465_v13 }
 0xb8e   : > { %v2539_v42 = vpop.permute.xlu1 %2538  ;;  %v2534_v46 = vpop.permute.xlu0 %2533  ;;  %v2522_v24 = vadd.f32 %v2514_v32, %v2431_v23  ;;  %v2521_v29 = vadd.f32 %v2513_v12, %v2430_v38 }
 0xb8f   : > { %v2572_v8 = vadd.f32 %v2539_v42, %v2516_v37  ;;  %v2571_v45 = vadd.f32 %v2534_v46, %v2515_v58 }
 0xb91   : > { %2580 = vst [vmem:[#allocation4 + $0x8] sm:$0xff] %v2572_v8  ;;  %2579 = vst [vmem:[#allocation4] sm:$0xff] %v2571_v45 }
 0xb92   : > { %v2549_v7 = vpop.permute.xlu1 %2548  ;;  %v2544_v20 = vpop.permute.xlu0 %2543 }
 0xb93   : > { %v2574_v9 = vadd.f32 %v2549_v7, %v2518_v30  ;;  %v2573_v10 = vadd.f32 %v2544_v20, %v2517_v36 }
 0xb95   : > { %2582 = vst [vmem:[#allocation4 + $0x18] sm:$0xff] %v2574_v9  ;;  %2581 = vst [vmem:[#allocation4 + $0x20] sm:$0xff] %v2573_v10 }
 0xb96   : > { %v2559_v41 = vpop.permute.xlu1 %2558  ;;  %v2554_v4 = vpop.permute.xlu0 %2553 }
 0xb97   : > { %v2576_v50 = vadd.f32 %v2559_v41, %v2520_v17  ;;  %v2575_v47 = vadd.f32 %v2554_v4, %v2519_v15 }
 0xb99   : > { %2584 = vst [vmem:[#allocation4 + $0x30] sm:$0xff] %v2576_v50  ;;  %2583 = vst [vmem:[#allocation4 + $0x28] sm:$0xff] %v2575_v47 }
 0xb9a   : > { %v2569_v62 = vpop.permute.xlu1 %2568  ;;  %v2564_v31 = vpop.permute.xlu0 %2563 }
 0xb9b   : > { %v2578_v52 = vadd.f32 %v2569_v62, %v2522_v24  ;;  %v2577_v57 = vadd.f32 %v2564_v31, %v2521_v29 }
 0xb9d   : > { %2586 = vst [vmem:[#allocation4 + $0x38] sm:$0xff] %v2578_v52  ;;  %2585 = vst [vmem:[#allocation4 + $0x10] sm:$0xff] %v2577_v57 }
 0xb9e PF: > { %v5134_v35 = vmov 0   ;;  %s5135_s27 = scalar_lea.vmem %s5037_s12, %s4182_s3  ;;  %v2587_v26 = vld [vmem:[#allocation4] sm:$0xff]  ;;  %v2588_v14 = vld [vmem:[#allocation4 + $0x8] sm:$0xff]  ;;  %v2590_v53 = vld [vmem:[#allocation4 + $0x18] sm:$0xff]  ;;  %s5136_s3 = sld [smem:[#allocation12_spill]] }
 0xb9f   : > { %3832 = vset.pattern.permute.xlu0 %v5134_v35  ;;  %v3589_v49 = vld [vmem:[%s5135_s27] ss:$0 sm:$0xff]  ;;  %3833 = vset.pattern.permute.xlu1 %v5134_v35  ;;  %vm2596_vm13 = vcmp.ge.f32.partialorder %v2587_v26, 0.0  ;;  %vm2597_vm14 = vcmp.ge.f32.partialorder %v2588_v14, 0.0  ;;  %vm2599_vm0 = vcmp.ge.f32.partialorder %v2590_v53, 0.0 }
 0xba0   : > { %2610 = vperm.xlu0 %3832, %v3589_v49   ;;  %v2589_v19 = vld [vmem:[#allocation4 + $0x20] sm:$0xff]  ;;  %v2591_v58 = vld [vmem:[#allocation4 + $0x28] sm:$0xff]  ;;  %v2592_v48 = vld [vmem:[#allocation4 + $0x30] sm:$0xff] }
 0xba1   : > { %vm2598_vm15 = vcmp.ge.f32.partialorder %v2589_v19, 0.0  ;;  %vm2600_vm1 = vcmp.ge.f32.partialorder %v2591_v58, 0.0  ;;  %vm2601_vm2 = vcmp.ge.f32.partialorder %v2592_v48, 0.0 }
 0xba4   : > { %v2593_v5 = vld [vmem:[#allocation4 + $0x10] sm:$0xff]  ;;  %v2594_v44 = vld [vmem:[#allocation4 + $0x38] sm:$0xff]  ;;  %p3598_p7 = scmp.ne.s32.totalorder %s5136_s3, 5 }
 0xba5   : > { %vm2602_vm11 = vcmp.ge.f32.partialorder %v2593_v5, 0.0  ;;  %vm2603_vm12 = vcmp.ge.f32.partialorder %v2594_v44, 0.0 }
 0xc1b   : > { %v2611_v39 = vpop.permute.xlu0 %2610 }
 0xc1c   : > { %v2613_v1 = vmul.f32 %v2611_v39, %v2587_v26  ;;  %v2614_v33 = vmul.f32 %v2611_v39, %v2588_v14  ;;  %v2615_v37 = vmul.f32 %v2611_v39, %v2589_v19  ;;  %v2616_v22 = vmul.f32 %v2611_v39, %v2590_v53 }
 0xc1d   : > { %v2617_v42 = vmul.f32 %v2611_v39, %v2591_v58  ;;  %v2618_v51 = vmul.f32 %v2611_v39, %v2592_v48  ;;  %v2619_v30 = vmul.f32 %v2611_v39, %v2593_v5  ;;  %v2620_v13 = vmul.f32 %v2611_v39, %v2594_v44 }
 0xc1e   : > { %v4807_v3 = vsel %vm2596_vm13, %v2587_v26, %v2613_v1  ;;  %v4809_v40 = vsel %vm2597_vm14, %v2588_v14, %v2614_v33  ;;  %v4811_v46 = vsel %vm2598_vm15, %v2589_v19, %v2615_v37  ;;  %v4819_v28 = vsel %vm2599_vm0, %v2590_v53, %v2616_v22 }
 0xc1f   : > { %v2645_v25 = vadd.f32 %v4809_v40, %v4807_v3  ;;  %v2686_v8 = vmul.f32 %v4807_v3, %v4807_v3  ;;  %v2687_v45 = vmul.f32 %v4809_v40, %v4809_v40  ;;  %v2688_v56 = vmul.f32 %v4811_v46, %v4811_v46 }
 0xc20   : > { %v4824_v36 = vsel %vm2600_vm1, %v2591_v58, %v2617_v42  ;;  %v2689_v43 = vmul.f32 %v4819_v28, %v4819_v28  ;;  %v4829_v7 = vsel %vm2601_vm2, %v2592_v48, %v2618_v51  ;;  %v4834_v9 = vsel %vm2602_vm11, %v2593_v5, %v2619_v30 }
 0xc21   : > { %v2646_v55 = vadd.f32 %v2645_v25, %v4811_v46  ;;  %v2694_v18 = vadd.f32 %v2687_v45, %v2686_v8  ;;  %v2690_v16 = vmul.f32 %v4824_v36, %v4824_v36  ;;  %v2691_v11 = vmul.f32 %v4829_v7, %v4829_v7 }
 0xc22   : > { %v4839_v32 = vsel %vm2603_vm12, %v2594_v44, %v2620_v13  ;;  %v2692_v17 = vmul.f32 %v4834_v9, %v4834_v9 }
 0xc23   : > { %v2647_v34 = vadd.f32 %v2646_v55, %v4819_v28  ;;  %v2695_v27 = vadd.f32 %v2694_v18, %v2688_v56  ;;  %v2693_v4 = vmul.f32 %v4839_v32, %v4839_v32 }
 0xc25   : > { %v2648_v20 = vadd.f32 %v2647_v34, %v4824_v36  ;;  %v2696_v54 = vadd.f32 %v2695_v27, %v2689_v43 }
 0xc27   : > { %v2649_v10 = vadd.f32 %v2648_v20, %v4829_v7  ;;  %v2697_v0 = vadd.f32 %v2696_v54, %v2690_v16 }
 0xc29   : > { %v2650_v12 = vadd.f32 %v2649_v10, %v4834_v9  ;;  %v2698_v15 = vadd.f32 %v2697_v0, %v2691_v11 }
 0xc2b   : > { %v2651_v41 = vadd.f32 %v2650_v12, %v4839_v32  ;;  %v2699_v23 = vadd.f32 %v2698_v15, %v2692_v17 }
 0xc2d   : > { %v2652_v38 = vrot.slane %v2651_v41, 4  ;;  %v2700_v50 = vadd.f32 %v2699_v23, %v2693_v4 }
 0xc2f   : > { %v2653_v47 = vadd.f32 %v2652_v38, %v2651_v41  ;;  %v2701_v24 = vrot.slane %v2700_v50, 4  ;;  %v2635_v38 = vld [vmem:[%s4229_s5 + $0x30] sm:$0xff] }
 0xc31   : > { %v2654_v29 = vrot.slane %v2653_v47, 2  ;;  %v2702_v62 = vadd.f32 %v2701_v24, %v2700_v50  ;;  %v2636_v50 = vld [vmem:[%s4229_s5 + $0x38] sm:$0xff] }
 0xc32   : > { %v2644_v24 = vld [vmem:[%s4239_s22 + $0x38] sm:$0xff] }
 0xc33   : > { %v2655_v31 = vadd.f32 %v2654_v29, %v2653_v47  ;;  %v2703_v52 = vrot.slane %v2702_v62, 2  ;;  %v2643_v47 = vld [vmem:[%s4239_s22 + $0x30] sm:$0xff]  ;;  %v2633_v29 = vld [vmem:[%s4229_s5 + $0x20] sm:$0xff] }
 0xc35   : > { %v2656_v57 = vrot.slane %v2655_v31, 1  ;;  %v2704_v35 = vadd.f32 %v2703_v52, %v2702_v62  ;;  %v2634_v62 = vld [vmem:[%s4229_s5 + $0x28] sm:$0xff] }
 0xc36   : > { %v2642_v52 = vld [vmem:[%s4239_s22 + $0x28] sm:$0xff] }
 0xc37   : > { %v2657_v49 = vadd.f32 %v2656_v57, %v2655_v31  ;;  %v2705_v26 = vrot.slane %v2704_v35, 1  ;;  %v2641_v31 = vld [vmem:[%s4239_s22 + $0x20] sm:$0xff]  ;;  %v2631_v57 = vld [vmem:[%s4229_s5 + $0x10] sm:$0xff] }
 0xc39   : > { %2658 = vrot.lane.b32.xlu0 %v2657_v49, %s3966_s21  ;;  %v2706_v14 = vadd.f32 %v2705_v26, %v2704_v35  ;;  %v2632_v35 = vld [vmem:[%s4229_s5 + $0x18] sm:$0xff] }
 0xc3a   : > { %v2640_v26 = vld [vmem:[%s4239_s22 + $0x18] sm:$0xff] }
 0xc3b   : > { %2707 = vrot.lane.b32.xlu1 %v2706_v14, %s3966_s21 }
 0xcab   : > { %v2659_v19 = vpop.permute.xlu0 %2658 }
 0xcac   : > { %v2660_v53 = vsel %vm1438_vm3, %v2659_v19, 0.0  ;;  %v2630_v19 = vld [vmem:[%s4229_s5 + $0x8] sm:$0xff] }
 0xcad   : > { %v2708_v39 = vpop.permute.xlu1 %2707  ;;  %v2661_v1 = vadd.f32 %v2660_v53, %v2657_v49  ;;  %v2639_v49 = vld [vmem:[%s4239_s22 + $0x10] sm:$0xff]  ;;  %v2637_v53 = vld [vmem:[%s4239_s22] sm:$0xff] }
 0xcae   : > { %v2709_v33 = vsel %vm1438_vm3, %v2708_v39, 0.0  ;;  %v2638_v39 = vld [vmem:[%s4239_s22 + $0x8] sm:$0xff]  ;;  %vm2891_vm3 = vcmask 523264  }
 0xcaf   : > { %2662 = vrot.lane.b32.xlu1 %v2661_v1, %s3967_s24  ;;  %v2710_v37 = vadd.f32 %v2709_v33, %v2706_v14  ;;  %v2629_v14 = vld [vmem:[%s4229_s5] sm:$0xff]  ;;  %v2952_v33 = vld [vmem:[%s4245_s30 + $0x8] sm:$0xff] }
 0xcb1   : > { %2711 = vrot.lane.b32.xlu0 %v2710_v37, %s3967_s24 }
 0xd21   : > { %v2663_v58 = vpop.permute.xlu1 %2662 }
 0xd22   : > { %v2664_v22 = vsel %vm1443_vm4, %v2663_v58, 0.0  ;;  %v2954_v58 = vld [vmem:[%s4245_s30 + $0x18] sm:$0xff] }
 0xd23   : > { %v2712_v48 = vpop.permute.xlu0 %2711  ;;  %v2665_v42 = vadd.f32 %v2664_v22, %v2661_v1  ;;  %v2951_v1 = vld [vmem:[%s4245_s30] sm:$0xff] }
 0xd24   : > { %v2713_v5 = vsel %vm1443_vm4, %v2712_v48, 0.0  ;;  %v3056_v22 = vld [vmem:[%s4260_s18] sm:$0xff]  ;;  %v3057_v48 = vld [vmem:[%s4260_s18 + $0x8] sm:$0xff] }
 0xd25   : > { %2666 = vrot.lane.b32.xlu1 %v2665_v42, %s3968_s9  ;;  %v2714_v25 = vadd.f32 %v2713_v5, %v2710_v37  ;;  %v2953_v37 = vld [vmem:[%s4245_s30 + $0x10] sm:$0xff]  ;;  %v3059_v5 = vld [vmem:[%s4260_s18 + $0x18] sm:$0xff]  ;;  %s5137_s30 = sld [smem:[#allocation40_spill]] (!%p3598_p7) }
 0xd27   : > { %2715 = vrot.lane.b32.xlu0 %v2714_v25, %s3968_s9  ;;  %s5139_s9 = sld [smem:[#allocation39_spill]] (!%p3598_p7) }
 0xd97   : > { %v2667_v8 = vpop.permute.xlu1 %2666 }
 0xd98   : > { %v2668_v45 = vsel %vm1448_vm5, %v2667_v8, 0.0  ;;  %v3835_v8 = vld [vmem:[%s4255_s19] sm:$0xff]  }
 0xd99   : > { %v2716_v51 = vpop.permute.xlu0 %2715  ;;  %v2669_v44 = vadd.f32 %v2668_v45, %v2665_v42  ;;  %v3058_v42 = vld [vmem:[%s4260_s18 + $0x10] sm:$0xff]  ;;  %3689 = vmatprep.mubr.msk.bf16.mxu0 %vm2891_vm3, %v3835_v8 }
 0xd9a   : > { %v2717_v55 = vsel %vm1448_vm5, %v2716_v51, 0.0 }
 0xd9b   : > { %2670 = vrot.lane.b32.xlu1 %v2669_v44, %s3969_s2  ;;  %v2718_v56 = vadd.f32 %v2717_v55, %v2714_v25  ;;  %v3834_v25 = vld [vmem:[%s4250_s26] sm:$0xff]  }
 0xd9c   : > { %3677 = vmatprep.mubr.msk.bf16.mxu1 %vm2891_vm3, %v3834_v25 }
 0xd9d   : > { %2719 = vrot.lane.b32.xlu0 %v2718_v56, %s3969_s2 }
 0xe0d   : > { %v2671_v18 = vpop.permute.xlu1 %2670 }
 0xe0e   : > { %v2672_v30 = vsel %vm1453_vm6, %v2671_v18, 0.0 }
 0xe0f   : > { %v2720_v34 = vpop.permute.xlu0 %2719  ;;  %v2673_v43 = vadd.f32 %v2672_v30, %v2669_v44 }
 0xe10   : > { %v2721_v27 = vsel %vm1453_vm6, %v2720_v34, 0.0 }
 0xe11   : > { %2674 = vrot.lane.b32.xlu1 %v2673_v43, %s3970_s11  ;;  %v2722_v13 = vadd.f32 %v2721_v27, %v2718_v56 }
 0xe13   : > { %2723 = vrot.lane.b32.xlu0 %v2722_v13, %s3970_s11 }
 0xe83   : > { %v2675_v20 = vpop.permute.xlu1 %2674 }
 0xe84   : > { %v2676_v16 = vsel %vm1458_vm7, %v2675_v20, 0.0 }
 0xe85   : > { %v2724_v54 = vpop.permute.xlu0 %2723  ;;  %v2677_v10 = vadd.f32 %v2676_v16, %v2673_v43 }
 0xe86   : > { %v2725_v11 = vsel %vm1458_vm7, %v2724_v54, 0.0 }
 0xe87   : > { %2678 = vrot.lane.b32.xlu1 %v2677_v10, %s3971_s4  ;;  %v2726_v0 = vadd.f32 %v2725_v11, %v2722_v13 }
 0xe89   : > { %2727 = vrot.lane.b32.xlu0 %v2726_v0, %s3971_s4 }
 0xef9   : > { %v2679_v12 = vpop.permute.xlu1 %2678 }
 0xefa   : > { %v2680_v17 = vsel %vm1463_vm8, %v2679_v12, 0.0 }
 0xefb   : > { %v2728_v15 = vpop.permute.xlu0 %2727  ;;  %v2681_v41 = vadd.f32 %v2680_v17, %v2677_v10 }
 0xefc   : > { %v2729_v4 = vsel %vm1463_vm8, %v2728_v15, 0.0 }
 0xefd   : > { %2682 = vrot.lane.b32.xlu1 %v2681_v41, %s3972_s6  ;;  %v2730_v23 = vadd.f32 %v2729_v4, %v2726_v0 }
 0xeff   : > { %2731 = vrot.lane.b32.xlu0 %v2730_v23, %s3972_s6 }
 0xf01   : > { %2805 = vperm.xlu1 %3833, %v2635_v38  }
 0xf03   : > { %2810 = vperm.xlu0 %3832, %v2636_v50  }
 0xf05   : > { %2853 = vperm.xlu1 %3833, %v2643_v47  }
 0xf07   : > { %2858 = vperm.xlu0 %3832, %v2644_v24  }
 0xf09   : > { %2795 = vperm.xlu1 %3833, %v2633_v29  }
 0xf0b   : > { %2800 = vperm.xlu0 %3832, %v2634_v62  }
 0xf0d   : > { %2843 = vperm.xlu1 %3833, %v2641_v31  }
 0xf0f   : > { %2848 = vperm.xlu0 %3832, %v2642_v52  }
 0xf11   : > { %2785 = vperm.xlu1 %3833, %v2631_v57  }
 0xf13   : > { %2790 = vperm.xlu0 %3832, %v2632_v35  }
 0xf15   : > { %2833 = vperm.xlu1 %3833, %v2639_v49  }
 0xf17   : > { %2838 = vperm.xlu0 %3832, %v2640_v26  }
 0xf19   : > { %2775 = vperm.xlu1 %3833, %v2629_v14  }
 0xf1b   : > { %2780 = vperm.xlu0 %3832, %v2630_v19  }
 0xf1d   : > { %2823 = vperm.xlu1 %3833, %v2637_v53  }
 0xf1f   : > { %2828 = vperm.xlu0 %3832, %v2638_v39  }
 0xf21   : > { %2957 = vperm.xlu1 %3833, %v2951_v1  }
 0xf23   : > { %2962 = vperm.xlu0 %3832, %v2952_v33  }
 0xf25   : > { %2967 = vperm.xlu1 %3833, %v2953_v37  }
 0xf27   : > { %2972 = vperm.xlu0 %3832, %v2954_v58  }
 0xf29   : > { %3062 = vperm.xlu1 %3833, %v3056_v22  }
 0xf2b   : > { %3067 = vperm.xlu0 %3832, %v3057_v48  }
 0xf2d   : > { %3072 = vperm.xlu1 %3833, %v3058_v42  }
 0xf2f   : > { %3077 = vperm.xlu0 %3832, %v3059_v5  }
 0xf6f   : > { %v2683_v45 = vpop.permute.xlu1 %2682 }
 0xf70   : > { %v2684_v51 = vsel %vm1468_vm9, %v2683_v45, 0.0 }
 0xf71   : > { %v2685_v44 = vadd.f32 %v2684_v51, %v2681_v41  ;;  %v2732_v55 = vpop.permute.xlu0 %2731 }
 0xf72   : > { %v2733_v56 = vsel %vm1468_vm9, %v2732_v55, 0.0 }
 0xf73   : > { %v2735_v18 = vmul.f32 %v4460_v6, %v2685_v44  ;;  %v2734_v30 = vadd.f32 %v2733_v56, %v2730_v23 }
 0xf75   : > { %v2737_v34 = vmul.f32 %v2735_v18, %v2735_v18  ;;  %v2736_v43 = vmul.f32 %v4460_v6, %v2734_v30  ;;  %v2751_v24 = vrot.slane %v2735_v18, %v4469_v21 }
 0xf77   : > { %v2738_v27 = vsub.f32 %v2736_v43, %v2737_v34  ;;  %v2758_v29 = vsub.f32 %v4834_v9, %v2751_v24  ;;  %v2759_v62 = vsub.f32 %v4839_v32, %v2751_v24  ;;  %v2756_v31 = vsub.f32 %v4824_v36, %v2751_v24 }
 0xf78   : > { %v2757_v52 = vsub.f32 %v4829_v7, %v2751_v24  ;;  %v2754_v35 = vsub.f32 %v4811_v46, %v2751_v24  ;;  %v2755_v49 = vsub.f32 %v4819_v28, %v2751_v24  ;;  %v2752_v9 = vsub.f32 %v4807_v3, %v2751_v24 }
 0xf79   : > { %v2739_v13 = vmax.f32 %v2738_v27, 0.0  ;;  %v2753_v32 = vsub.f32 %v4809_v40, %v2751_v24 }
 0xf7b   : > { %3838 = vrsqrt.f32 %v2739_v13  ;;  %vm2742_vm4 = vcmp.eq.f32.partialorder %v2739_v13, inf  ;;  %v2745_v12 = vand.u32 2147483648, %v2739_v13  ;;  %vm2744_vm5 = vcmp.eq.f32.partialorder %v2739_v13, 0.0 }
 0xf7c   : > { %v2806_v20 = vpop.permute.xlu1 %2805 }
 0xf7e   : > { %v2811_v16 = vpop.permute.xlu0 %2810 }
 0xf80   : > { %v2854_v54 = vpop.permute.xlu1 %2853 }
 0xf82   : > { %v2859_v10 = vpop.permute.xlu0 %2858 }
 0xf84   : > { %v2796_v15 = vpop.permute.xlu1 %2795 }
 0xf86   : > { %v2801_v41 = vpop.permute.xlu0 %2800 }
 0xf88   : > { %v3839_v11 = vpop.eup %3838  ;;  %v2844_v6 = vpop.permute.xlu1 %2843 }
 0xf89   : > { %v2741_v0 = vmul.f32 %v3839_v11, %v2739_v13 }
 0xf8a   : > { %v2849_v38 = vpop.permute.xlu0 %2848 }
 0xf8b   : > { %v2743_v17 = vsel %vm2742_vm4, %v2739_v13, %v2741_v0 }
 0xf8c   : > { %v2746_v2 = vsel %vm2744_vm5, %v2745_v12, %v2743_v17  ;;  %v2786_v50 = vpop.permute.xlu1 %2785 }
 0xf8d   : > { %v2747_v4 = vadd.f32 1e-08, %v2746_v2  ;;  %v2875_v2 = vld [vmem:[#allocation3 + $0x8] sm:$0xff] }
 0xf8e   : > { %v2791_v47 = vpop.permute.xlu0 %2790 }
 0xf8f   : > { %v2763_v23 = vrot.slane %v2747_v4, %v4469_v21 }
 0xf90   : > { %v2834_v26 = vpop.permute.xlu1 %2833 }
 0xf91   : > { %3840 = vrcp.f32 %v2763_v23  ;;  %v2873_v23 = vld [vmem:[#allocation3] sm:$0xff] }
 0xf92   : > { %v2839_v14 = vpop.permute.xlu0 %2838 }
 0xf94   : > { %v2776_v45 = vpop.permute.xlu1 %2775 }
 0xf96   : > { %v2781_v51 = vpop.permute.xlu0 %2780 }
 0xf98   : > { %v2824_v30 = vpop.permute.xlu1 %2823 }
 0xf9a   : > { %v2829_v34 = vpop.permute.xlu0 %2828 }
 0xf9e   : > { %v3841_v57 = vpop.eup %3840  ;;  %v2963_v11 = vpop.permute.xlu0 %2962 }
 0xf9f   : > { %v2771_v19 = vmul.f32 %v3841_v57, %v2758_v29  ;;  %v2772_v53 = vmul.f32 %v3841_v57, %v2759_v62  ;;  %v2769_v39 = vmul.f32 %v3841_v57, %v2756_v31  ;;  %v2770_v1 = vmul.f32 %v3841_v57, %v2757_v52  ;;  %v2876_v29 = vld [vmem:[#allocation3 + $0x10] sm:$0xff] }
 0xfa0   : > { %v2767_v21 = vmul.f32 %v3841_v57, %v2754_v35  ;;  %v2768_v33 = vmul.f32 %v3841_v57, %v2755_v49  ;;  %v2765_v48 = vmul.f32 %v3841_v57, %v2752_v9  ;;  %v2766_v28 = vmul.f32 %v3841_v57, %v2753_v32 }
 0xfa1   : > { %v2819_v36 = vmul.f32 %v2806_v20, %v2771_v19  ;;  %v2820_v37 = vmul.f32 %v2811_v16, %v2772_v53  ;;  %v2817_v7 = vmul.f32 %v2796_v15, %v2769_v39  ;;  %v2818_v58 = vmul.f32 %v2801_v41, %v2770_v1  ;;  %v3836_v16 = vld [vmem:[%s4250_s26 + $0x8] sm:$0xff]   ;;  %s5138_s26 = smov (!%p3598_p7), %s5137_s30 }
 0xfa2   : > { %v2815_v22 = vmul.f32 %v2786_v50, %v2767_v21  ;;  %v2816_v46 = vmul.f32 %v2791_v47, %v2768_v33  ;;  %v2813_v55 = vmul.f32 %v2776_v45, %v2765_v48  ;;  %v2814_v56 = vmul.f32 %v2781_v51, %v2766_v28  ;;  %v2973_v12 = vpop.permute.xlu0 %2972 }
 0xfa3   : > { %v2867_v42 = vadd.f32 %v2854_v54, %v2819_v36  ;;  %v2868_v5 = vadd.f32 %v2859_v10, %v2820_v37  ;;  %v2865_v25 = vadd.f32 %v2844_v6, %v2817_v7  ;;  %v2866_v8 = vadd.f32 %v2849_v38, %v2818_v58  ;;  %v3837_v54 = vld [vmem:[%s4255_s19 + $0x8] sm:$0xff]   ;;  %v2958_v10 = vpop.permute.xlu1 %2957 }
 0xfa4   : > { %v2863_v18 = vadd.f32 %v2834_v26, %v2815_v22  ;;  %v2864_v40 = vadd.f32 %v2839_v14, %v2816_v46  ;;  %v2861_v27 = vadd.f32 %v2824_v30, %v2813_v55  ;;  %v2862_v13 = vadd.f32 %v2829_v34, %v2814_v56  ;;  %v2874_v26 = vld [vmem:[#allocation3 + $0x18] sm:$0xff] }
 0xfa5   : > { %v2872_v44 = vpack.c.bf16 %v2868_v5, %v2867_v42  ;;  %v2871_v3 = vpack.c.bf16 %v2866_v8, %v2865_v25 }
 0xfa6   : > { %v2870_v43 = vpack.c.bf16 %v2864_v40, %v2863_v18  ;;  %v2869_v20 = vpack.c.bf16 %v2862_v13, %v2861_v27  ;;  %v3068_v15 = vpop.permute.xlu0 %3067 }
 0xfa7   : > { %3669 = vmatprep.subr.bf16.mxu1 %v2872_v44  ;;  %3681 = vmatprep.subr.bf16.mxu0 %v2872_v44  ;;  %v2968_v0 = vpop.permute.xlu1 %2967 }
 0xfa8   : > { %3670 = vmatpush3.bf16.msra.mxu1 %v2872_v44  ;;  %3682 = vmatpush3.bf16.msra.mxu0 %v2872_v44 }
 0xfa9   : > { %3671 = vmatprep.subr.bf16.mxu1 %v2871_v3  ;;  %3683 = vmatprep.subr.bf16.mxu0 %v2871_v3 }
 0xfaa   : > { %v3078_v14 = vpop.permute.xlu0 %3077 }
 0xfab   : > { %v3063_v17 = vpop.permute.xlu1 %3062 }
 0xfac   : > { %3672 = vmatpush3.bf16.msra.mxu1 %v2871_v3  ;;  %3684 = vmatpush3.bf16.msra.mxu0 %v2871_v3 }
 0xfad   : > { %3673 = vmatprep.subr.bf16.mxu1 %v2870_v43  ;;  %3685 = vmatprep.subr.bf16.mxu0 %v2870_v43 }
 0xfaf   : > { %v3073_v6 = vpop.permute.xlu1 %3072 }
 0xfb0   : > { %3674 = vmatpush3.bf16.msra.mxu1 %v2870_v43  ;;  %3686 = vmatpush3.bf16.msra.mxu0 %v2870_v43 }
 0xfb1   : > { %3675 = vmatprep.subr.bf16.mxu1 %v2869_v20  ;;  %3687 = vmatprep.subr.bf16.mxu0 %v2869_v20 }
 0xfb4   : > { %3676 = vmatpush3.bf16.msra.mxu1 %v2869_v20  ;;  %3688 = vmatpush3.bf16.msra.mxu0 %v2869_v20 }
 0xfb7   : > { %3678 = vmatmul.mubr.msk.bf16.vlgmr.msra.gmra.mxu1 %vm2891_vm3, %v3836_v16  ;;  %3690 = vmatmul.mubr.msk.bf16.vlgmr.msra.gmra.mxu0 %vm2891_vm3, %v3837_v54 }
0x1077   : > { %v3679_v41 = vpop.f32.mrf.mxu1  ;;  %v3691_v4 = vpop.f32.mrf.mxu0 }
0x1078   : > { %v2949_v38 = vadd.f32 %v3679_v41, %v2875_v2  ;;  %v3054_v50 = vadd.f32 %v3691_v4, %v4318_v59 }
0x1079   : > { %v2932_v47 = vpop.f32.mrf.mxu1  ;;  %v3037_v24 = vpop.f32.mrf.mxu0 }
0x107a   : > { %v2977_v62 = vadd.f32 %v2968_v0, %v2949_v38  ;;  %v3082_v31 = vadd.f32 %v3073_v6, %v3054_v50  ;;  %v2947_v52 = vadd.f32 %v2932_v47, %v2873_v23  ;;  %v3052_v57 = vadd.f32 %v3037_v24, %v4322_v61 }
0x107b   : > { %v3680_v35 = vpop.f32.mrf.mxu1  ;;  %v3692_v49 = vpop.f32.mrf.mxu0 }
0x107c   : > { %2981 = vst [vmem:[#allocation3 + $0x8] sm:$0xff] %v2977_v62  ;;  %3086 = vst [vmem:[#allocation2 + $0x18] sm:$0xff] %v3082_v31  ;;  %v2975_v19 = vadd.f32 %v2958_v10, %v2947_v52  ;;  %v3080_v53 = vadd.f32 %v3063_v17, %v3052_v57  ;;  %v2950_v39 = vadd.f32 %v3680_v35, %v2876_v29 }
0x107d   : > { %v3055_v1 = vadd.f32 %v3692_v49, %v4320_v60  ;;  %v2935_v59 = vpop.f32.mrf.mxu1  ;;  %v3040_v21 = vpop.f32.mrf.mxu0 }
0x107e   : > { %2979 = vst [vmem:[#allocation3] sm:$0xff] %v2975_v19  ;;  %3084 = vst [vmem:[#allocation2 + $0x10] sm:$0xff] %v3080_v53  ;;  %v2978_v33 = vadd.f32 %v2973_v12, %v2950_v39  ;;  %v2948_v32 = vadd.f32 %v2935_v59, %v2874_v26  ;;  %v3053_v61 = vadd.f32 %v3040_v21, %v4326_v63  ;;  %3091 = sbr.rel (%p3598_p7) target bundleno = 4600 (0x11f8), region = 128 }
0x107f   : > { %v3083_v9 = vadd.f32 %v3078_v14, %v3055_v1 }
0x1080   : > { %2982 = vst [vmem:[#allocation3 + $0x10] sm:$0xff] %v2978_v33  ;;  %v2976_v36 = vadd.f32 %v2963_v11, %v2948_v32  ;;  %v3081_v37 = vadd.f32 %v3068_v15, %v3053_v61 }
0x1081   : > { %3087 = vst [vmem:[#allocation2 + $0x8] sm:$0xff] %v3083_v9 }
0x1082   : > { %2980 = vst [vmem:[#allocation3 + $0x18] sm:$0xff] %v2976_v36  ;;  %3085 = vst [vmem:[#allocation2] sm:$0xff] %v3081_v37 }
0x1083   : > { %v3599_v7 = vld [vmem:[#allocation5] ss:$0 sm:$0xff]  ;;  %v3982_v60 = vmov 0   ;;  %v3127_v63 = vld [vmem:[%s5138_s26 + $0x18] sm:$0xff]  ;;  %v3125_v46 = vld [vmem:[%s5138_s26 + $0x8] sm:$0xff] }
0x1084   : > { %3842 = vset.pattern.permute.xlu0 %v3982_v60  ;;  %3843 = vset.pattern.permute.xlu1 %v3982_v60  ;;  %v3124_v58 = vld [vmem:[%s5137_s30] sm:$0xff]  ;;  %v3126_v48 = vld [vmem:[%s5138_s26 + $0x10] sm:$0xff]  ;;  %v3094_v5 = vld [vmem:[#allocation3 + $0x8] sm:$0xff] }
0x1085   : > { %3107 = vperm.xlu0 %3842, %v3599_v7   ;;  %v3844_v22 = vld [vmem:[%s5139_s9] sm:$0xff]   ;;  %3135 = vperm.xlu1 %3843, %v3125_v46   ;;  %vm3099_vm6 = vcmp.ge.f32.partialorder %v3094_v5, 0.0  ;;  %v3845_v43 = vld [vmem:[%s5139_s9 + $0x8] sm:$0xff]  }
0x1086   : > { %3697 = vmatprep.mubr.msk.bf16.mxu0 %vm1295_vm10, %v3844_v22  ;;  %v3092_v28 = vld [vmem:[#allocation3] sm:$0xff] }
0x1087   : > { %v3095_v25 = vld [vmem:[#allocation3 + $0x10] sm:$0xff]  ;;  %vm3097_vm8 = vcmp.ge.f32.partialorder %v3092_v28, 0.0 }
0x1088   : > { %vm3100_vm7 = vcmp.ge.f32.partialorder %v3095_v25, 0.0 }
0x1089   : > { %3130 = vperm.xlu0 %3842, %v3124_v58   ;;  %3140 = vperm.xlu1 %3843, %v3126_v48   ;;  %v3093_v42 = vld [vmem:[#allocation3 + $0x18] sm:$0xff] }
0x108a   : > { %vm3098_vm9 = vcmp.ge.f32.partialorder %v3093_v42, 0.0 }
0x108d   : > { %3145 = vperm.xlu0 %3842, %v3127_v63  }
0x1100   : > { %v3108_v8 = vpop.permute.xlu0 %3107  ;;  %v3136_v27 = vpop.permute.xlu1 %3135 }
0x1101   : > { %v3110_v45 = vmul.f32 %v3108_v8, %v3092_v28  ;;  %v3111_v51 = vmul.f32 %v3108_v8, %v3093_v42  ;;  %v3112_v44 = vmul.f32 %v3108_v8, %v3094_v5  ;;  %v3113_v55 = vmul.f32 %v3108_v8, %v3095_v25 }
0x1103   : > { %v3116_v56 = vsel %vm3099_vm6, %v3094_v5, %v3112_v44  ;;  %v3117_v3 = vsel %vm3100_vm7, %v3095_v25, %v3113_v55  ;;  %v3114_v18 = vsel %vm3097_vm8, %v3092_v28, %v3110_v45  ;;  %v3115_v40 = vsel %vm3098_vm9, %v3093_v42, %v3111_v51 }
0x1104   : > { %v3123_v30 = vpack.c.bf16 %v3117_v3, %v3116_v56  ;;  %v3122_v34 = vpack.c.bf16 %v3115_v40, %v3114_v18  ;;  %v3131_v13 = vpop.permute.xlu0 %3130  ;;  %v3141_v20 = vpop.permute.xlu1 %3140 }
0x1106   : > { %3693 = vmatprep.subr.bf16.mxu0 %v3123_v30 }
0x1107   : > { %3694 = vmatpush3.bf16.msra.mxu0 %v3123_v30 }
0x1108   : > { %3695 = vmatprep.subr.bf16.mxu0 %v3122_v34  ;;  %v3146_v12 = vpop.permute.xlu0 %3145 }
0x110b   : > { %3696 = vmatpush3.bf16.msra.mxu0 %v3122_v34 }
0x110e   : > { %3698 = vmatmul.mubr.msk.bf16.vlgmr.msra.gmra.mxu0 %vm1295_vm10, %v3845_v43 }
0x11ce   : > { %v3699_v16 = vpop.f32.mrf.mxu0 }
0x11cf   : > { %v3207_v54 = vadd.f32 %v3699_v16, %v3141_v20 }
0x11d0   : > { %v3198_v10 = vpop.f32.mrf.mxu0 }
0x11d1   : > { %v3606_v11 = vmul.f32 -1.442695, %v3207_v54  ;;  %v3199_v0 = vadd.f32 %v3198_v10, %v3131_v13 }
0x11d2   : > { %v3700_v17 = vpop.f32.mrf.mxu0 }
0x11d3   : > { %3846 = vpow2.f32 %v3606_v11  ;;  %v3604_v2 = vmul.f32 -1.442695, %v3199_v0  ;;  %v3210_v15 = vadd.f32 %v3700_v17, %v3146_v12 }
0x11d4   : > { %v3201_v41 = vpop.f32.mrf.mxu0 }
0x11d5   : > { %3848 = vpow2.f32 %v3604_v2  ;;  %v3607_v4 = vmul.f32 -1.442695, %v3210_v15  ;;  %v3202_v23 = vadd.f32 %v3201_v41, %v3136_v27 }
0x11d7   : > { %3850 = vpow2.f32 %v3607_v4  ;;  %v3605_v6 = vmul.f32 -1.442695, %v3202_v23 }
0x11d9   : > { %3852 = vpow2.f32 %v3605_v6 }
0x11e0   : > { %v3847_v38 = vpop.eup %3846 }
0x11e1   : > { %v3227_v50 = vadd.f32 1.0, %v3847_v38 }
0x11e2   : > { %v3849_v47 = vpop.eup %3848 }
0x11e3   : > { %3854 = vrcp.f32 %v3227_v50  ;;  %v3225_v24 = vadd.f32 1.0, %v3849_v47 }
0x11e4   : > { %v3851_v29 = vpop.eup %3850 }
0x11e5   : > { %3856 = vrcp.f32 %v3225_v24  ;;  %v3228_v62 = vadd.f32 1.0, %v3851_v29 }
0x11e6   : > { %v3853_v31 = vpop.eup %3852 }
0x11e7   : > { %3858 = vrcp.f32 %v3228_v62  ;;  %v3226_v52 = vadd.f32 1.0, %v3853_v31 }
0x11e9   : > { %3860 = vrcp.f32 %v3226_v52 }
0x11f0   : > { %v3855_v57 = vpop.eup %3854 }
0x11f1   : > { %3239 = vst [vmem:[%s4262_s13 + $0x10] sm:$0xff] %v3855_v57 }
0x11f2   : > { %v3857_v35 = vpop.eup %3856 }
0x11f3   : > { %3237 = vst [vmem:[%s4262_s13] sm:$0xff] %v3857_v35 }
0x11f4   : > { %v3859_v49 = vpop.eup %3858 }
0x11f5   : > { %3240 = vst [vmem:[%s4262_s13 + $0x18] sm:$0xff] %v3859_v49 }
0x11f6   : > { %v3861_v26 = vpop.eup %3860 }
0x11f7   : > { %3238 = vst [vmem:[%s4262_s13 + $0x8] sm:$0xff] %v3861_v26 }
0x11f8 PF: > { %s5140_s29 = sld [smem:[#allocation13_spill]]  ;;  %s3255_s19 = sshll.u32 %s4262_s13, 4  ;;  %s4969_s19 = int_to_ptr.vmem [resolvable:$true] %s3255_s19 }
0x11f9   : > { %s5141_s20 = sld [smem:[#allocation10_spill]]  ;;  %s3862_s24 = scalar_lea.vmem %s4969_s19, 512 }
0x11fa   : > { %s5143_s5 = sld [smem:[#allocation41_spill]]  ;;  %p3863_p8 = scmp.ne.s32.totalorder %s4969_s19, %s3862_s24 }
0x11fb   : > { %s3983_s11 = smov [#allocation6]  }
0x11fc   : > { %p3864_p10 = pnand %p3863_p8, %p4152_p3  ;;  %s3866_s4 = sshll.u32 %s3983_s11, 4  ;;  %s3867_s4 = int_to_ptr.vmem [resolvable:$false] %s3866_s4 }
0x11fd   : > { %s3868_s6 = scalar_lea.vmem %s3867_s4, 1024  ;;  %p3869_p12 = scmp.lt.s32.totalorder %s4969_s19, %s3867_s4 }
0x11fe   : > { %s3625_s0 = sshll.u32 %s5140_s29, 9  ;;  %p3865_p11 = pneg %p3864_p10 }
0x11ff   : > { %s5145_s18 = sand.u32 1, %s5141_s20   ;;  %p3870_p13 = scmp.lt.s32.totalorder %s3868_s6, %s3862_s24 }
0x1200   : > { %s5144_s22 = smov %s5143_s5  ;;  %s4966_s30 = scalar_lea.hbm %s5143_s5, %s3625_s0 }
0x1201   : > { %s4973_s21 = scalar_lea.sflag [#allocation7], %s5145_s18  ;;  %p3871_p0 = por %p3870_p13, %p3869_p12 }
0x1203   : > { %p3872_p1 = pnand %p3871_p0, %p3865_p11 }
0x1205   : > { %3875 = shalt.err (!%p3872_p1)
}
0x1206   : > { %s3876_s13 = scalar_lea.hbm %s4966_s30, 512  ;;  %s3880_s1 = scalar_lea.hbm %s5144_s22, 1024 }
0x1207   : > { %p3877_p2 = scmp.ne.s32.totalorder %s4966_s30, %s3876_s13  ;;  %p3881_p6 = scmp.lt.s32.totalorder %s4966_s30, %s5144_s22 }
0x1208   : > { %p3882_p7 = scmp.lt.s32.totalorder %s3880_s1, %s3876_s13 }
0x1209   : > { %p3878_p4 = pnand %p3877_p2, %p4152_p3 }
0x120a   : > { %p3883_p8 = por %p3882_p7, %p3881_p6 }
0x120b   : > { %p3879_p5 = pneg %p3878_p4 }
0x120d   : > { %p3884_p10 = pnand %p3883_p8, %p3879_p5 }
0x120f   : > { %3887 = shalt.err (!%p3884_p10)
}
0x1210   : > { %s3984_s0 = smov 128  }
0x1211   : > { %3702 = dma.vmem_to_hbm [thread:$0]  (%p4152_p3), %s4969_s19, 512, %s4966_s30, %s4973_s21, %s3984_s0, %s3984_s0, %s3969_s2  }
0x1212 PF: > { %s5146_s27 = sld [smem:[#allocation16_spill]] }
0x1213   : > { %s5147_s3 = sld [smem:[#allocation9_spill]] }
0x1218   : > { %p3708_p11 = scmp.ge.s32.totalorder %s5146_s27, 2 }
0x1219   : > { %s3270_s18 = sand.u32 1, %s5147_s3  }
0x121a   : > { %p3705_p12 = pnand %p3708_p11, %p4162_p9  ;;  %s3271_s24 = scalar_lea.sflag [#allocation7], %s3270_s18 }
0x121c   : > { %p3706_p13 = pneg %p3705_p12 }
0x121e   : > { %3921 = dma.done.wait (%p3706_p13), %s3271_s24, 512  }
0x121f   : > { %3923 = vsyncadd (%p3706_p13), %s3271_s24, 4294966784  ;;  %s37_s24 = sadd.s32 1, %s5146_s27   ;;  %s5149_s29 = sld [smem:[#allocation10_spill]] }
0x1220   : > { %p34_p0 = scmp.ge.s32.totalorder %s37_s24, 14   ;;  %s5150_s30 = sld [smem:[#allocation11_spill]] }
0x1221   : > { %s5151_s4 = sld [smem:[#allocation21_spill]] }
0x1222   : > { %s5152_s0 = sld [smem:[#allocation14_spill]]  ;;  %36 = sbr.rel (!%p34_p0) target bundleno = 24 (0x18), region = 211 }
0x1223   : > { %s5153_s23 = sld [smem:[#allocation15_spill]] }
0x1224   : > { %s5154_s1 = sld [smem:[#allocation17_spill]] }
0x1225   : > { %s5155_s5 = sld [smem:[#allocation19_spill]] }
0x1227   :  { %3276 = vsyncpa [#allocation7], 1 }
0x1228   :  { %3278 = vsyncpa [#allocation7 + $0x1], 1 }

</bundles_post_ra>
